<compile_context>
chip_gen: v6e
topology: v6e:2x2x1
jax: 0.10.0
libtpu: 0.0.40
codegen_flags: <defaults>
</compile_context>

<pallas_src>
import functools

import jax
import jax.numpy as jnp
import numpy as np
from jax.experimental import pallas as pl
from jax.experimental.pallas import tpu as pltpu


def _round_up(a, b):
    return (a + b - 1) // b * b


def _cdiv(a, b):
    return -(-a // b)


def _vmem_capacity_bytes():
    """Physical VMEM per TensorCore; conservative (v7x, 64 MiB) fallback."""
    try:
        return int(pltpu.get_tpu_info().vmem_capacity_bytes)
    except Exception:
        return 64 * 1024 * 1024


def _convx_kernel(offsets, fused, x_ref, w_ref, scale_ref, shift_ref, o_ref):
    """relu(conv(x) * bn_scale + bn_shift) for one output tile.

    x_ref     : (1, r_in, C)   flattened padded-image rows + halo (or im2col rows)
    w_ref     : fused  -> (1, K*C, Coutp) ; per-tap -> (K, C, Coutp)
    scale_ref : (1, Coutp) f32 folded BN scale
    shift_ref : (1, Coutp) f32 folded BN shift
    o_ref     : (1, tp, Coutp)
    """
    tp = o_ref.shape[1]
    if fused:
        # One full-depth MXU contraction (K*C) instead of K shallow ones.
        if len(offsets) == 1:
            lhs = x_ref[0, offsets[0]:offsets[0] + tp, :]
        else:
            lhs = jnp.concatenate(
                [x_ref[0, off:off + tp, :] for off in offsets], axis=-1)
        acc = jnp.dot(lhs, w_ref[0], preferred_element_type=jnp.float32)
    else:
        # Per-tap dots (Cin already fills the MXU, or fused concat unsupported).
        acc = jnp.zeros((tp, o_ref.shape[2]), jnp.float32)
        for k, off in enumerate(offsets):                   # static, unrolled
            acc = acc + jnp.dot(x_ref[0, off:off + tp, :], w_ref[k],
                                preferred_element_type=jnp.float32)
    y = jnp.maximum(acc * scale_ref[...] + shift_ref[...], 0.0)   # f32 epilogue
    o_ref[0] = y.astype(o_ref.dtype)


# Cache of the most-optimized pallas configuration known to lower cleanly,
# keyed by whether tap-fusion is allowed.
_CFG_CACHE = {}


def _launch(x_blocks, w_taps, scale, shift, offsets, tp, out_dtype, flops,
            allow_fuse):
    """x_blocks: (g, r_in, c); w_taps: (Ktaps, depth, Coutp)."""
    g, r_in, c = x_blocks.shape
    ktaps, depth, coutp = w_taps.shape
    itemsize = x_blocks.dtype.itemsize
    out_itemsize = jnp.dtype(out_dtype).itemsize

    bytes_accessed = int(
        x_blocks.size * itemsize + w_taps.size * w_taps.dtype.itemsize
        + scale.size * 4 + shift.size * 4 + g * tp * coutp * out_itemsize)
    cost = pl.CostEstimate(flops=int(flops), transcendentals=0,
                           bytes_accessed=bytes_accessed)

    # Generation-aware VMEM limit: size actual buffers, add headroom, stay under
    # physical capacity (64 MiB/TC on v7x, 128 MiB on v5e/v6e).
    phys = _vmem_capacity_bytes()
    vmem_need = (
        2 * r_in * max(c, 128) * itemsize                  # x block, double buffered
        + w_taps.size * w_taps.dtype.itemsize              # weights (single buffered)
        + 4 * coutp * 4                                    # scale + shift
        + 2 * tp * coutp * out_itemsize                    # out block, double buffered
        + tp * coutp * 4                                   # f32 accumulator
        + tp * max(ktaps * depth, 128) * itemsize)         # fused lhs concat
    vmem_limit = int(min(max(vmem_need + 16 * 2**20, 32 * 2**20),
                         max(phys - 16 * 2**20, 32 * 2**20)))

    def run(fused, single_buffer_consts):
        w_in = w_taps.reshape(1, ktaps * depth, coutp) if fused else w_taps
        const_kw = ({"pipeline_mode": pl.Buffered(1)}
                    if single_buffer_consts else {})
        kern = functools.partial(
            _convx_kernel, tuple(int(o) for o in offsets), fused)
        return pl.pallas_call(
            kern,
            out_shape=jax.ShapeDtypeStruct((g, tp, coutp), out_dtype),
            grid=(g,),
            in_specs=[
                pl.BlockSpec((1, r_in, c), lambda i: (i, 0, 0)),
                pl.BlockSpec(w_in.shape, lambda i: (0, 0, 0), **const_kw),
                pl.BlockSpec((1, coutp), lambda i: (0, 0), **const_kw),
                pl.BlockSpec((1, coutp), lambda i: (0, 0), **const_kw),
            ],
            out_specs=pl.BlockSpec((1, tp, coutp), lambda i: (i, 0, 0)),
            compiler_params=pltpu.CompilerParams(
                dimension_semantics=("parallel",),
                vmem_limit_bytes=vmem_limit),
            cost_estimate=cost,
        )(x_blocks, w_in, scale, shift)

    # Try most-optimized config first; if the installed Pallas rejects a feature
    # (single-buffer pipeline_mode, lane-dim concat), fall back and remember.
    configs = []
    if allow_fuse:
        configs += [(True, True), (True, False)]
    configs += [(False, True), (False, False)]

    last_err = None
    for idx in range(_CFG_CACHE.get(bool(allow_fuse), 0), len(configs)):
        fused, single_buf = configs[idx]
        try:
            out = run(fused, single_buf)
            _CFG_CACHE[bool(allow_fuse)] = idx
            return out
        except Exception as err:                 # lowering/compile failure
            last_err = err
    raise last_err


def convx_forward(x_nchw, weight_oihw, gamma, beta, running_mean, running_var,
                  stride=1, dilation=1, eps=1e-5, block_rows=512,
                  compute_dtype=jnp.bfloat16, fuse_taps=None):
    """ConvX forward: relu(bn(conv(x))), bias-free conv, eval-mode BN. NCHW in/out."""
    N, Cin, H, W = x_nchw.shape
    Cout, _, KH, KW = weight_oihw.shape
    s, d = int(stride), int(dilation)
    # PyTorch ConvX: padding=dilation only when dilation > 1, else padding=0.
    pad = d if d > 1 else 0
    out_dtype = x_nchw.dtype
    K = KH * KW

    # ---- fold eval-mode BatchNorm into an f32 scale / shift epilogue ------------
    inv_std = 1.0 / jnp.sqrt(running_var.astype(jnp.float32) + eps)
    scale = gamma.astype(jnp.float32) * inv_std
    shift = beta.astype(jnp.float32) - running_mean.astype(jnp.float32) * scale

    Coutp = _round_up(Cout, 128)                         # lane-dense output stores
    scale_p = jnp.pad(scale, (0, Coutp - Cout)).reshape(1, Coutp)
    shift_p = jnp.pad(shift, (0, Coutp - Cout)).reshape(1, Coutp)

    # Weights in tap-major (K, Cin, Coutp) layout, plain compute dtype (the BN scale
    # stays in the f32 epilogue -> no bf16 rounding of scaled weights).
    w_taps = jnp.transpose(weight_oihw, (2, 3, 1, 0)).reshape(K, Cin, Cout)
    w_taps = jnp.pad(w_taps, ((0, 0), (0, 0), (0, Coutp - Cout))).astype(compute_dtype)

    x = jnp.transpose(x_nchw, (0, 2, 3, 1))              # NHWC
    if pad:
        x = jnp.pad(x, ((0, 0), (pad, pad), (pad, pad), (0, 0)))
    x = x.astype(compute_dtype)                          # halve wrapper HBM traffic
    Hp, Wp = H + 2 * pad, W + 2 * pad
    Hout = (Hp - d * (KH - 1) - 1) // s + 1
    Wout = (Wp - d * (KW - 1) - 1) // s + 1
    flops = 2 * N * Hout * Wout * K * Cin * Cout

    if fuse_taps is None:
        # Fuse when the per-tap contraction (Cin) under-fills the MXU depth.
        fuse_taps = Cin < 256

    if s == 1:
        # ---- halo-band layout ----------------------------------------------------
        # Flatten (H, W) -> rows; tap (kh, kw) is a static shift of
        # kh*d*Wp_pad + kw*d flat rows.  Compute a "wide" output over the padded
        # width and slice the valid Wout columns afterwards.
        itemsize = jnp.dtype(compute_dtype).itemsize
        row_align = 16 if itemsize < 4 else 8
        Wp_pad = _round_up(Wp, row_align)                # sublane-aligned row shifts
        if Wp_pad > Wp:
            x = jnp.pad(x, ((0, 0), (0, 0), (0, Wp_pad - Wp), (0, 0)))
        Pw = Hout * Wp_pad                               # wide output rows / image
        max_off = (KH - 1) * d * Wp_pad + (KW - 1) * d
        offsets = [kh * d * Wp_pad + kw * d for kh in range(KH) for kw in range(KW)]

        # Tile = whole number of image rows: the duplicated halo is ~2 rows, so
        # >= ~8 rows keeps the duplication small; cap by VMEM budget and keep
        # enough grid steps for both v7x TensorCores.
        vmem_budget = max(24 * 2**20, _vmem_capacity_bytes() // 2)
        per_row = (2 * Wp_pad * max(Cin, 128) * itemsize            # x double-buffered
                   + Wp_pad * max(K * Cin, 128) * itemsize          # fused lhs
                   + 2 * Wp_pad * Coutp * jnp.dtype(out_dtype).itemsize
                   + Wp_pad * Coutp * 4)                            # f32 accumulator
        fixed = K * Cin * Coutp * itemsize + 4 * Coutp * 4
        rows_vmem = max(1, (vmem_budget - fixed) // per_row)
        rows_cap = max(1, block_rows // Wp_pad)
        tp_rows = int(max(1, min(rows_cap, rows_vmem, Hout)))
        while tp_rows > 8 and N * _cdiv(Hout, tp_rows) < 8:         # v7x: 2 TCs
            tp_rows = max(8, tp_rows // 2)
        while tp_rows > 1 and N * _cdiv(Hout, tp_rows) < 2:
            tp_rows = max(1, tp_rows // 2)
        tp = tp_rows * Wp_pad
        n_tiles = _cdiv(Pw, tp)
        r_in = _round_up(tp + max_off, row_align)

        x_flat = x.reshape(N, Hp * Wp_pad, Cin)
        need = (n_tiles - 1) * tp + r_in
        if need > Hp * Wp_pad:
            x_flat = jnp.pad(x_flat, ((0, 0), (0, need - Hp * Wp_pad), (0, 0)))
        # Bounded halo duplication: r_in/tp <= 1 + ~(2 rows)/tp_rows.
        row_idx = (np.arange(n_tiles, dtype=np.int32)[:, None] * tp
                   + np.arange(r_in, dtype=np.int32)[None, :])
        bands = jnp.take(x_flat, jnp.asarray(row_idx), axis=1)      # (N,n_tiles,r_in,C)
        x_blocks = bands.reshape(N * n_tiles, r_in, Cin).astype(compute_dtype)

        out = _launch(x_blocks, w_taps, scale_p, shift_p, offsets, tp,
                      out_dtype, flops, allow_fuse=fuse_taps)
        out = out.reshape(N, n_tiles * tp, Coutp)[:, :Pw, :]
        out = out.reshape(N, Hout, Wp_pad, Coutp)[:, :, :Wout, :Cout]
    else:
        # ---- general stride: wrapper im2col (rows, K*Cin) -> one fused matmul ----
        # TODO(synk): avoid the HBM im2col round trip (conv_general_dilated_patches
        # or a stride-aware output gather) if stride>1 layers dominate.
        P = Hout * Wout
        tp = min(_round_up(block_rows, 8), _round_up(P, 8))
        while tp > 8 and N * _cdiv(P, tp) < 8:                       # v7x: 2 TCs
            tp = max(8, _round_up(tp // 2, 8))
        n_tiles = _cdiv(P, tp)
        cols = []
        for kh in range(KH):
            for kw in range(KW):
                h0, w0 = kh * d, kw * d
                patch = x[:, h0:h0 + (Hout - 1) * s + 1:s,
                             w0:w0 + (Wout - 1) * s + 1:s, :]
                cols.append(patch.reshape(N, P, Cin))
        patches = jnp.concatenate(cols, axis=-1)                     # (N, P, K*Cin)
        if n_tiles * tp > P:
            patches = jnp.pad(patches, ((0, 0), (0, n_tiles * tp - P), (0, 0)))
        x_blocks = patches.reshape(N * n_tiles, tp, K * Cin).astype(compute_dtype)
        w_flat = w_taps.reshape(1, K * Cin, Coutp)

        out = _launch(x_blocks, w_flat, scale_p, shift_p, [0], tp,
                      out_dtype, flops, allow_fuse=True)
        out = out.reshape(N, n_tiles * tp, Coutp)[:, :P, :]
        out = out.reshape(N, Hout, Wout, Coutp)[:, :, :, :Cout]

    return jnp.transpose(out, (0, 3, 1, 2))                          # back to NCHW


def _reference(x, w, gamma, beta, mean, var, stride, dilation, eps=1e-5):
    pad = dilation if dilation > 1 else 0
    conv = jax.lax.conv_general_dilated(
        x, w, window_strides=(stride, stride),
        padding=[(pad, pad), (pad, pad)],
        rhs_dilation=(dilation, dilation),
        dimension_numbers=("NCHW", "OIHW", "NCHW"))
    scale = gamma / jnp.sqrt(var + eps)
    shift = beta - mean * scale
    y = conv * scale[None, :, None, None] + shift[None, :, None, None]
    return jnp.maximum(y, 0.0)


if __name__ == "__main__":
    # ConvX(in_planes=4, out_planes=8, kernel=3)
    N, Cin, H, W = 2, 4, 16, 16
    Cout, KH, KW = 8, 3, 3

    key = jax.random.PRNGKey(0)
    kx, kw_ = jax.random.split(key)
    x = jax.random.normal(kx, (N, Cin, H, W), dtype=jnp.float32)
    weight = jax.random.normal(kw_, (Cout, Cin, KH, KW), dtype=jnp.float32) * 0.1

    gamma = 1.0 + 0.1 * jnp.arange(Cout, dtype=jnp.float32)
    beta = 0.01 * jnp.arange(Cout, dtype=jnp.float32)
    running_mean = 0.05 * jnp.arange(Cout, dtype=jnp.float32)
    running_var = 1.0 + 0.02 * jnp.arange(Cout, dtype=jnp.float32)

    ref = _reference(x, weight, gamma, beta, running_mean, running_var, 1, 1)

    # 1) strict f32-operand check (exact module semantics, stride=1 band path).
    out_f32 = convx_forward(x, weight, gamma, beta, running_mean, running_var,
                            stride=1, dilation=1, compute_dtype=jnp.float32)
    out_f32 = jax.block_until_ready(out_f32)
    assert out_f32.shape == (N, Cout, H - 2, W - 2)
    np.testing.assert_allclose(np.asarray(out_f32), np.asarray(ref),
                               rtol=1e-4, atol=1e-4)

    # 2) default bf16 MXU-operand path; looser tolerance for bf16 rounding.
    out_bf16 = convx_forward(x, weight, gamma, beta, running_mean, running_var,
                             stride=1, dilation=1)
    out_bf16 = jax.block_until_ready(out_bf16)
    np.testing.assert_allclose(np.asarray(out_bf16), np.asarray(ref),
                               rtol=5e-2, atol=5e-2)

    # 3) dilation=2 branch (ConvX uses padding=dilation) — band path with padding.
    out_d2 = convx_forward(x, weight, gamma, beta, running_mean, running_var,
                           stride=1, dilation=2, compute_dtype=jnp.float32)
    out_d2 = jax.block_until_ready(out_d2)
    ref_d2 = _reference(x, weight, gamma, beta, running_mean, running_var, 1, 2)
    np.testing.assert_allclose(np.asarray(out_d2), np.asarray(ref_d2),
                               rtol=1e-4, atol=1e-4)

    # 4) stride=2 branch — im2col single-fused-matmul path.
    out_s2 = convx_forward(x, weight, gamma, beta, running_mean, running_var,
                           stride=2, dilation=1, compute_dtype=jnp.float32)
    out_s2 = jax.block_until_ready(out_s2)
    ref_s2 = _reference(x, weight, gamma, beta, running_mean, running_var, 2, 1)
    np.testing.assert_allclose(np.asarray(out_s2), np.asarray(ref_s2),
                               rtol=1e-4, atol=1e-4)

    print("KERNEL_OK")
</pallas_src>

<mosaic_0001>
module attributes {stable_mosaic.version = 11 : i64} {
  func.func @_convx_kernel(%arg0: i32, %arg1: memref<1x168x4xf32, #tpu.memory_space<vmem>>, %arg2: memref<1x36x128xf32, #tpu.memory_space<vmem>>, %arg3: memref<1x128xf32, #tpu.memory_space<vmem>>, %arg4: memref<1x128xf32, #tpu.memory_space<vmem>>, %arg5: memref<1x128x128xf32, #tpu.memory_space<vmem>>) attributes {dimension_semantics = [#tpu.dimension_semantics<parallel>], iteration_bounds = array<i64: 4>, scalar_prefetch = 0 : i64, scratch_operands = 0 : i64, tpu.core_type = #tpu.core_type<tc>, window_params = [{transform_indices = @transform_0, window_bounds = array<i64: 1, 168, 4>}, {pipeline_mode = #tpu.pipeline_mode<synchronous>, transform_indices = @transform_1, window_bounds = array<i64: 1, 36, 128>}, {pipeline_mode = #tpu.pipeline_mode<synchronous>, transform_indices = @transform_2, window_bounds = array<i64: 1, 128>}, {pipeline_mode = #tpu.pipeline_mode<synchronous>, transform_indices = @transform_3, window_bounds = array<i64: 1, 128>}, {transform_indices = @transform_4, window_bounds = array<i64: 1, 128, 128>}]} {
    %c0 = arith.constant 0 : index
    %c0_0 = arith.constant 0 : index
    %c0_1 = arith.constant 0 : index
    %0 = vector.load %arg1[%c0, %c0_0, %c0_1] : memref<1x168x4xf32, #tpu.memory_space<vmem>>, vector<1x128x4xf32>
    %1 = vector.shape_cast %0 : vector<1x128x4xf32> to vector<128x4xf32>
    %c0_2 = arith.constant 0 : index
    %c1 = arith.constant 1 : index
    %c0_3 = arith.constant 0 : index
    %2 = vector.load %arg1[%c0_2, %c1, %c0_3] : memref<1x168x4xf32, #tpu.memory_space<vmem>>, vector<1x128x4xf32>
    %3 = vector.shape_cast %2 : vector<1x128x4xf32> to vector<128x4xf32>
    %c0_4 = arith.constant 0 : index
    %c2 = arith.constant 2 : index
    %c0_5 = arith.constant 0 : index
    %4 = vector.load %arg1[%c0_4, %c2, %c0_5] : memref<1x168x4xf32, #tpu.memory_space<vmem>>, vector<1x128x4xf32>
    %5 = vector.shape_cast %4 : vector<1x128x4xf32> to vector<128x4xf32>
    %c0_6 = arith.constant 0 : index
    %c16 = arith.constant 16 : index
    %c0_7 = arith.constant 0 : index
    %6 = vector.load %arg1[%c0_6, %c16, %c0_7] : memref<1x168x4xf32, #tpu.memory_space<vmem>>, vector<1x128x4xf32>
    %7 = vector.shape_cast %6 : vector<1x128x4xf32> to vector<128x4xf32>
    %c0_8 = arith.constant 0 : index
    %c17 = arith.constant 17 : index
    %c0_9 = arith.constant 0 : index
    %8 = vector.load %arg1[%c0_8, %c17, %c0_9] : memref<1x168x4xf32, #tpu.memory_space<vmem>>, vector<1x128x4xf32>
    %9 = vector.shape_cast %8 : vector<1x128x4xf32> to vector<128x4xf32>
    %c0_10 = arith.constant 0 : index
    %c18 = arith.constant 18 : index
    %c0_11 = arith.constant 0 : index
    %10 = vector.load %arg1[%c0_10, %c18, %c0_11] : memref<1x168x4xf32, #tpu.memory_space<vmem>>, vector<1x128x4xf32>
    %11 = vector.shape_cast %10 : vector<1x128x4xf32> to vector<128x4xf32>
    %c0_12 = arith.constant 0 : index
    %c32 = arith.constant 32 : index
    %c0_13 = arith.constant 0 : index
    %12 = vector.load %arg1[%c0_12, %c32, %c0_13] : memref<1x168x4xf32, #tpu.memory_space<vmem>>, vector<1x128x4xf32>
    %13 = vector.shape_cast %12 : vector<1x128x4xf32> to vector<128x4xf32>
    %c0_14 = arith.constant 0 : index
    %c33 = arith.constant 33 : index
    %c0_15 = arith.constant 0 : index
    %14 = vector.load %arg1[%c0_14, %c33, %c0_15] : memref<1x168x4xf32, #tpu.memory_space<vmem>>, vector<1x128x4xf32>
    %15 = vector.shape_cast %14 : vector<1x128x4xf32> to vector<128x4xf32>
    %c0_16 = arith.constant 0 : index
    %c34 = arith.constant 34 : index
    %c0_17 = arith.constant 0 : index
    %16 = vector.load %arg1[%c0_16, %c34, %c0_17] : memref<1x168x4xf32, #tpu.memory_space<vmem>>, vector<1x128x4xf32>
    %17 = vector.shape_cast %16 : vector<1x128x4xf32> to vector<128x4xf32>
    %18 = tpu.concatenate %1, %3, %5, %7, %9, %11, %13, %15, %17 in 1 : vector<128x4xf32>, vector<128x4xf32>, vector<128x4xf32>, vector<128x4xf32>, vector<128x4xf32>, vector<128x4xf32>, vector<128x4xf32>, vector<128x4xf32>, vector<128x4xf32> -> vector<128x36xf32>
    %c0_18 = arith.constant 0 : index
    %c0_19 = arith.constant 0 : index
    %c0_20 = arith.constant 0 : index
    %19 = vector.load %arg2[%c0_18, %c0_19, %c0_20] : memref<1x36x128xf32, #tpu.memory_space<vmem>>, vector<1x36x128xf32>
    %20 = vector.shape_cast %19 : vector<1x36x128xf32> to vector<36x128xf32>
    %cst = arith.constant dense<0.000000e+00> : vector<128x128xf32>
    %21 = tpu.matmul %18, %20, %cst {dimension_numbers = #tpu.dot_dimension_numbers<[1], [0], [0], [1], [0, 0, 1, 1], [], []>} : vector<128x36xf32>, vector<36x128xf32>, vector<128x128xf32> -> vector<128x128xf32>
    %c0_21 = arith.constant 0 : index
    %c0_22 = arith.constant 0 : index
    %22 = vector.load %arg3[%c0_21, %c0_22] : memref<1x128xf32, #tpu.memory_space<vmem>>, vector<1x128xf32>
    %23 = vector.broadcast %22 : vector<1x128xf32> to vector<128x128xf32>
    %24 = arith.mulf %21, %23 : vector<128x128xf32>
    %c0_23 = arith.constant 0 : index
    %c0_24 = arith.constant 0 : index
    %25 = vector.load %arg4[%c0_23, %c0_24] : memref<1x128xf32, #tpu.memory_space<vmem>>, vector<1x128xf32>
    %26 = vector.broadcast %25 : vector<1x128xf32> to vector<128x128xf32>
    %27 = arith.addf %24, %26 : vector<128x128xf32>
    %cst_25 = arith.constant 0.000000e+00 : f32
    %28 = vector.broadcast %cst_25 : f32 to vector<128x128xf32>
    %29 = arith.maximumf %27, %28 : vector<128x128xf32>
    %c0_26 = arith.constant 0 : index
    %c0_27 = arith.constant 0 : index
    %c0_28 = arith.constant 0 : index
    %30 = vector.load %arg5[%c0_26, %c0_27, %c0_28] : memref<1x128x128xf32, #tpu.memory_space<vmem>>, vector<1x128x128xf32>
    %31 = vector.shape_cast %30 : vector<1x128x128xf32> to vector<128x128xf32>
    %32 = vector.shape_cast %29 : vector<128x128xf32> to vector<1x128x128xf32>
    tpu.vector_store %arg5[%c0_26, %c0_27, %c0_28], %32 {strides = array<i32>} : memref<1x128x128xf32, #tpu.memory_space<vmem>>, vector<1x128x128xf32>,
    return
  }
  func.func @transform_0(%arg0: i32) -> (i32, i32, i32) {
    %c0_i32 = arith.constant 0 : i32
    %c0_i32_0 = arith.constant 0 : i32
    %c0_i32_1 = arith.constant 0 : i32
    return %arg0, %c0_i32, %c0_i32_0 : i32, i32, i32
  }
  func.func @transform_1(%arg0: i32) -> (i32, i32, i32) {
    %c0_i32 = arith.constant 0 : i32
    %c0_i32_0 = arith.constant 0 : i32
    %c0_i32_1 = arith.constant 0 : i32
    %c0_i32_2 = arith.constant 0 : i32
    return %c0_i32, %c0_i32_0, %c0_i32_1 : i32, i32, i32
  }
  func.func @transform_2(%arg0: i32) -> (i32, i32) {
    %c0_i32 = arith.constant 0 : i32
    %c0_i32_0 = arith.constant 0 : i32
    %c0_i32_1 = arith.constant 0 : i32
    return %c0_i32, %c0_i32_0 : i32, i32
  }
  func.func @transform_3(%arg0: i32) -> (i32, i32) {
    %c0_i32 = arith.constant 0 : i32
    %c0_i32_0 = arith.constant 0 : i32
    %c0_i32_1 = arith.constant 0 : i32
    return %c0_i32, %c0_i32_0 : i32, i32
  }
  func.func @transform_4(%arg0: i32) -> (i32, i32, i32) {
    %c0_i32 = arith.constant 0 : i32
    %c0_i32_0 = arith.constant 0 : i32
    %c0_i32_1 = arith.constant 0 : i32
    return %arg0, %c0_i32, %c0_i32_0 : i32, i32, i32
  }
}

module attributes {stable_mosaic.version = 11 : i64} {
  func.func @_convx_kernel(%arg0: i32, %arg1: memref<1x168x4xf32, #tpu.memory_space<vmem>>, %arg2: memref<1x36x128xf32, #tpu.memory_space<vmem>>, %arg3: memref<1x128xf32, #tpu.memory_space<vmem>>, %arg4: memref<1x128xf32, #tpu.memory_space<vmem>>, %arg5: memref<1x128x128xf32, #tpu.memory_space<vmem>>) attributes {dimension_semantics = [#tpu.dimension_semantics<parallel>], iteration_bounds = array<i64: 4>, scalar_prefetch = 0 : i64, scratch_operands = 0 : i64, tpu.core_type = #tpu.core_type<tc>, window_params = [{transform_indices = @transform_0, window_bounds = array<i64: 1, 168, 4>}, {pipeline_mode = #tpu.pipeline_mode<synchronous>, transform_indices = @transform_1, window_bounds = array<i64: 1, 36, 128>}, {pipeline_mode = #tpu.pipeline_mode<synchronous>, transform_indices = @transform_2, window_bounds = array<i64: 1, 128>}, {pipeline_mode = #tpu.pipeline_mode<synchronous>, transform_indices = @transform_3, window_bounds = array<i64: 1, 128>}, {transform_indices = @transform_4, window_bounds = array<i64: 1, 128, 128>}]} {
    %c0 = arith.constant 0 : index
    %c0_0 = arith.constant 0 : index
    %c0_1 = arith.constant 0 : index
    %0 = vector.load %arg1[%c0, %c0_0, %c0_1] : memref<1x168x4xf32, #tpu.memory_space<vmem>>, vector<1x128x4xf32>
    %1 = vector.shape_cast %0 : vector<1x128x4xf32> to vector<128x4xf32>
    %c0_2 = arith.constant 0 : index
    %c1 = arith.constant 1 : index
    %c0_3 = arith.constant 0 : index
    %2 = vector.load %arg1[%c0_2, %c1, %c0_3] : memref<1x168x4xf32, #tpu.memory_space<vmem>>, vector<1x128x4xf32>
    %3 = vector.shape_cast %2 : vector<1x128x4xf32> to vector<128x4xf32>
    %c0_4 = arith.constant 0 : index
    %c2 = arith.constant 2 : index
    %c0_5 = arith.constant 0 : index
    %4 = vector.load %arg1[%c0_4, %c2, %c0_5] : memref<1x168x4xf32, #tpu.memory_space<vmem>>, vector<1x128x4xf32>
    %5 = vector.shape_cast %4 : vector<1x128x4xf32> to vector<128x4xf32>
    %c0_6 = arith.constant 0 : index
    %c16 = arith.constant 16 : index
    %c0_7 = arith.constant 0 : index
    %6 = vector.load %arg1[%c0_6, %c16, %c0_7] : memref<1x168x4xf32, #tpu.memory_space<vmem>>, vector<1x128x4xf32>
    %7 = vector.shape_cast %6 : vector<1x128x4xf32> to vector<128x4xf32>
    %c0_8 = arith.constant 0 : index
    %c17 = arith.constant 17 : index
    %c0_9 = arith.constant 0 : index
    %8 = vector.load %arg1[%c0_8, %c17, %c0_9] : memref<1x168x4xf32, #tpu.memory_space<vmem>>, vector<1x128x4xf32>
    %9 = vector.shape_cast %8 : vector<1x128x4xf32> to vector<128x4xf32>
    %c0_10 = arith.constant 0 : index
    %c18 = arith.constant 18 : index
    %c0_11 = arith.constant 0 : index
    %10 = vector.load %arg1[%c0_10, %c18, %c0_11] : memref<1x168x4xf32, #tpu.memory_space<vmem>>, vector<1x128x4xf32>
    %11 = vector.shape_cast %10 : vector<1x128x4xf32> to vector<128x4xf32>
    %c0_12 = arith.constant 0 : index
    %c32 = arith.constant 32 : index
    %c0_13 = arith.constant 0 : index
    %12 = vector.load %arg1[%c0_12, %c32, %c0_13] : memref<1x168x4xf32, #tpu.memory_space<vmem>>, vector<1x128x4xf32>
    %13 = vector.shape_cast %12 : vector<1x128x4xf32> to vector<128x4xf32>
    %c0_14 = arith.constant 0 : index
    %c33 = arith.constant 33 : index
    %c0_15 = arith.constant 0 : index
    %14 = vector.load %arg1[%c0_14, %c33, %c0_15] : memref<1x168x4xf32, #tpu.memory_space<vmem>>, vector<1x128x4xf32>
    %15 = vector.shape_cast %14 : vector<1x128x4xf32> to vector<128x4xf32>
    %c0_16 = arith.constant 0 : index
    %c34 = arith.constant 34 : index
    %c0_17 = arith.constant 0 : index
    %16 = vector.load %arg1[%c0_16, %c34, %c0_17] : memref<1x168x4xf32, #tpu.memory_space<vmem>>, vector<1x128x4xf32>
    %17 = vector.shape_cast %16 : vector<1x128x4xf32> to vector<128x4xf32>
    %18 = tpu.concatenate %1, %3, %5, %7, %9, %11, %13, %15, %17 in 1 : vector<128x4xf32>, vector<128x4xf32>, vector<128x4xf32>, vector<128x4xf32>, vector<128x4xf32>, vector<128x4xf32>, vector<128x4xf32>, vector<128x4xf32>, vector<128x4xf32> -> vector<128x36xf32>
    %c0_18 = arith.constant 0 : index
    %c0_19 = arith.constant 0 : index
    %c0_20 = arith.constant 0 : index
    %19 = vector.load %arg2[%c0_18, %c0_19, %c0_20] : memref<1x36x128xf32, #tpu.memory_space<vmem>>, vector<1x36x128xf32>
    %20 = vector.shape_cast %19 : vector<1x36x128xf32> to vector<36x128xf32>
    %cst = arith.constant dense<0.000000e+00> : vector<128x128xf32>
    %21 = tpu.matmul %18, %20, %cst {dimension_numbers = #tpu.dot_dimension_numbers<[1], [0], [0], [1], [0, 0, 1, 1], [], []>} : vector<128x36xf32>, vector<36x128xf32>, vector<128x128xf32> -> vector<128x128xf32>
    %c0_21 = arith.constant 0 : index
    %c0_22 = arith.constant 0 : index
    %22 = vector.load %arg3[%c0_21, %c0_22] : memref<1x128xf32, #tpu.memory_space<vmem>>, vector<1x128xf32>
    %23 = vector.broadcast %22 : vector<1x128xf32> to vector<128x128xf32>
    %24 = arith.mulf %21, %23 : vector<128x128xf32>
    %c0_23 = arith.constant 0 : index
    %c0_24 = arith.constant 0 : index
    %25 = vector.load %arg4[%c0_23, %c0_24] : memref<1x128xf32, #tpu.memory_space<vmem>>, vector<1x128xf32>
    %26 = vector.broadcast %25 : vector<1x128xf32> to vector<128x128xf32>
    %27 = arith.addf %24, %26 : vector<128x128xf32>
    %cst_25 = arith.constant 0.000000e+00 : f32
    %28 = vector.broadcast %cst_25 : f32 to vector<128x128xf32>
    %29 = arith.maximumf %27, %28 : vector<128x128xf32>
    %c0_26 = arith.constant 0 : index
    %c0_27 = arith.constant 0 : index
    %c0_28 = arith.constant 0 : index
    %30 = vector.load %arg5[%c0_26, %c0_27, %c0_28] : memref<1x128x128xf32, #tpu.memory_space<vmem>>, vector<1x128x128xf32>
    %31 = vector.shape_cast %30 : vector<1x128x128xf32> to vector<128x128xf32>
    %32 = vector.shape_cast %29 : vector<128x128xf32> to vector<1x128x128xf32>
    tpu.vector_store %arg5[%c0_26, %c0_27, %c0_28], %32 {strides = array<i32>} : memref<1x128x128xf32, #tpu.memory_space<vmem>>, vector<1x128x128xf32>,
    return
  }
  func.func @transform_0(%arg0: i32) -> (i32, i32, i32) {
    %c0_i32 = arith.constant 0 : i32
    %c0_i32_0 = arith.constant 0 : i32
    %c0_i32_1 = arith.constant 0 : i32
    return %arg0, %c0_i32, %c0_i32_0 : i32, i32, i32
  }
  func.func @transform_1(%arg0: i32) -> (i32, i32, i32) {
    %c0_i32 = arith.constant 0 : i32
    %c0_i32_0 = arith.constant 0 : i32
    %c0_i32_1 = arith.constant 0 : i32
    %c0_i32_2 = arith.constant 0 : i32
    return %c0_i32, %c0_i32_0, %c0_i32_1 : i32, i32, i32
  }
  func.func @transform_2(%arg0: i32) -> (i32, i32) {
    %c0_i32 = arith.constant 0 : i32
    %c0_i32_0 = arith.constant 0 : i32
    %c0_i32_1 = arith.constant 0 : i32
    return %c0_i32, %c0_i32_0 : i32, i32
  }
  func.func @transform_3(%arg0: i32) -> (i32, i32) {
    %c0_i32 = arith.constant 0 : i32
    %c0_i32_0 = arith.constant 0 : i32
    %c0_i32_1 = arith.constant 0 : i32
    return %c0_i32, %c0_i32_0 : i32, i32
  }
  func.func @transform_4(%arg0: i32) -> (i32, i32, i32) {
    %c0_i32 = arith.constant 0 : i32
    %c0_i32_0 = arith.constant 0 : i32
    %c0_i32_1 = arith.constant 0 : i32
    return %arg0, %c0_i32, %c0_i32_0 : i32, i32, i32
  }
}

module attributes {stable_mosaic.version = 11 : i64} {
  func.func @_convx_kernel(%arg0: i32, %arg1: memref<1x168x4xf32, #tpu.memory_space<vmem>>, %arg2: memref<9x4x128xf32, #tpu.memory_space<vmem>>, %arg3: memref<1x128xf32, #tpu.memory_space<vmem>>, %arg4: memref<1x128xf32, #tpu.memory_space<vmem>>, %arg5: memref<1x128x128xf32, #tpu.memory_space<vmem>>) attributes {dimension_semantics = [#tpu.dimension_semantics<parallel>], iteration_bounds = array<i64: 4>, scalar_prefetch = 0 : i64, scratch_operands = 0 : i64, tpu.core_type = #tpu.core_type<tc>, window_params = [{transform_indices = @transform_0, window_bounds = array<i64: 1, 168, 4>}, {pipeline_mode = #tpu.pipeline_mode<synchronous>, transform_indices = @transform_1, window_bounds = array<i64: 9, 4, 128>}, {pipeline_mode = #tpu.pipeline_mode<synchronous>, transform_indices = @transform_2, window_bounds = array<i64: 1, 128>}, {pipeline_mode = #tpu.pipeline_mode<synchronous>, transform_indices = @transform_3, window_bounds = array<i64: 1, 128>}, {transform_indices = @transform_4, window_bounds = array<i64: 1, 128, 128>}]} {
    %cst = arith.constant 0.000000e+00 : f32
    %0 = vector.broadcast %cst : f32 to vector<128x128xf32>
    %c0 = arith.constant 0 : index
    %c0_0 = arith.constant 0 : index
    %c0_1 = arith.constant 0 : index
    %1 = vector.load %arg1[%c0, %c0_0, %c0_1] : memref<1x168x4xf32, #tpu.memory_space<vmem>>, vector<1x128x4xf32>
    %2 = vector.shape_cast %1 : vector<1x128x4xf32> to vector<128x4xf32>
    %c0_2 = arith.constant 0 : index
    %c0_3 = arith.constant 0 : index
    %c0_4 = arith.constant 0 : index
    %3 = vector.load %arg2[%c0_2, %c0_3, %c0_4] : memref<9x4x128xf32, #tpu.memory_space<vmem>>, vector<1x4x128xf32>
    %4 = vector.shape_cast %3 : vector<1x4x128xf32> to vector<4x128xf32>
    %cst_5 = arith.constant dense<0.000000e+00> : vector<128x128xf32>
    %5 = tpu.matmul %2, %4, %cst_5 {dimension_numbers = #tpu.dot_dimension_numbers<[1], [0], [0], [1], [0, 0, 1, 1], [], []>} : vector<128x4xf32>, vector<4x128xf32>, vector<128x128xf32> -> vector<128x128xf32>
    %6 = arith.addf %0, %5 : vector<128x128xf32>
    %c0_6 = arith.constant 0 : index
    %c1 = arith.constant 1 : index
    %c0_7 = arith.constant 0 : index
    %7 = vector.load %arg1[%c0_6, %c1, %c0_7] : memref<1x168x4xf32, #tpu.memory_space<vmem>>, vector<1x128x4xf32>
    %8 = vector.shape_cast %7 : vector<1x128x4xf32> to vector<128x4xf32>
    %c1_8 = arith.constant 1 : index
    %c0_9 = arith.constant 0 : index
    %c0_10 = arith.constant 0 : index
    %9 = vector.load %arg2[%c1_8, %c0_9, %c0_10] : memref<9x4x128xf32, #tpu.memory_space<vmem>>, vector<1x4x128xf32>
    %10 = vector.shape_cast %9 : vector<1x4x128xf32> to vector<4x128xf32>
    %cst_11 = arith.constant dense<0.000000e+00> : vector<128x128xf32>
    %11 = tpu.matmul %8, %10, %cst_11 {dimension_numbers = #tpu.dot_dimension_numbers<[1], [0], [0], [1], [0, 0, 1, 1], [], []>} : vector<128x4xf32>, vector<4x128xf32>, vector<128x128xf32> -> vector<128x128xf32>
    %12 = arith.addf %6, %11 : vector<128x128xf32>
    %c0_12 = arith.constant 0 : index
    %c2 = arith.constant 2 : index
    %c0_13 = arith.constant 0 : index
    %13 = vector.load %arg1[%c0_12, %c2, %c0_13] : memref<1x168x4xf32, #tpu.memory_space<vmem>>, vector<1x128x4xf32>
    %14 = vector.shape_cast %13 : vector<1x128x4xf32> to vector<128x4xf32>
    %c2_14 = arith.constant 2 : index
    %c0_15 = arith.constant 0 : index
    %c0_16 = arith.constant 0 : index
    %15 = vector.load %arg2[%c2_14, %c0_15, %c0_16] : memref<9x4x128xf32, #tpu.memory_space<vmem>>, vector<1x4x128xf32>
    %16 = vector.shape_cast %15 : vector<1x4x128xf32> to vector<4x128xf32>
    %cst_17 = arith.constant dense<0.000000e+00> : vector<128x128xf32>
    %17 = tpu.matmul %14, %16, %cst_17 {dimension_numbers = #tpu.dot_dimension_numbers<[1], [0], [0], [1], [0, 0, 1, 1], [], []>} : vector<128x4xf32>, vector<4x128xf32>, vector<128x128xf32> -> vector<128x128xf32>
    %18 = arith.addf %12, %17 : vector<128x128xf32>
    %c0_18 = arith.constant 0 : index
    %c16 = arith.constant 16 : index
    %c0_19 = arith.constant 0 : index
    %19 = vector.load %arg1[%c0_18, %c16, %c0_19] : memref<1x168x4xf32, #tpu.memory_space<vmem>>, vector<1x128x4xf32>
    %20 = vector.shape_cast %19 : vector<1x128x4xf32> to vector<128x4xf32>
    %c3 = arith.constant 3 : index
    %c0_20 = arith.constant 0 : index
    %c0_21 = arith.constant 0 : index
    %21 = vector.load %arg2[%c3, %c0_20, %c0_21] : memref<9x4x128xf32, #tpu.memory_space<vmem>>, vector<1x4x128xf32>
    %22 = vector.shape_cast %21 : vector<1x4x128xf32> to vector<4x128xf32>
    %cst_22 = arith.constant dense<0.000000e+00> : vector<128x128xf32>
    %23 = tpu.matmul %20, %22, %cst_22 {dimension_numbers = #tpu.dot_dimension_numbers<[1], [0], [0], [1], [0, 0, 1, 1], [], []>} : vector<128x4xf32>, vector<4x128xf32>, vector<128x128xf32> -> vector<128x128xf32>
    %24 = arith.addf %18, %23 : vector<128x128xf32>
    %c0_23 = arith.constant 0 : index
    %c17 = arith.constant 17 : index
    %c0_24 = arith.constant 0 : index
    %25 = vector.load %arg1[%c0_23, %c17, %c0_24] : memref<1x168x4xf32, #tpu.memory_space<vmem>>, vector<1x128x4xf32>
    %26 = vector.shape_cast %25 : vector<1x128x4xf32> to vector<128x4xf32>
    %c4 = arith.constant 4 : index
    %c0_25 = arith.constant 0 : index
    %c0_26 = arith.constant 0 : index
    %27 = vector.load %arg2[%c4, %c0_25, %c0_26] : memref<9x4x128xf32, #tpu.memory_space<vmem>>, vector<1x4x128xf32>
    %28 = vector.shape_cast %27 : vector<1x4x128xf32> to vector<4x128xf32>
    %cst_27 = arith.constant dense<0.000000e+00> : vector<128x128xf32>
    %29 = tpu.matmul %26, %28, %cst_27 {dimension_numbers = #tpu.dot_dimension_numbers<[1], [0], [0], [1], [0, 0, 1, 1], [], []>} : vector<128x4xf32>, vector<4x128xf32>, vector<128x128xf32> -> vector<128x128xf32>
    %30 = arith.addf %24, %29 : vector<128x128xf32>
    %c0_28 = arith.constant 0 : index
    %c18 = arith.constant 18 : index
    %c0_29 = arith.constant 0 : index
    %31 = vector.load %arg1[%c0_28, %c18, %c0_29] : memref<1x168x4xf32, #tpu.memory_space<vmem>>, vector<1x128x4xf32>
    %32 = vector.shape_cast %31 : vector<1x128x4xf32> to vector<128x4xf32>
    %c5 = arith.constant 5 : index
    %c0_30 = arith.constant 0 : index
    %c0_31 = arith.constant 0 : index
    %33 = vector.load %arg2[%c5, %c0_30, %c0_31] : memref<9x4x128xf32, #tpu.memory_space<vmem>>, vector<1x4x128xf32>
    %34 = vector.shape_cast %33 : vector<1x4x128xf32> to vector<4x128xf32>
    %cst_32 = arith.constant dense<0.000000e+00> : vector<128x128xf32>
    %35 = tpu.matmul %32, %34, %cst_32 {dimension_numbers = #tpu.dot_dimension_numbers<[1], [0], [0], [1], [0, 0, 1, 1], [], []>} : vector<128x4xf32>, vector<4x128xf32>, vector<128x128xf32> -> vector<128x128xf32>
    %36 = arith.addf %30, %35 : vector<128x128xf32>
    %c0_33 = arith.constant 0 : index
    %c32 = arith.constant 32 : index
    %c0_34 = arith.constant 0 : index
    %37 = vector.load %arg1[%c0_33, %c32, %c0_34] : memref<1x168x4xf32, #tpu.memory_space<vmem>>, vector<1x128x4xf32>
    %38 = vector.shape_cast %37 : vector<1x128x4xf32> to vector<128x4xf32>
    %c6 = arith.constant 6 : index
    %c0_35 = arith.constant 0 : index
    %c0_36 = arith.constant 0 : index
    %39 = vector.load %arg2[%c6, %c0_35, %c0_36] : memref<9x4x128xf32, #tpu.memory_space<vmem>>, vector<1x4x128xf32>
    %40 = vector.shape_cast %39 : vector<1x4x128xf32> to vector<4x128xf32>
    %cst_37 = arith.constant dense<0.000000e+00> : vector<128x128xf32>
    %41 = tpu.matmul %38, %40, %cst_37 {dimension_numbers = #tpu.dot_dimension_numbers<[1], [0], [0], [1], [0, 0, 1, 1], [], []>} : vector<128x4xf32>, vector<4x128xf32>, vector<128x128xf32> -> vector<128x128xf32>
    %42 = arith.addf %36, %41 : vector<128x128xf32>
    %c0_38 = arith.constant 0 : index
    %c33 = arith.constant 33 : index
    %c0_39 = arith.constant 0 : index
    %43 = vector.load %arg1[%c0_38, %c33, %c0_39] : memref<1x168x4xf32, #tpu.memory_space<vmem>>, vector<1x128x4xf32>
    %44 = vector.shape_cast %43 : vector<1x128x4xf32> to vector<128x4xf32>
    %c7 = arith.constant 7 : index
    %c0_40 = arith.constant 0 : index
    %c0_41 = arith.constant 0 : index
    %45 = vector.load %arg2[%c7, %c0_40, %c0_41] : memref<9x4x128xf32, #tpu.memory_space<vmem>>, vector<1x4x128xf32>
    %46 = vector.shape_cast %45 : vector<1x4x128xf32> to vector<4x128xf32>
    %cst_42 = arith.constant dense<0.000000e+00> : vector<128x128xf32>
    %47 = tpu.matmul %44, %46, %cst_42 {dimension_numbers = #tpu.dot_dimension_numbers<[1], [0], [0], [1], [0, 0, 1, 1], [], []>} : vector<128x4xf32>, vector<4x128xf32>, vector<128x128xf32> -> vector<128x128xf32>
    %48 = arith.addf %42, %47 : vector<128x128xf32>
    %c0_43 = arith.constant 0 : index
    %c34 = arith.constant 34 : index
    %c0_44 = arith.constant 0 : index
    %49 = vector.load %arg1[%c0_43, %c34, %c0_44] : memref<1x168x4xf32, #tpu.memory_space<vmem>>, vector<1x128x4xf32>
    %50 = vector.shape_cast %49 : vector<1x128x4xf32> to vector<128x4xf32>
    %c8 = arith.constant 8 : index
    %c0_45 = arith.constant 0 : index
    %c0_46 = arith.constant 0 : index
    %51 = vector.load %arg2[%c8, %c0_45, %c0_46] : memref<9x4x128xf32, #tpu.memory_space<vmem>>, vector<1x4x128xf32>
    %52 = vector.shape_cast %51 : vector<1x4x128xf32> to vector<4x128xf32>
    %cst_47 = arith.constant dense<0.000000e+00> : vector<128x128xf32>
    %53 = tpu.matmul %50, %52, %cst_47 {dimension_numbers = #tpu.dot_dimension_numbers<[1], [0], [0], [1], [0, 0, 1, 1], [], []>} : vector<128x4xf32>, vector<4x128xf32>, vector<128x128xf32> -> vector<128x128xf32>
    %54 = arith.addf %48, %53 : vector<128x128xf32>
    %c0_48 = arith.constant 0 : index
    %c0_49 = arith.constant 0 : index
    %55 = vector.load %arg3[%c0_48, %c0_49] : memref<1x128xf32, #tpu.memory_space<vmem>>, vector<1x128xf32>
    %56 = vector.broadcast %55 : vector<1x128xf32> to vector<128x128xf32>
    %57 = arith.mulf %54, %56 : vector<128x128xf32>
    %c0_50 = arith.constant 0 : index
    %c0_51 = arith.constant 0 : index
    %58 = vector.load %arg4[%c0_50, %c0_51] : memref<1x128xf32, #tpu.memory_space<vmem>>, vector<1x128xf32>
    %59 = vector.broadcast %58 : vector<1x128xf32> to vector<128x128xf32>
    %60 = arith.addf %57, %59 : vector<128x128xf32>
    %cst_52 = arith.constant 0.000000e+00 : f32
    %61 = vector.broadcast %cst_52 : f32 to vector<128x128xf32>
    %62 = arith.maximumf %60, %61 : vector<128x128xf32>
    %c0_53 = arith.constant 0 : index
    %c0_54 = arith.constant 0 : index
    %c0_55 = arith.constant 0 : index
    %63 = vector.load %arg5[%c0_53, %c0_54, %c0_55] : memref<1x128x128xf32, #tpu.memory_space<vmem>>, vector<1x128x128xf32>
    %64 = vector.shape_cast %63 : vector<1x128x128xf32> to vector<128x128xf32>
    %65 = vector.shape_cast %62 : vector<128x128xf32> to vector<1x128x128xf32>
    tpu.vector_store %arg5[%c0_53, %c0_54, %c0_55], %65 {strides = array<i32>} : memref<1x128x128xf32, #tpu.memory_space<vmem>>, vector<1x128x128xf32>,
    return
  }
  func.func @transform_0(%arg0: i32) -> (i32, i32, i32) {
    %c0_i32 = arith.constant 0 : i32
    %c0_i32_0 = arith.constant 0 : i32
    %c0_i32_1 = arith.constant 0 : i32
    return %arg0, %c0_i32, %c0_i32_0 : i32, i32, i32
  }
  func.func @transform_1(%arg0: i32) -> (i32, i32, i32) {
    %c0_i32 = arith.constant 0 : i32
    %c0_i32_0 = arith.constant 0 : i32
    %c0_i32_1 = arith.constant 0 : i32
    %c0_i32_2 = arith.constant 0 : i32
    return %c0_i32, %c0_i32_0, %c0_i32_1 : i32, i32, i32
  }
  func.func @transform_2(%arg0: i32) -> (i32, i32) {
    %c0_i32 = arith.constant 0 : i32
    %c0_i32_0 = arith.constant 0 : i32
    %c0_i32_1 = arith.constant 0 : i32
    return %c0_i32, %c0_i32_0 : i32, i32
  }
  func.func @transform_3(%arg0: i32) -> (i32, i32) {
    %c0_i32 = arith.constant 0 : i32
    %c0_i32_0 = arith.constant 0 : i32
    %c0_i32_1 = arith.constant 0 : i32
    return %c0_i32, %c0_i32_0 : i32, i32
  }
  func.func @transform_4(%arg0: i32) -> (i32, i32, i32) {
    %c0_i32 = arith.constant 0 : i32
    %c0_i32_0 = arith.constant 0 : i32
    %c0_i32_1 = arith.constant 0 : i32
    return %arg0, %c0_i32, %c0_i32_0 : i32, i32, i32
  }
}

module attributes {stable_mosaic.version = 11 : i64} {
  func.func @_convx_kernel(%arg0: i32, %arg1: memref<1x168x4xf32, #tpu.memory_space<vmem>>, %arg2: memref<9x4x128xf32, #tpu.memory_space<vmem>>, %arg3: memref<1x128xf32, #tpu.memory_space<vmem>>, %arg4: memref<1x128xf32, #tpu.memory_space<vmem>>, %arg5: memref<1x128x128xf32, #tpu.memory_space<vmem>>) attributes {dimension_semantics = [#tpu.dimension_semantics<parallel>], iteration_bounds = array<i64: 4>, scalar_prefetch = 0 : i64, scratch_operands = 0 : i64, tpu.core_type = #tpu.core_type<tc>, window_params = [{transform_indices = @transform_0, window_bounds = array<i64: 1, 168, 4>}, {pipeline_mode = #tpu.pipeline_mode<synchronous>, transform_indices = @transform_1, window_bounds = array<i64: 9, 4, 128>}, {pipeline_mode = #tpu.pipeline_mode<synchronous>, transform_indices = @transform_2, window_bounds = array<i64: 1, 128>}, {pipeline_mode = #tpu.pipeline_mode<synchronous>, transform_indices = @transform_3, window_bounds = array<i64: 1, 128>}, {transform_indices = @transform_4, window_bounds = array<i64: 1, 128, 128>}]} {
    %cst = arith.constant 0.000000e+00 : f32
    %0 = vector.broadcast %cst : f32 to vector<128x128xf32>
    %c0 = arith.constant 0 : index
    %c0_0 = arith.constant 0 : index
    %c0_1 = arith.constant 0 : index
    %1 = vector.load %arg1[%c0, %c0_0, %c0_1] : memref<1x168x4xf32, #tpu.memory_space<vmem>>, vector<1x128x4xf32>
    %2 = vector.shape_cast %1 : vector<1x128x4xf32> to vector<128x4xf32>
    %c0_2 = arith.constant 0 : index
    %c0_3 = arith.constant 0 : index
    %c0_4 = arith.constant 0 : index
    %3 = vector.load %arg2[%c0_2, %c0_3, %c0_4] : memref<9x4x128xf32, #tpu.memory_space<vmem>>, vector<1x4x128xf32>
    %4 = vector.shape_cast %3 : vector<1x4x128xf32> to vector<4x128xf32>
    %cst_5 = arith.constant dense<0.000000e+00> : vector<128x128xf32>
    %5 = tpu.matmul %2, %4, %cst_5 {dimension_numbers = #tpu.dot_dimension_numbers<[1], [0], [0], [1], [0, 0, 1, 1], [], []>} : vector<128x4xf32>, vector<4x128xf32>, vector<128x128xf32> -> vector<128x128xf32>
    %6 = arith.addf %0, %5 : vector<128x128xf32>
    %c0_6 = arith.constant 0 : index
    %c1 = arith.constant 1 : index
    %c0_7 = arith.constant 0 : index
    %7 = vector.load %arg1[%c0_6, %c1, %c0_7] : memref<1x168x4xf32, #tpu.memory_space<vmem>>, vector<1x128x4xf32>
    %8 = vector.shape_cast %7 : vector<1x128x4xf32> to vector<128x4xf32>
    %c1_8 = arith.constant 1 : index
    %c0_9 = arith.constant 0 : index
    %c0_10 = arith.constant 0 : index
    %9 = vector.load %arg2[%c1_8, %c0_9, %c0_10] : memref<9x4x128xf32, #tpu.memory_space<vmem>>, vector<1x4x128xf32>
    %10 = vector.shape_cast %9 : vector<1x4x128xf32> to vector<4x128xf32>
    %cst_11 = arith.constant dense<0.000000e+00> : vector<128x128xf32>
    %11 = tpu.matmul %8, %10, %cst_11 {dimension_numbers = #tpu.dot_dimension_numbers<[1], [0], [0], [1], [0, 0, 1, 1], [], []>} : vector<128x4xf32>, vector<4x128xf32>, vector<128x128xf32> -> vector<128x128xf32>
    %12 = arith.addf %6, %11 : vector<128x128xf32>
    %c0_12 = arith.constant 0 : index
    %c2 = arith.constant 2 : index
    %c0_13 = arith.constant 0 : index
    %13 = vector.load %arg1[%c0_12, %c2, %c0_13] : memref<1x168x4xf32, #tpu.memory_space<vmem>>, vector<1x128x4xf32>
    %14 = vector.shape_cast %13 : vector<1x128x4xf32> to vector<128x4xf32>
    %c2_14 = arith.constant 2 : index
    %c0_15 = arith.constant 0 : index
    %c0_16 = arith.constant 0 : index
    %15 = vector.load %arg2[%c2_14, %c0_15, %c0_16] : memref<9x4x128xf32, #tpu.memory_space<vmem>>, vector<1x4x128xf32>
    %16 = vector.shape_cast %15 : vector<1x4x128xf32> to vector<4x128xf32>
    %cst_17 = arith.constant dense<0.000000e+00> : vector<128x128xf32>
    %17 = tpu.matmul %14, %16, %cst_17 {dimension_numbers = #tpu.dot_dimension_numbers<[1], [0], [0], [1], [0, 0, 1, 1], [], []>} : vector<128x4xf32>, vector<4x128xf32>, vector<128x128xf32> -> vector<128x128xf32>
    %18 = arith.addf %12, %17 : vector<128x128xf32>
    %c0_18 = arith.constant 0 : index
    %c16 = arith.constant 16 : index
    %c0_19 = arith.constant 0 : index
    %19 = vector.load %arg1[%c0_18, %c16, %c0_19] : memref<1x168x4xf32, #tpu.memory_space<vmem>>, vector<1x128x4xf32>
    %20 = vector.shape_cast %19 : vector<1x128x4xf32> to vector<128x4xf32>
    %c3 = arith.constant 3 : index
    %c0_20 = arith.constant 0 : index
    %c0_21 = arith.constant 0 : index
    %21 = vector.load %arg2[%c3, %c0_20, %c0_21] : memref<9x4x128xf32, #tpu.memory_space<vmem>>, vector<1x4x128xf32>
    %22 = vector.shape_cast %21 : vector<1x4x128xf32> to vector<4x128xf32>
    %cst_22 = arith.constant dense<0.000000e+00> : vector<128x128xf32>
    %23 = tpu.matmul %20, %22, %cst_22 {dimension_numbers = #tpu.dot_dimension_numbers<[1], [0], [0], [1], [0, 0, 1, 1], [], []>} : vector<128x4xf32>, vector<4x128xf32>, vector<128x128xf32> -> vector<128x128xf32>
    %24 = arith.addf %18, %23 : vector<128x128xf32>
    %c0_23 = arith.constant 0 : index
    %c17 = arith.constant 17 : index
    %c0_24 = arith.constant 0 : index
    %25 = vector.load %arg1[%c0_23, %c17, %c0_24] : memref<1x168x4xf32, #tpu.memory_space<vmem>>, vector<1x128x4xf32>
    %26 = vector.shape_cast %25 : vector<1x128x4xf32> to vector<128x4xf32>
    %c4 = arith.constant 4 : index
    %c0_25 = arith.constant 0 : index
    %c0_26 = arith.constant 0 : index
    %27 = vector.load %arg2[%c4, %c0_25, %c0_26] : memref<9x4x128xf32, #tpu.memory_space<vmem>>, vector<1x4x128xf32>
    %28 = vector.shape_cast %27 : vector<1x4x128xf32> to vector<4x128xf32>
    %cst_27 = arith.constant dense<0.000000e+00> : vector<128x128xf32>
    %29 = tpu.matmul %26, %28, %cst_27 {dimension_numbers = #tpu.dot_dimension_numbers<[1], [0], [0], [1], [0, 0, 1, 1], [], []>} : vector<128x4xf32>, vector<4x128xf32>, vector<128x128xf32> -> vector<128x128xf32>
    %30 = arith.addf %24, %29 : vector<128x128xf32>
    %c0_28 = arith.constant 0 : index
    %c18 = arith.constant 18 : index
    %c0_29 = arith.constant 0 : index
    %31 = vector.load %arg1[%c0_28, %c18, %c0_29] : memref<1x168x4xf32, #tpu.memory_space<vmem>>, vector<1x128x4xf32>
    %32 = vector.shape_cast %31 : vector<1x128x4xf32> to vector<128x4xf32>
    %c5 = arith.constant 5 : index
    %c0_30 = arith.constant 0 : index
    %c0_31 = arith.constant 0 : index
    %33 = vector.load %arg2[%c5, %c0_30, %c0_31] : memref<9x4x128xf32, #tpu.memory_space<vmem>>, vector<1x4x128xf32>
    %34 = vector.shape_cast %33 : vector<1x4x128xf32> to vector<4x128xf32>
    %cst_32 = arith.constant dense<0.000000e+00> : vector<128x128xf32>
    %35 = tpu.matmul %32, %34, %cst_32 {dimension_numbers = #tpu.dot_dimension_numbers<[1], [0], [0], [1], [0, 0, 1, 1], [], []>} : vector<128x4xf32>, vector<4x128xf32>, vector<128x128xf32> -> vector<128x128xf32>
    %36 = arith.addf %30, %35 : vector<128x128xf32>
    %c0_33 = arith.constant 0 : index
    %c32 = arith.constant 32 : index
    %c0_34 = arith.constant 0 : index
    %37 = vector.load %arg1[%c0_33, %c32, %c0_34] : memref<1x168x4xf32, #tpu.memory_space<vmem>>, vector<1x128x4xf32>
    %38 = vector.shape_cast %37 : vector<1x128x4xf32> to vector<128x4xf32>
    %c6 = arith.constant 6 : index
    %c0_35 = arith.constant 0 : index
    %c0_36 = arith.constant 0 : index
    %39 = vector.load %arg2[%c6, %c0_35, %c0_36] : memref<9x4x128xf32, #tpu.memory_space<vmem>>, vector<1x4x128xf32>
    %40 = vector.shape_cast %39 : vector<1x4x128xf32> to vector<4x128xf32>
    %cst_37 = arith.constant dense<0.000000e+00> : vector<128x128xf32>
    %41 = tpu.matmul %38, %40, %cst_37 {dimension_numbers = #tpu.dot_dimension_numbers<[1], [0], [0], [1], [0, 0, 1, 1], [], []>} : vector<128x4xf32>, vector<4x128xf32>, vector<128x128xf32> -> vector<128x128xf32>
    %42 = arith.addf %36, %41 : vector<128x128xf32>
    %c0_38 = arith.constant 0 : index
    %c33 = arith.constant 33 : index
    %c0_39 = arith.constant 0 : index
    %43 = vector.load %arg1[%c0_38, %c33, %c0_39] : memref<1x168x4xf32, #tpu.memory_space<vmem>>, vector<1x128x4xf32>
    %44 = vector.shape_cast %43 : vector<1x128x4xf32> to vector<128x4xf32>
    %c7 = arith.constant 7 : index
    %c0_40 = arith.constant 0 : index
    %c0_41 = arith.constant 0 : index
    %45 = vector.load %arg2[%c7, %c0_40, %c0_41] : memref<9x4x128xf32, #tpu.memory_space<vmem>>, vector<1x4x128xf32>
    %46 = vector.shape_cast %45 : vector<1x4x128xf32> to vector<4x128xf32>
    %cst_42 = arith.constant dense<0.000000e+00> : vector<128x128xf32>
    %47 = tpu.matmul %44, %46, %cst_42 {dimension_numbers = #tpu.dot_dimension_numbers<[1], [0], [0], [1], [0, 0, 1, 1], [], []>} : vector<128x4xf32>, vector<4x128xf32>, vector<128x128xf32> -> vector<128x128xf32>
    %48 = arith.addf %42, %47 : vector<128x128xf32>
    %c0_43 = arith.constant 0 : index
    %c34 = arith.constant 34 : index
    %c0_44 = arith.constant 0 : index
    %49 = vector.load %arg1[%c0_43, %c34, %c0_44] : memref<1x168x4xf32, #tpu.memory_space<vmem>>, vector<1x128x4xf32>
    %50 = vector.shape_cast %49 : vector<1x128x4xf32> to vector<128x4xf32>
    %c8 = arith.constant 8 : index
    %c0_45 = arith.constant 0 : index
    %c0_46 = arith.constant 0 : index
    %51 = vector.load %arg2[%c8, %c0_45, %c0_46] : memref<9x4x128xf32, #tpu.memory_space<vmem>>, vector<1x4x128xf32>
    %52 = vector.shape_cast %51 : vector<1x4x128xf32> to vector<4x128xf32>
    %cst_47 = arith.constant dense<0.000000e+00> : vector<128x128xf32>
    %53 = tpu.matmul %50, %52, %cst_47 {dimension_numbers = #tpu.dot_dimension_numbers<[1], [0], [0], [1], [0, 0, 1, 1], [], []>} : vector<128x4xf32>, vector<4x128xf32>, vector<128x128xf32> -> vector<128x128xf32>
    %54 = arith.addf %48, %53 : vector<128x128xf32>
    %c0_48 = arith.constant 0 : index
    %c0_49 = arith.constant 0 : index
    %55 = vector.load %arg3[%c0_48, %c0_49] : memref<1x128xf32, #tpu.memory_space<vmem>>, vector<1x128xf32>
    %56 = vector.broadcast %55 : vector<1x128xf32> to vector<128x128xf32>
    %57 = arith.mulf %54, %56 : vector<128x128xf32>
    %c0_50 = arith.constant 0 : index
    %c0_51 = arith.constant 0 : index
    %58 = vector.load %arg4[%c0_50, %c0_51] : memref<1x128xf32, #tpu.memory_space<vmem>>, vector<1x128xf32>
    %59 = vector.broadcast %58 : vector<1x128xf32> to vector<128x128xf32>
    %60 = arith.addf %57, %59 : vector<128x128xf32>
    %cst_52 = arith.constant 0.000000e+00 : f32
    %61 = vector.broadcast %cst_52 : f32 to vector<128x128xf32>
    %62 = arith.maximumf %60, %61 : vector<128x128xf32>
    %c0_53 = arith.constant 0 : index
    %c0_54 = arith.constant 0 : index
    %c0_55 = arith.constant 0 : index
    %63 = vector.load %arg5[%c0_53, %c0_54, %c0_55] : memref<1x128x128xf32, #tpu.memory_space<vmem>>, vector<1x128x128xf32>
    %64 = vector.shape_cast %63 : vector<1x128x128xf32> to vector<128x128xf32>
    %65 = vector.shape_cast %62 : vector<128x128xf32> to vector<1x128x128xf32>
    tpu.vector_store %arg5[%c0_53, %c0_54, %c0_55], %65 {strides = array<i32>} : memref<1x128x128xf32, #tpu.memory_space<vmem>>, vector<1x128x128xf32>,
    return
  }
  func.func @transform_0(%arg0: i32) -> (i32, i32, i32) {
    %c0_i32 = arith.constant 0 : i32
    %c0_i32_0 = arith.constant 0 : i32
    %c0_i32_1 = arith.constant 0 : i32
    return %arg0, %c0_i32, %c0_i32_0 : i32, i32, i32
  }
  func.func @transform_1(%arg0: i32) -> (i32, i32, i32) {
    %c0_i32 = arith.constant 0 : i32
    %c0_i32_0 = arith.constant 0 : i32
    %c0_i32_1 = arith.constant 0 : i32
    %c0_i32_2 = arith.constant 0 : i32
    return %c0_i32, %c0_i32_0, %c0_i32_1 : i32, i32, i32
  }
  func.func @transform_2(%arg0: i32) -> (i32, i32) {
    %c0_i32 = arith.constant 0 : i32
    %c0_i32_0 = arith.constant 0 : i32
    %c0_i32_1 = arith.constant 0 : i32
    return %c0_i32, %c0_i32_0 : i32, i32
  }
  func.func @transform_3(%arg0: i32) -> (i32, i32) {
    %c0_i32 = arith.constant 0 : i32
    %c0_i32_0 = arith.constant 0 : i32
    %c0_i32_1 = arith.constant 0 : i32
    return %c0_i32, %c0_i32_0 : i32, i32
  }
  func.func @transform_4(%arg0: i32) -> (i32, i32, i32) {
    %c0_i32 = arith.constant 0 : i32
    %c0_i32_0 = arith.constant 0 : i32
    %c0_i32_1 = arith.constant 0 : i32
    return %arg0, %c0_i32, %c0_i32_0 : i32, i32, i32
  }
}

</mosaic_0001>

<bundles_post_ra>
// kernel: tpu_custom_call.1
= control target key start
LH: loop header
LB: loop body
LE: loop exit
PB: predicated region body
PF: predicated region fallthrough
CT: control target
= control target key end

     0   :  { %9 = vsyncpa [#allocation3], 0  ;;  %s2174_s0 = inlined_call_operand.vmem [shape: f32[4,168,4], index: 0, kind: input, shape index: {}]   ;;  %s2175_s1 = inlined_call_operand.vmem [shape: f32[1,36,128], index: 1, kind: input, shape index: {}]   ;;  %s2176_s2 = inlined_call_operand.vmem [shape: f32[1,128], index: 2, kind: input, shape index: {}]   ;;  %s2177_s3 = inlined_call_operand.vmem [shape: f32[1,128], index: 3, kind: input, shape index: {}]   ;;  %s2178_s4 = inlined_call_operand.hbm [shape: f32[4,128,128], index: 4, kind: output, shape index: {}]  }
   0x1   :  { %11 = vsyncpa [#allocation3 + $0x1], 0  ;;  %s1433_s15 = smov 0   ;;  %s1435_s16 = smov 0  }
   0x2   :  { %s1437_s17 = smov 0   ;;  %s1439_s18 = smov 0  }
   0x3 LB: > { %s1454_s19 = sadd.s32 4294967295, %s1396_s18   ;;  %s1191_s20 = sadd.s32 4294967294, %s1396_s18   ;;  %s1396_s18 = sphi %s1439_s18, %s2199_s18   ;;  %s1392_s17 = sphi %s1437_s17, %s2198_s17   ;;  %s1388_s16 = sphi %s1435_s16, %s2197_s16   ;;  %s1384_s15 = sphi %s1433_s15, %s2196_s15  }
   0x4   : > { %s1458_s21 = sadd.s32 1, %s1396_s18   ;;  %s113_s22 = sadd.s32 1, %s1392_s17 }
   0x5   : > { %s110_s23 = ssub.s32 %s1396_s18, %s1458_s21  ;;  %p123_p0 = scmp.ne.s32.totalorder %s1392_s17, %s1388_s16 }
   0x6   : > { %p111_p1 = scmp.eq.s32.totalorder %s110_s23, 0  ;;  %p124_p2 = scmp.eq.s32.totalorder %s1454_s19, 3 }
   0x7   : > { %p129_p3 = scmp.ne.s32.totalorder %s1388_s16, %s1384_s15  ;;  %p130_p4 = scmp.eq.s32.totalorder %s1191_s20, 3 }
   0x8   : > { %s1469_s24 = scalar_select %p111_p1, %s1392_s17, %s113_s22  }
   0x9   : > { %p1471_p5 = por %p124_p2, %p123_p0  ;;  %p1475_p6 = por %p130_p4, %p129_p3 }
   0xa   : > { %p1194_p7 = scmp.ge.s32.totalorder %s1396_s18, 1  ;;  %p165_p8 = scmp.lt.s32.totalorder %s1396_s18, 5 }
   0xc   : > { %p166_p9 = pnand %p1194_p7, %p165_p8 }
   0xe   : > { %169 = sbr.rel (%p166_p9) target bundleno = 611 (0x263), region = 36 }
  0x13   : > { %p191_p10 = scmp.lt.s32.totalorder %s1454_s19, 3  ;;  %s1398_s6 = smov 4   ;;  %v838_v28 = vld [vmem:[%s2175_s1 + $0x20] sm:$0xf]  ;;  %vm888_vm0 = vcmask 1043456   ;;  %v837_v29 = vld [vmem:[%s2175_s1 + $0x18] sm:$0xff] }
  0x14   : > { %s1399_s7 = smov 8   ;;  %s1400_s8 = smov 12   ;;  %1243 = vmatprep.subr.msk.mxu0 %vm888_vm0, %v838_v28  ;;  %1277 = vmatprep.subr.msk.mxu1 %vm888_vm0, %v838_v28  ;;  %v836_v32 = vld [vmem:[%s2175_s1 + $0x10] sm:$0xff]  ;;  %v835_v33 = vld [vmem:[%s2175_s1 + $0x8] sm:$0xff]  ;;  %v834_v34 = vld [vmem:[%s2175_s1] sm:$0xff]  ;;  %vm698_vm1 = vcmask 31744  }
  0x15   : > { %s192_s27 = scalar_select %p191_p10, %s1454_s19, 3  ;;  %1244 = vmatpush3.msk.msra.mxu0 %vm888_vm0, %v838_v28  ;;  %1282 = vmatpush3.msk.msra.mxu1 %vm888_vm0, %v838_v28  ;;  %vm715_vm2 = vcmask 64512   ;;  %vm732_vm3 = vcmask 97280   ;;  %vm749_vm4 = vcmask 130048   ;;  %vm766_vm5 = vcmask 162816  }
  0x16   : > { %s1401_s9 = smov 16   ;;  %s1402_s10 = smov 20   ;;  %1245 = vmatprep.subr.mxu0 %v837_v29  ;;  %1278 = vmatprep.subr.mxu1 %v837_v29  ;;  %vm783_vm6 = vcmask 195584   ;;  %vm800_vm7 = vcmask 228352   ;;  %vm817_vm8 = vcmask 261120   ;;  %vm839_vm9 = vcmask 293888  }
  0x17   : > { %s1287_s28 = smul.u32 168, %s192_s27  ;;  %s1403_s11 = smov 24   ;;  %1246 = vmatpush3.msra.mxu0 %v837_v29  ;;  %1283 = vmatpush3.msra.mxu1 %v837_v29 }
  0x18   : > { %s1404_s12 = smov 28   ;;  %1247 = vmatprep.subr.mxu0 %v836_v32  ;;  %1279 = vmatprep.subr.mxu1 %v836_v32  ;;  %s1405_s30 = smov 32  }
  0x19   : > { %s1486_s5 = scalar_lea.vmem %s2174_s0, %s1287_s28  ;;  %1248 = vmatpush3.msra.mxu0 %v836_v32  ;;  %1284 = vmatpush3.msra.mxu1 %v836_v32  ;;  %s1221_s20 = sshll.u32 %s1454_s19, 11 }
  0x1a   : > { %v213_v0 = vld [vmem:[%s1486_s5 + $0x9] sm:$0xff]  ;;  %v212_v1 = vld [vmem:[%s1486_s5 + $0x1] sm:$0xff]  ;;  %v1527_v10 = vld [vmem:[%s1486_s5 + $0x58] sm:$0xff]  ;;  %1249 = vmatprep.subr.mxu0 %v835_v33  ;;  %1280 = vmatprep.subr.mxu1 %v835_v33  ;;  %s2124_s28 = scalar_lea.hbm %s2178_s4, %s1221_s20 }
  0x1b   : > { %274 = vrot.lane.b32.xlu1 %v213_v0, %s1398_s6  ;;  %272 = vrot.lane.b32.xlu0 %v212_v1, %s1398_s6  ;;  %v1493_v2 = vld [vmem:[%s1486_s5 + $0x49] sm:$0xff]  ;;  %v1496_v3 = vld [vmem:[%s1486_s5 + $0x41] sm:$0xff] }
  0x1c   : > { %v1503_v4 = vld [vmem:[%s1486_s5 + $0x42] sm:$0xff]  ;;  %v1510_v6 = vld [vmem:[%s1486_s5 + $0x4a] sm:$0xff]  ;;  %v1530_v11 = vld [vmem:[%s1486_s5 + $0x18] sm:$0xff]  ;;  %1250 = vmatpush3.msra.mxu0 %v835_v33  ;;  %1285 = vmatpush3.msra.mxu1 %v835_v33 }
  0x1d   : > { %v228_v5 = vld [vmem:[%s1486_s5 + $0x2] sm:$0xff]  ;;  %v229_v7 = vld [vmem:[%s1486_s5 + $0xa] sm:$0xff]  ;;  %v1547_v14 = vld [vmem:[%s1486_s5 + $0x59] sm:$0xff]  ;;  %1251 = vmatprep.subr.mxu0 %v834_v34  ;;  %1281 = vmatprep.subr.mxu1 %v834_v34 }
  0x1e   : > { %v1517_v8 = vld [vmem:[%s1486_s5 + $0x50] sm:$0xff]  ;;  %v215_v15 = vld [vmem:[%s1486_s5 + $0x19] sm:$0xff]  ;;  %v1591_v22 = vld [vmem:[%s1486_s5 + $0x68] sm:$0xff]  ;;  %1252 = vmatpush3.msra.mxu0 %v834_v34  ;;  %1286 = vmatpush3.msra.mxu1 %v834_v34 }
  0x1f   : > { %290 = vrot.lane.b32.xlu1 %v1493_v2, %s1398_s6  ;;  %288 = vrot.lane.b32.xlu0 %v1496_v3, %s1398_s6  ;;  %v1520_v9 = vld [vmem:[%s1486_s5 + $0x10] sm:$0xff]  ;;  %v1567_v18 = vld [vmem:[%s1486_s5 + $0x5a] sm:$0xff] }
  0x20   : > { %v1537_v12 = vld [vmem:[%s1486_s5 + $0x51] sm:$0xff]  ;;  %2186 = vst [vmem:[#allocation5_spill] sm:$0xff] %v1567_v18  ;;  %v231_v19 = vld [vmem:[%s1486_s5 + $0x1a] sm:$0xff]  ;;  %v1594_v23 = vld [vmem:[%s1486_s5 + $0x28] sm:$0xff] }
  0x21   : > { %v214_v13 = vld [vmem:[%s1486_s5 + $0x11] sm:$0xff]  ;;  %v1574_v20 = vld [vmem:[%s1486_s5 + $0x60] sm:$0xff]  ;;  %v225_v26 = vld [vmem:[%s1486_s5 + $0x69] sm:$0xff] }
  0x22   : > { %v1554_v16 = vld [vmem:[%s1486_s5 + $0x52] sm:$0xff]  ;;  %v1577_v21 = vld [vmem:[%s1486_s5 + $0x20] sm:$0xff]  ;;  %v217_v27 = vld [vmem:[%s1486_s5 + $0x29] sm:$0xff] }
  0x23   : > { %352 = vrot.lane.b32.xlu1 %v1503_v4, %s1399_s7  ;;  %336 = vrot.lane.b32.xlu0 %v228_v5, %s1399_s7  ;;  %v230_v17 = vld [vmem:[%s1486_s5 + $0x12] sm:$0xff]  ;;  %v224_v24 = vld [vmem:[%s1486_s5 + $0x61] sm:$0xff] }
  0x24   : > { %v216_v25 = vld [vmem:[%s1486_s5 + $0x21] sm:$0xff]  ;;  %v241_v35 = vld [vmem:[%s1486_s5 + $0x6a] sm:$0xff]  ;;  %v1678_v45 = vld [vmem:[%s1486_s5 + $0x78] sm:$0xff] }
  0x25   : > { %v240_v30 = vld [vmem:[%s1486_s5 + $0x62] sm:$0xff]  ;;  %v233_v36 = vld [vmem:[%s1486_s5 + $0x2a] sm:$0xff]  ;;  %2189 = vst [vmem:[#allocation8_spill] sm:$0xff] %v1678_v45  ;;  %v1681_v46 = vld [vmem:[%s1486_s5 + $0x38] sm:$0xff] }
  0x26   : > { %v232_v31 = vld [vmem:[%s1486_s5 + $0x22] sm:$0xff]  ;;  %v1650_v37 = vld [vmem:[%s1486_s5 + $0x70] sm:$0xff]  ;;  %2190 = vst [vmem:[#allocation9_spill] sm:$0xff] %v1681_v46  ;;  %v227_v57 = vld [vmem:[%s1486_s5 + $0x79] sm:$0xff] }
  0x27   : > { %354 = vrot.lane.b32.xlu1 %v1510_v6, %s1399_s7  ;;  %338 = vrot.lane.b32.xlu0 %v229_v7, %s1399_s7  ;;  %2187 = vst [vmem:[#allocation6_spill] sm:$0xff] %v1650_v37  ;;  %v1653_v38 = vld [vmem:[%s1486_s5 + $0x30] sm:$0xff]  ;;  %v219_v58 = vld [vmem:[%s1486_s5 + $0x39] sm:$0xff] }
  0x28   : > { %2188 = vst [vmem:[#allocation7_spill] sm:$0xff] %v1653_v38  ;;  %v226_v49 = vld [vmem:[%s1486_s5 + $0x71] sm:$0xff]  ;;  %v244_v33 = vld [vmem:[%s1486_s5 + $0x80] sm:$0xff] }
  0x29   : > { %v218_v50 = vld [vmem:[%s1486_s5 + $0x31] sm:$0xff] }
  0x2a   : > { %v242_v61 = vld [vmem:[%s1486_s5 + $0x72] sm:$0xff] }
  0x2b   : > { %416 = vrot.lane.b32.xlu1 %v1517_v8, %s1400_s8  ;;  %400 = vrot.lane.b32.xlu0 %v1520_v9, %s1400_s8  ;;  %v234_v62 = vld [vmem:[%s1486_s5 + $0x32] sm:$0xff] }
  0x2f   : > { %418 = vrot.lane.b32.xlu1 %v1527_v10, %s1400_s8  ;;  %402 = vrot.lane.b32.xlu0 %v1530_v11, %s1400_s8 }
  0x33   : > { %466 = vrot.lane.b32.xlu1 %v1537_v12, %s1401_s9  ;;  %450 = vrot.lane.b32.xlu0 %v214_v13, %s1401_s9 }
  0x37   : > { %292 = vrot.lane.b32.xlu1 %v1537_v12, %s1398_s6  ;;  %276 = vrot.lane.b32.xlu0 %v214_v13, %s1398_s6 }
  0x3b   : > { %468 = vrot.lane.b32.xlu1 %v1547_v14, %s1401_s9  ;;  %452 = vrot.lane.b32.xlu0 %v215_v15, %s1401_s9 }
  0x3f   : > { %516 = vrot.lane.b32.xlu1 %v1554_v16, %s1402_s10  ;;  %500 = vrot.lane.b32.xlu0 %v230_v17, %s1402_s10 }
  0x43   : > { %294 = vrot.lane.b32.xlu1 %v1547_v14, %s1398_s6  ;;  %278 = vrot.lane.b32.xlu0 %v215_v15, %s1398_s6 }
  0x47   : > { %356 = vrot.lane.b32.xlu1 %v1554_v16, %s1399_s7  ;;  %340 = vrot.lane.b32.xlu0 %v230_v17, %s1399_s7 }
  0x4b   : > { %518 = vrot.lane.b32.xlu1 %v1567_v18, %s1402_s10  ;;  %502 = vrot.lane.b32.xlu0 %v231_v19, %s1402_s10 }
  0x4f   : > { %566 = vrot.lane.b32.xlu1 %v1574_v20, %s1403_s11  ;;  %550 = vrot.lane.b32.xlu0 %v1577_v21, %s1403_s11 }
  0x53   : > { %358 = vrot.lane.b32.xlu1 %v1567_v18, %s1399_s7  ;;  %342 = vrot.lane.b32.xlu0 %v231_v19, %s1399_s7  ;;  %v243_v19 = vld [vmem:[%s1486_s5 + $0x7a] sm:$0xff] }
  0x57   : > { %420 = vrot.lane.b32.xlu1 %v1574_v20, %s1400_s8  ;;  %404 = vrot.lane.b32.xlu0 %v1577_v21, %s1400_s8 }
  0x5b   : > { %568 = vrot.lane.b32.xlu1 %v1591_v22, %s1403_s11  ;;  %552 = vrot.lane.b32.xlu0 %v1594_v23, %s1403_s11 }
  0x5f   : > { %616 = vrot.lane.b32.xlu1 %v224_v24, %s1404_s12  ;;  %600 = vrot.lane.b32.xlu0 %v216_v25, %s1404_s12 }
  0x63   : > { %422 = vrot.lane.b32.xlu1 %v1591_v22, %s1400_s8  ;;  %406 = vrot.lane.b32.xlu0 %v1594_v23, %s1400_s8 }
  0x67   : > { %470 = vrot.lane.b32.xlu1 %v224_v24, %s1401_s9  ;;  %454 = vrot.lane.b32.xlu0 %v216_v25, %s1401_s9 }
  0x6b   : > { %618 = vrot.lane.b32.xlu1 %v225_v26, %s1404_s12  ;;  %602 = vrot.lane.b32.xlu0 %v217_v27, %s1404_s12 }
  0x6f   : > { %666 = vrot.lane.b32.xlu1 %v240_v30, %s1405_s30  ;;  %650 = vrot.lane.b32.xlu0 %v232_v31, %s1405_s30 }
  0x73   : > { %296 = vrot.lane.b32.xlu1 %v224_v24, %s1398_s6  ;;  %280 = vrot.lane.b32.xlu0 %v216_v25, %s1398_s6  ;;  %v235_v24 = vld [vmem:[%s1486_s5 + $0x3a] sm:$0xff] }
  0x77   : > { %472 = vrot.lane.b32.xlu1 %v225_v26, %s1401_s9  ;;  %456 = vrot.lane.b32.xlu0 %v217_v27, %s1401_s9 }
  0x7b   : > { %520 = vrot.lane.b32.xlu1 %v240_v30, %s1402_s10  ;;  %504 = vrot.lane.b32.xlu0 %v232_v31, %s1402_s10 }
  0x7f   : > { %668 = vrot.lane.b32.xlu1 %v241_v35, %s1405_s30  ;;  %652 = vrot.lane.b32.xlu0 %v233_v36, %s1405_s30 }
  0x83   : > { %298 = vrot.lane.b32.xlu1 %v225_v26, %s1398_s6  ;;  %282 = vrot.lane.b32.xlu0 %v217_v27, %s1398_s6 }
  0x87   : > { %360 = vrot.lane.b32.xlu1 %v240_v30, %s1399_s7  ;;  %344 = vrot.lane.b32.xlu0 %v232_v31, %s1399_s7 }
  0x8b   : > { %522 = vrot.lane.b32.xlu1 %v241_v35, %s1402_s10  ;;  %506 = vrot.lane.b32.xlu0 %v233_v36, %s1402_s10 }
  0x8d   : > { %v1655_v39 = vpop.permute.xlu1 %274  ;;  %v1657_v40 = vpop.permute.xlu0 %272 }
  0x8f   : > { %570 = vrot.lane.b32.xlu1 %v1650_v37, %s1403_s11  ;;  %554 = vrot.lane.b32.xlu0 %v1653_v38, %s1403_s11 }
  0x91   : > { %v1663_v41 = vpop.permute.xlu1 %290  ;;  %v1665_v42 = vpop.permute.xlu0 %288 }
  0x93   : > { %362 = vrot.lane.b32.xlu1 %v241_v35, %s1399_s7  ;;  %346 = vrot.lane.b32.xlu0 %v233_v36, %s1399_s7  ;;  %v204_v36 = vld [vmem:[%s1486_s5 + $0x40] sm:$0xff] }
  0x95   : > { %v1669_v43 = vpop.permute.xlu1 %352  ;;  %v1671_v44 = vpop.permute.xlu0 %336 }
  0x97   : > { %424 = vrot.lane.b32.xlu1 %v1650_v37, %s1400_s8  ;;  %408 = vrot.lane.b32.xlu0 %v1653_v38, %s1400_s8 }
  0x99   : > { %v1683_v47 = vpop.permute.xlu1 %354  ;;  %v1685_v48 = vpop.permute.xlu0 %338 }
  0x9b   : > { %572 = vrot.lane.b32.xlu1 %v1678_v45, %s1403_s11  ;;  %556 = vrot.lane.b32.xlu0 %v1681_v46, %s1403_s11 }
  0x9d   : > { %v1693_v51 = vpop.permute.xlu1 %416  ;;  %v1695_v52 = vpop.permute.xlu0 %400 }
  0x9f   : > { %620 = vrot.lane.b32.xlu1 %v226_v49, %s1404_s12  ;;  %604 = vrot.lane.b32.xlu0 %v218_v50, %s1404_s12 }
  0xa1   : > { %v1699_v53 = vpop.permute.xlu1 %418  ;;  %v1701_v54 = vpop.permute.xlu0 %402 }
  0xa3   : > { %426 = vrot.lane.b32.xlu1 %v1678_v45, %s1400_s8  ;;  %410 = vrot.lane.b32.xlu0 %v1681_v46, %s1400_s8  ;;  %v245_v45 = vld [vmem:[%s1486_s5 + $0x88] sm:$0xff] }
  0xa5   : > { %v1707_v55 = vpop.permute.xlu1 %466  ;;  %v1709_v56 = vpop.permute.xlu0 %450 }
  0xa7   : > { %474 = vrot.lane.b32.xlu1 %v226_v49, %s1401_s9  ;;  %458 = vrot.lane.b32.xlu0 %v218_v50, %s1401_s9 }
  0xa9   : > { %v293_v59 = vpop.permute.xlu1 %292  ;;  %v277_v60 = vpop.permute.xlu0 %276 }
  0xab   : > { %622 = vrot.lane.b32.xlu1 %v227_v57, %s1404_s12  ;;  %606 = vrot.lane.b32.xlu0 %v219_v58, %s1404_s12 }
  0xad   : > { %v1719_v63 = vpop.permute.xlu1 %468  ;;  %v1721_v0 = vpop.permute.xlu0 %452 }
  0xaf   : > { %670 = vrot.lane.b32.xlu1 %v242_v61, %s1405_s30  ;;  %654 = vrot.lane.b32.xlu0 %v234_v62, %s1405_s30 }
  0xb1   : > { %v1725_v1 = vpop.permute.xlu1 %516  ;;  %v1727_v5 = vpop.permute.xlu0 %500 }
  0xb3   : > { %300 = vrot.lane.b32.xlu1 %v226_v49, %s1398_s6  ;;  %284 = vrot.lane.b32.xlu0 %v218_v50, %s1398_s6 }
  0xb5   : > { %v1731_v7 = vpop.permute.xlu1 %294  ;;  %v1733_v13 = vpop.permute.xlu0 %278 }
  0xb7   : > { %476 = vrot.lane.b32.xlu1 %v227_v57, %s1401_s9  ;;  %460 = vrot.lane.b32.xlu0 %v219_v58, %s1401_s9 }
  0xb9   : > { %v357_v15 = vpop.permute.xlu1 %356  ;;  %v341_v17 = vpop.permute.xlu0 %340 }
  0xbb   : > { %524 = vrot.lane.b32.xlu1 %v242_v61, %s1402_s10  ;;  %508 = vrot.lane.b32.xlu0 %v234_v62, %s1402_s10 }
  0xbd   : > { %v1741_v25 = vpop.permute.xlu1 %518  ;;  %v1743_v26 = vpop.permute.xlu0 %502 }
  0xbf   : > { %672 = vrot.lane.b32.xlu1 %v243_v19, %s1405_s30  ;;  %656 = vrot.lane.b32.xlu0 %v235_v24, %s1405_s30 }
  0xc1   : > { %v1747_v27 = vpop.permute.xlu1 %566  ;;  %v1749_v28 = vpop.permute.xlu0 %550 }
  0xc3   : > { %302 = vrot.lane.b32.xlu1 %v227_v57, %s1398_s6  ;;  %286 = vrot.lane.b32.xlu0 %v219_v58, %s1398_s6 }
  0xc5   : > { %v1753_v29 = vpop.permute.xlu1 %358  ;;  %v1755_v30 = vpop.permute.xlu0 %342 }
  0xc7   : > { %364 = vrot.lane.b32.xlu1 %v242_v61, %s1399_s7  ;;  %348 = vrot.lane.b32.xlu0 %v234_v62, %s1399_s7  ;;  %v709_v61 = vsel %vm698_vm1, %v1517_v8, %v293_v59  ;;  %v701_v62 = vsel %vm698_vm1, %v1520_v9, %v277_v60  ;;  %v205_v9 = vld [vmem:[%s1486_s5 + $0x48] sm:$0xff] }
  0xc8   : > { %v718_v46 = vsel %vm715_vm2, %v701_v62, %v341_v17  ;;  %v707_v17 = vsel %vm698_vm1, %v204_v36, %v1665_v42 }
  0xc9   : > { %v421_v31 = vpop.permute.xlu1 %420  ;;  %v405_v32 = vpop.permute.xlu0 %404 }
  0xca   : > { %v735_v59 = vsel %vm732_vm3, %v718_v46, %v405_v32  ;;  %v724_v46 = vsel %vm715_vm2, %v707_v17, %v1669_v43 }
  0xcb   : > { %526 = vrot.lane.b32.xlu1 %v243_v19, %s1402_s10  ;;  %510 = vrot.lane.b32.xlu0 %v235_v24, %s1402_s10 }
  0xcd   : > { %v1762_v34 = vpop.permute.xlu1 %568  ;;  %v1764_v35 = vpop.permute.xlu0 %552 }
  0xcf   : > { %574 = vrot.lane.b32.xlu1 %v244_v33, %s1403_s11  ;;  %558 = vrot.lane.b32.xlu0 %v204_v36, %s1403_s11 }
  0xd1   : > { %v617_v49 = vpop.permute.xlu1 %616  ;;  %v601_v50 = vpop.permute.xlu0 %600 }
  0xd3   : > { %366 = vrot.lane.b32.xlu1 %v243_v19, %s1399_s7  ;;  %350 = vrot.lane.b32.xlu0 %v235_v24, %s1399_s7  ;;  %v196_v19 = vld [vmem:[%s1486_s5] sm:$0xff]  ;;  %v726_v24 = vsel %vm715_vm2, %v709_v61, %v357_v15 }
  0xd4   : > { %v743_v38 = vsel %vm732_vm3, %v726_v24, %v421_v31  ;;  %v699_v15 = vsel %vm698_vm1, %v196_v19, %v1657_v40  ;;  %v197_v19 = vld [vmem:[%s1486_s5 + $0x8] sm:$0xff] }
  0xd5   : > { %v1771_v57 = vpop.permute.xlu1 %422  ;;  %v1773_v58 = vpop.permute.xlu0 %406 }
  0xd7   : > { %428 = vrot.lane.b32.xlu1 %v244_v33, %s1400_s8  ;;  %412 = vrot.lane.b32.xlu0 %v204_v36, %s1400_s8 }
  0xd9   : > { %v471_v37 = vpop.permute.xlu1 %470  ;;  %v455_v18 = vpop.permute.xlu0 %454 }
  0xda   : > { %v1789_v60 = vsel %vm749_vm4, %v743_v38, %v471_v37  ;;  %v1792_v33 = vsel %vm749_vm4, %v735_v59, %v455_v18  ;;  %v716_v37 = vsel %vm715_vm2, %v699_v15, %v1671_v44  ;;  %v246_v38 = vld [vmem:[%s1486_s5 + $0x81] sm:$0xff]  ;;  %v741_v18 = vsel %vm732_vm3, %v724_v46, %v1693_v51  ;;  %v247_v59 = vld [vmem:[%s1486_s5 + $0x89] sm:$0xff] }
  0xdb   : > { %576 = vrot.lane.b32.xlu1 %v245_v45, %s1403_s11  ;;  %560 = vrot.lane.b32.xlu0 %v205_v9, %s1403_s11  ;;  %v733_v40 = vsel %vm732_vm3, %v716_v37, %v1695_v52  ;;  %v758_v32 = vsel %vm749_vm4, %v741_v18, %v1707_v55  ;;  %v248_v46 = vld [vmem:[%s1486_s5 + $0x82] sm:$0xff] }
  0xdc   : > { %v750_v43 = vsel %vm749_vm4, %v733_v40, %v1709_v56  ;;  %v775_v44 = vsel %vm766_vm5, %v758_v32, %v1725_v1 }
  0xdd   : > { %v619_v42 = vpop.permute.xlu1 %618  ;;  %v603_v31 = vpop.permute.xlu0 %602  ;;  %v767_v36 = vsel %vm766_vm5, %v750_v43, %v1727_v5  ;;  %v792_v51 = vsel %vm783_vm6, %v775_v44, %v1747_v27 }
  0xde   : > { %v784_v52 = vsel %vm783_vm6, %v767_v36, %v1749_v28  ;;  %v809_v55 = vsel %vm800_vm7, %v792_v51, %v617_v49  ;;  %v710_v49 = vsel %vm698_vm1, %v1527_v10, %v1731_v7 }
  0xdf   : > { %624 = vrot.lane.b32.xlu1 %v246_v38, %s1404_s12  ;;  %608 = vrot.lane.b32.xlu0 %v1496_v3, %s1404_s12  ;;  %v801_v56 = vsel %vm800_vm7, %v784_v52, %v601_v50  ;;  %v702_v50 = vsel %vm698_vm1, %v1530_v11, %v1733_v13 }
  0xe0   : > { %v719_v24 = vsel %vm715_vm2, %v702_v50, %v1755_v30  ;;  %v700_v30 = vsel %vm698_vm1, %v197_v19, %v1655_v39  ;;  %v253_v50 = vld [vmem:[%s1486_s5 + $0x99] sm:$0xff] }
  0xe1   : > { %v667_v1 = vpop.permute.xlu1 %666  ;;  %v651_v5 = vpop.permute.xlu0 %650  ;;  %v736_v11 = vsel %vm732_vm3, %v719_v24, %v1773_v58  ;;  %v717_v58 = vsel %vm715_vm2, %v700_v30, %v1685_v48  ;;  %v2191_v30 = vld [vmem:[#allocation5_spill] sm:$0xff] }
  0xe2   : > { %v826_v61 = vsel %vm817_vm8, %v809_v55, %v667_v1  ;;  %v818_v62 = vsel %vm817_vm8, %v801_v56, %v651_v5  ;;  %v734_v39 = vsel %vm732_vm3, %v717_v58, %v1701_v54  ;;  %v251_v56 = vld [vmem:[%s1486_s5 + $0x98] sm:$0xff] }
  0xe3   : > { %430 = vrot.lane.b32.xlu1 %v245_v45, %s1400_s8  ;;  %1265 = vmatprep.mubr.msk.f32.mxu1 %vm839_vm9, %v826_v61  ;;  %v727_v45 = vsel %vm715_vm2, %v710_v49, %v1753_v29  ;;  %v751_v48 = vsel %vm749_vm4, %v734_v39, %v1721_v0 }
  0xe4   : > { %414 = vrot.lane.b32.xlu0 %v205_v9, %s1400_s8  ;;  %1253 = vmatprep.mubr.msk.f32.mxu0 %vm839_vm9, %v818_v62  ;;  %v744_v7 = vsel %vm732_vm3, %v727_v45, %v1771_v57  ;;  %v768_v18 = vsel %vm766_vm5, %v751_v48, %v1743_v26 }
  0xe5   : > { %v297_v27 = vpop.permute.xlu1 %296  ;;  %v281_v28 = vpop.permute.xlu0 %280  ;;  %v785_v54 = vsel %vm783_vm6, %v768_v18, %v1764_v35 }
  0xe6   : > { %v802_v0 = vsel %vm800_vm7, %v785_v54, %v603_v31  ;;  %v711_v31 = vsel %vm698_vm1, %v1574_v20, %v297_v27  ;;  %v703_v43 = vsel %vm698_vm1, %v1577_v21, %v281_v28  ;;  %v250_v20 = vld [vmem:[%s1486_s5 + $0x90] sm:$0xff] }
  0xe7   : > { %478 = vrot.lane.b32.xlu1 %v246_v38, %s1401_s9 }
  0xe8   : > { %462 = vrot.lane.b32.xlu0 %v1496_v3, %s1401_s9  ;;  %v708_v3 = vsel %vm698_vm1, %v205_v9, %v1663_v41 }
  0xe9   : > { %v473_v13 = vpop.permute.xlu1 %472  ;;  %v457_v15 = vpop.permute.xlu0 %456  ;;  %v725_v57 = vsel %vm715_vm2, %v708_v3, %v1683_v47 }
  0xea   : > { %v1852_v17 = vsel %vm749_vm4, %v744_v7, %v473_v13  ;;  %v1855_v29 = vsel %vm749_vm4, %v736_v11, %v457_v15  ;;  %v742_v37 = vsel %vm732_vm3, %v725_v57, %v1699_v53  ;;  %v255_v7 = vld [vmem:[%s1486_s5 + $0x9a] sm:$0xff] }
  0xeb   : > { %626 = vrot.lane.b32.xlu1 %v247_v59, %s1404_s12  ;;  %v759_v47 = vsel %vm749_vm4, %v742_v37, %v1719_v63 }
  0xec   : > { %610 = vrot.lane.b32.xlu0 %v1493_v2, %s1404_s12  ;;  %v776_v9 = vsel %vm766_vm5, %v759_v47, %v1741_v25 }
  0xed   : > { %v1873_v38 = vpop.permute.xlu1 %520  ;;  %v1875_v41 = vpop.permute.xlu0 %504  ;;  %v793_v53 = vsel %vm783_vm6, %v776_v9, %v1762_v34 }
  0xee   : > { %v810_v63 = vsel %vm800_vm7, %v793_v53, %v619_v42  ;;  %v249_v42 = vld [vmem:[%s1486_s5 + $0x8a] sm:$0xff]  ;;  %v777_v37 = vsel %vm766_vm5, %v1789_v60, %v1873_v38  ;;  %v769_v39 = vsel %vm766_vm5, %v1792_v33, %v1875_v41 }
  0xef   : > { %674 = vrot.lane.b32.xlu1 %v248_v46, %s1405_s30 }
  0xf0   : > { %658 = vrot.lane.b32.xlu0 %v1503_v4, %s1405_s30 }
  0xf1   : > { %v669_v25 = vpop.permute.xlu1 %668  ;;  %v653_v40 = vpop.permute.xlu0 %652 }
  0xf2   : > { %v827_v26 = vsel %vm817_vm8, %v810_v63, %v669_v25  ;;  %v819_v32 = vsel %vm817_vm8, %v802_v0, %v653_v40 }
  0xf3   : > { %480 = vrot.lane.b32.xlu1 %v247_v59, %s1401_s9  ;;  %1266 = vmatmul.mubr.msk.f32.vlgmr.msra.gmra.mxu1 %vm839_vm9, %v827_v26 }
  0xf4   : > { %464 = vrot.lane.b32.xlu0 %v1493_v2, %s1401_s9  ;;  %1254 = vmatmul.mubr.msk.f32.vlgmr.msra.gmra.mxu0 %vm839_vm9, %v819_v32 }
  0xf5   : > { %v299_v34 = vpop.permute.xlu1 %298  ;;  %v283_v35 = vpop.permute.xlu0 %282 }
  0xf6   : > { %v712_v1 = vsel %vm698_vm1, %v1591_v22, %v299_v34  ;;  %v704_v5 = vsel %vm698_vm1, %v1594_v23, %v283_v35 }
  0xf7   : > { %528 = vrot.lane.b32.xlu1 %v248_v46, %s1402_s10 }
  0xf8   : > { %512 = vrot.lane.b32.xlu0 %v1503_v4, %s1402_s10 }
  0xf9   : > { %v361_v44 = vpop.permute.xlu1 %360  ;;  %v345_v2 = vpop.permute.xlu0 %344 }
  0xfa   : > { %v728_v36 = vsel %vm715_vm2, %v711_v31, %v361_v44  ;;  %v720_v51 = vsel %vm715_vm2, %v703_v43, %v345_v2 }
  0xfb   : > { %676 = vrot.lane.b32.xlu1 %v249_v42, %s1405_s30 }
  0xfc   : > { %660 = vrot.lane.b32.xlu0 %v1510_v6, %s1405_s30 }
  0xfd   : > { %v1914_v4 = vpop.permute.xlu1 %522  ;;  %v1916_v52 = vpop.permute.xlu0 %506 }
  0xfe   : > { %v778_v34 = vsel %vm766_vm5, %v1852_v17, %v1914_v4  ;;  %v770_v35 = vsel %vm766_vm5, %v1855_v29, %v1916_v52  ;;  %v2192_v4 = vld [vmem:[#allocation6_spill] sm:$0xff] }
  0xff   : > { %530 = vrot.lane.b32.xlu1 %v249_v42, %s1402_s10 }
 0x100   : > { %514 = vrot.lane.b32.xlu0 %v1510_v6, %s1402_s10 }
 0x101   : > { %v571_v21 = vpop.permute.xlu1 %570  ;;  %v555_v55 = vpop.permute.xlu0 %554 }
 0x102   : > { %v794_v47 = vsel %vm783_vm6, %v777_v37, %v571_v21  ;;  %v786_v48 = vsel %vm783_vm6, %v769_v39, %v555_v55  ;;  %v2193_v21 = vld [vmem:[#allocation7_spill] sm:$0xff] }
 0x103   : > { %578 = vrot.lane.b32.xlu1 %v250_v20, %s1403_s11 }
 0x104   : > { %562 = vrot.lane.b32.xlu0 %v1517_v8, %s1403_s11  ;;  %v252_v8 = vld [vmem:[%s1486_s5 + $0x91] sm:$0xff] }
 0x105   : > { %v363_v61 = vpop.permute.xlu1 %362  ;;  %v347_v62 = vpop.permute.xlu0 %346 }
 0x106   : > { %v729_v6 = vsel %vm715_vm2, %v712_v1, %v363_v61  ;;  %v721_v27 = vsel %vm715_vm2, %v704_v5, %v347_v62 }
 0x107   : > { %580 = vrot.lane.b32.xlu1 %v251_v56, %s1403_s11 }
 0x108   : > { %564 = vrot.lane.b32.xlu0 %v1527_v10, %s1403_s11  ;;  %v254_v10 = vld [vmem:[%s1486_s5 + $0x92] sm:$0xff]  ;;  %s188_s5 = sand.u32 1, %s1388_s16  }
 0x109   : > { %v425_v28 = vpop.permute.xlu1 %424  ;;  %v409_v49 = vpop.permute.xlu0 %408  ;;  %s1195_s11 = sshll.u32 %s188_s5, 7  ;;  %s2133_s19 = scalar_lea.sflag [#allocation3], %s188_s5 }
 0x10a   : > { %v745_v22 = vsel %vm732_vm3, %v728_v36, %v425_v28  ;;  %v737_v23 = vsel %vm732_vm3, %v720_v51, %v409_v49 }
 0x10b   : > { %628 = vrot.lane.b32.xlu1 %v252_v8, %s1404_s12 }
 0x10c   : > { %612 = vrot.lane.b32.xlu0 %v1537_v12, %s1404_s12 }
 0x10d   : > { %v573_v19 = vpop.permute.xlu1 %572  ;;  %v557_v45 = vpop.permute.xlu0 %556 }
 0x10e   : > { %v795_v42 = vsel %vm783_vm6, %v778_v34, %v573_v19  ;;  %v787_v31 = vsel %vm783_vm6, %v770_v35, %v557_v45 }
 0x10f   : > { %630 = vrot.lane.b32.xlu1 %v253_v50, %s1404_s12 }
 0x110   : > { %614 = vrot.lane.b32.xlu0 %v1547_v14, %s1404_s12  ;;  %s2080_s12 = scalar_lea.vmem [#allocation2], %s1195_s11 }
 0x111   : > { %v621_v24 = vpop.permute.xlu1 %620  ;;  %v605_v59 = vpop.permute.xlu0 %604  ;;  %s1129_s22 = sshll.u32 %s2080_s12, 4  ;;  %s2127_s22 = int_to_ptr.vmem [resolvable:$true] %s1129_s22 }
 0x112   : > { %v811_v9 = vsel %vm800_vm7, %v794_v47, %v621_v24  ;;  %v803_v18 = vsel %vm800_vm7, %v786_v48, %v605_v59  ;;  %s1336_s29 = scalar_lea.vmem %s2127_s22, 2048 }
 0x113   : > { %678 = vrot.lane.b32.xlu1 %v254_v10, %s1405_s30  ;;  %p1337_p11 = scmp.ne.s32.totalorder %s2127_s22, %s1336_s29 }
 0x114   : > { %662 = vrot.lane.b32.xlu0 %v1554_v16, %s1405_s30 }
 0x115   : > { %v427_v11 = vpop.permute.xlu1 %426  ;;  %v411_v13 = vpop.permute.xlu0 %410  ;;  %p1338_p12 = pnand %p1337_p11, %p1471_p5 }
 0x116   : > { %v746_v12 = vsel %vm732_vm3, %v729_v6, %v427_v11  ;;  %v738_v15 = vsel %vm732_vm3, %v721_v27, %v411_v13 }
 0x117   : > { %680 = vrot.lane.b32.xlu1 %v255_v7, %s1405_s30  ;;  %p1339_p13 = pneg %p1338_p12 }
 0x118   : > { %664 = vrot.lane.b32.xlu0 %v2191_v30, %s1405_s30  ;;  %s1406_s30 = smov [#allocation2]  }
 0x119   : > { %v475_v14 = vpop.permute.xlu1 %474  ;;  %v459_v3 = vpop.permute.xlu0 %458  ;;  %s1340_s13 = sshll.u32 %s1406_s30, 4  ;;  %s1341_s13 = int_to_ptr.vmem [resolvable:$false] %s1340_s13 }
 0x11a   : > { %v1956_v57 = vsel %vm749_vm4, %v745_v22, %v475_v14  ;;  %v1959_v58 = vsel %vm749_vm4, %v737_v23, %v459_v3  ;;  %s1342_s14 = scalar_lea.vmem %s1341_s13, 4096  ;;  %p1343_p0 = scmp.lt.s32.totalorder %s2127_s22, %s1341_s13 }
 0x11b   : > { %p1344_p1 = scmp.lt.s32.totalorder %s1342_s14, %s1336_s29 }
 0x11d   : > { %v623_v16 = vpop.permute.xlu1 %622  ;;  %v607_v46 = vpop.permute.xlu0 %606  ;;  %p1345_p2 = por %p1344_p1, %p1343_p0 }
 0x11e   : > { %v812_v43 = vsel %vm800_vm7, %v795_v42, %v623_v16  ;;  %v804_v44 = vsel %vm800_vm7, %v787_v31, %v607_v46 }
 0x11f   : > { %p1346_p3 = pnand %p1345_p2, %p1339_p13 }
 0x121   : > { %v671_v53 = vpop.permute.xlu1 %670  ;;  %v655_v54 = vpop.permute.xlu0 %654 }
 0x122   : > { %v828_v63 = vsel %vm817_vm8, %v811_v9, %v671_v53  ;;  %v820_v0 = vsel %vm817_vm8, %v803_v18, %v655_v54 }
 0x123   : > { %1256 = vmatprep.mubr.msk.f32.mxu0 %vm839_vm9, %v820_v0  ;;  %1268 = vmatprep.mubr.msk.f32.mxu1 %vm839_vm9, %v828_v63 }
 0x125   : > { %v301_v60 = vpop.permute.xlu1 %300  ;;  %v285_v33 = vpop.permute.xlu0 %284 }
 0x126   : > { %v713_v52 = vsel %vm698_vm1, %v2192_v4, %v301_v60  ;;  %v705_v55 = vsel %vm698_vm1, %v2193_v21, %v285_v33 }
 0x129   : > { %v477_v38 = vpop.permute.xlu1 %476  ;;  %v461_v41 = vpop.permute.xlu0 %460 }
 0x12a   : > { %v763_v25 = vsel %vm749_vm4, %v746_v12, %v477_v38  ;;  %v755_v40 = vsel %vm749_vm4, %v738_v15, %v461_v41 }
 0x12d   : > { %v525_v26 = vpop.permute.xlu1 %524  ;;  %v509_v32 = vpop.permute.xlu0 %508 }
 0x12e   : > { %v779_v15 = vsel %vm766_vm5, %v1956_v57, %v525_v26  ;;  %v771_v30 = vsel %vm766_vm5, %v1959_v58, %v509_v32 }
 0x131   : > { %v673_v2 = vpop.permute.xlu1 %672  ;;  %v657_v36 = vpop.permute.xlu0 %656 }
 0x132   : > { %v829_v51 = vsel %vm817_vm8, %v812_v43, %v673_v2  ;;  %v821_v20 = vsel %vm817_vm8, %v804_v44, %v657_v36 }
 0x133   : > { %1257 = vmatmul.mubr.msk.f32.gmra.mxu0 %vm839_vm9, %v821_v20  ;;  %1269 = vmatmul.mubr.msk.f32.gmra.mxu1 %vm839_vm9, %v829_v51 }
 0x135   : > { %v1991_v17 = vpop.permute.xlu1 %302  ;;  %v1993_v29 = vpop.permute.xlu0 %286 }
 0x139   : > { %v365_v56 = vpop.permute.xlu1 %364  ;;  %v349_v1 = vpop.permute.xlu0 %348 }
 0x13a   : > { %v730_v5 = vsel %vm715_vm2, %v713_v52, %v365_v56  ;;  %v722_v61 = vsel %vm715_vm2, %v705_v55, %v349_v1  ;;  %v2194_v52 = vld [vmem:[#allocation8_spill] sm:$0xff]  ;;  %v2195_v1 = vld [vmem:[#allocation9_spill] sm:$0xff] }
 0x13b   : > { %v714_v21 = vsel %vm698_vm1, %v2194_v52, %v1991_v17 }
 0x13d   : > { %v527_v62 = vpop.permute.xlu1 %526  ;;  %v511_v6 = vpop.permute.xlu0 %510 }
 0x13e   : > { %v780_v53 = vsel %vm766_vm5, %v763_v25, %v527_v62  ;;  %v772_v54 = vsel %vm766_vm5, %v755_v40, %v511_v6  ;;  %v706_v62 = vsel %vm698_vm1, %v2195_v1, %v1993_v29 }
 0x141   : > { %v575_v27 = vpop.permute.xlu1 %574  ;;  %v559_v8 = vpop.permute.xlu0 %558 }
 0x142   : > { %v796_v14 = vsel %vm783_vm6, %v779_v15, %v575_v27  ;;  %v788_v3 = vsel %vm783_vm6, %v771_v30, %v559_v8 }
 0x145   : > { %v367_v28 = vpop.permute.xlu1 %366  ;;  %v351_v49 = vpop.permute.xlu0 %350 }
 0x146   : > { %v723_v27 = vsel %vm715_vm2, %v706_v62, %v351_v49 }
 0x149   : > { %v429_v22 = vpop.permute.xlu1 %428  ;;  %v413_v23 = vpop.permute.xlu0 %412 }
 0x14a   : > { %v747_v2 = vsel %vm732_vm3, %v730_v5, %v429_v22  ;;  %v739_v51 = vsel %vm732_vm3, %v722_v61, %v413_v23  ;;  %v731_v5 = vsel %vm715_vm2, %v714_v21, %v367_v28 }
 0x14d   : > { %v577_v50 = vpop.permute.xlu1 %576  ;;  %v561_v19 = vpop.permute.xlu0 %560 }
 0x14e   : > { %v797_v63 = vsel %vm783_vm6, %v780_v53, %v577_v50  ;;  %v789_v0 = vsel %vm783_vm6, %v772_v54, %v561_v19 }
 0x151   : > { %v625_v45 = vpop.permute.xlu1 %624  ;;  %v609_v10 = vpop.permute.xlu0 %608 }
 0x152   : > { %v813_v16 = vsel %vm800_vm7, %v796_v14, %v625_v45  ;;  %v805_v37 = vsel %vm800_vm7, %v788_v3, %v609_v10 }
 0x155   : > { %v431_v24 = vpop.permute.xlu1 %430 }
 0x156   : > { %v415_v59 = vpop.permute.xlu0 %414  ;;  %v748_v8 = vsel %vm732_vm3, %v731_v5, %v431_v24 }
 0x157   : > { %v740_v50 = vsel %vm732_vm3, %v723_v27, %v415_v59 }
 0x159   : > { %v479_v7 = vpop.permute.xlu1 %478 }
 0x15a   : > { %v463_v11 = vpop.permute.xlu0 %462  ;;  %v764_v20 = vsel %vm749_vm4, %v747_v2, %v479_v7 }
 0x15b   : > { %v756_v55 = vsel %vm749_vm4, %v739_v51, %v463_v11 }
 0x15d   : > { %v627_v13 = vpop.permute.xlu1 %626 }
 0x15e   : > { %v611_v12 = vpop.permute.xlu0 %610  ;;  %v814_v60 = vsel %vm800_vm7, %v797_v63, %v627_v13 }
 0x15f   : > { %v806_v38 = vsel %vm800_vm7, %v789_v0, %v611_v12 }
 0x161   : > { %v675_v46 = vpop.permute.xlu1 %674 }
 0x162   : > { %v830_v39 = vsel %vm817_vm8, %v813_v16, %v675_v46  ;;  %v659_v47 = vpop.permute.xlu0 %658  ;;  %v2063_v16 = vld [vmem:[%s2176_s2] ss:$0 sm:$0xff] }
 0x163   : > { %v822_v48 = vsel %vm817_vm8, %v805_v37, %v659_v47  ;;  %1271 = vmatprep.mubr.msk.f32.mxu1 %vm839_vm9, %v830_v39  ;;  %v2068_v46 = vld [vmem:[%s2177_s3] ss:$0 sm:$0xff] }
 0x164   : > { %1259 = vmatprep.mubr.msk.f32.mxu0 %vm839_vm9, %v822_v48 }
 0x165   : > { %v481_v57 = vpop.permute.xlu1 %480 }
 0x166   : > { %v465_v58 = vpop.permute.xlu0 %464  ;;  %v765_v19 = vsel %vm749_vm4, %v748_v8, %v481_v57 }
 0x167   : > { %v757_v10 = vsel %vm749_vm4, %v740_v50, %v465_v58 }
 0x169   : > { %v529_v9 = vpop.permute.xlu1 %528 }
 0x16a   : > { %v513_v18 = vpop.permute.xlu0 %512  ;;  %v781_v56 = vsel %vm766_vm5, %v764_v20, %v529_v9 }
 0x16b   : > { %v773_v6 = vsel %vm766_vm5, %v756_v55, %v513_v18 }
 0x16d   : > { %v677_v33 = vpop.permute.xlu1 %676 }
 0x16e   : > { %v831_v41 = vsel %vm817_vm8, %v814_v60, %v677_v33  ;;  %v661_v26 = vpop.permute.xlu0 %660 }
 0x16f   : > { %v823_v32 = vsel %vm817_vm8, %v806_v38, %v661_v26  ;;  %1272 = vmatmul.mubr.msk.f32.gmra.mxu1 %vm839_vm9, %v831_v41 }
 0x170   : > { %1260 = vmatmul.mubr.msk.f32.gmra.mxu0 %vm839_vm9, %v823_v32 }
 0x171   : > { %v531_v25 = vpop.permute.xlu1 %530 }
 0x172   : > { %v515_v40 = vpop.permute.xlu0 %514  ;;  %v782_v49 = vsel %vm766_vm5, %v765_v19, %v531_v25 }
 0x173   : > { %v774_v7 = vsel %vm766_vm5, %v757_v10, %v515_v40 }
 0x175   : > { %v579_v34 = vpop.permute.xlu1 %578 }
 0x176   : > { %v563_v35 = vpop.permute.xlu0 %562  ;;  %v798_v61 = vsel %vm783_vm6, %v781_v56, %v579_v34 }
 0x177   : > { %v790_v17 = vsel %vm783_vm6, %v773_v6, %v563_v35 }
 0x179   : > { %v581_v42 = vpop.permute.xlu1 %580 }
 0x17a   : > { %v565_v31 = vpop.permute.xlu0 %564  ;;  %v799_v59 = vsel %vm783_vm6, %v782_v49, %v581_v42 }
 0x17b   : > { %v791_v11 = vsel %vm783_vm6, %v774_v7, %v565_v31 }
 0x17d   : > { %v629_v43 = vpop.permute.xlu1 %628 }
 0x17e   : > { %v613_v44 = vpop.permute.xlu0 %612  ;;  %v815_v22 = vsel %vm800_vm7, %v798_v61, %v629_v43 }
 0x17f   : > { %v807_v29 = vsel %vm800_vm7, %v790_v17, %v613_v44 }
 0x181   : > { %v631_v36 = vpop.permute.xlu1 %630 }
 0x182   : > { %v615_v4 = vpop.permute.xlu0 %614  ;;  %v816_v13 = vsel %vm800_vm7, %v799_v59, %v631_v36 }
 0x183   : > { %v808_v15 = vsel %vm800_vm7, %v791_v11, %v615_v4 }
 0x185   : > { %v679_v23 = vpop.permute.xlu1 %678 }
 0x186   : > { %v832_v28 = vsel %vm817_vm8, %v815_v22, %v679_v23  ;;  %v663_v45 = vpop.permute.xlu0 %662 }
 0x187   : > { %v824_v24 = vsel %vm817_vm8, %v807_v29, %v663_v45  ;;  %1274 = vmatprep.mubr.msk.f32.mxu1 %vm839_vm9, %v832_v28 }
 0x188   : > { %1262 = vmatprep.mubr.msk.f32.mxu0 %vm839_vm9, %v824_v24 }
 0x189   : > { %v681_v12 = vpop.permute.xlu1 %680 }
 0x18a   : > { %v833_v30 = vsel %vm817_vm8, %v816_v13, %v681_v12  ;;  %v665_v14 = vpop.permute.xlu0 %664 }
 0x18b   : > { %v825_v3 = vsel %vm817_vm8, %v808_v15, %v665_v14  ;;  %1275 = vmatmul.mubr.msk.f32.gmra.mxu1 %vm839_vm9, %v833_v30 }
 0x18c   : > { %1263 = vmatmul.mubr.msk.f32.gmra.mxu0 %vm839_vm9, %v825_v3 }
 0x1b3   : > { %v1267_v37 = vpop.f32.mrf.mxu1 }
 0x1b4   : > { %v1255_v39 = vpop.f32.mrf.mxu0  ;;  %v1053_v47 = vmul.f32 %v1267_v37, %v2063_v16 }
 0x1b5   : > { %v1045_v48 = vmul.f32 %v1255_v39, %v2063_v16  ;;  %v998_v57 = vpop.f32.mrf.mxu1 }
 0x1b6   : > { %v1076_v58 = vadd.f32 %v2068_v46, %v1053_v47  ;;  %v958_v9 = vpop.f32.mrf.mxu0  ;;  %v1052_v18 = vmul.f32 %v2063_v16, %v998_v57 }
 0x1b7   : > { %v1068_v53 = vadd.f32 %v2068_v46, %v1045_v48  ;;  %v1044_v54 = vmul.f32 %v2063_v16, %v958_v9 }
 0x1b8   : > { %v1092_v63 = vmax.f32 %v1076_v58, 0.0  ;;  %v1075_v0 = vadd.f32 %v2068_v46, %v1052_v18 }
 0x1b9   : > { %v1084_v60 = vmax.f32 %v1068_v53, 0.0  ;;  %v1067_v33 = vadd.f32 %v2068_v46, %v1044_v54 }
 0x1ba   : > { %1108 = vst [vmem:[%s2080_s12 + $0x48] sm:$0xff] %v1092_v63  ;;  %v1091_v38 = vmax.f32 %v1075_v0, 0.0 }
 0x1bb   : > { %1100 = vst [vmem:[%s2080_s12 + $0x8] sm:$0xff] %v1084_v60  ;;  %v1083_v41 = vmax.f32 %v1067_v33, 0.0 }
 0x1bc   : > { %1107 = vst [vmem:[%s2080_s12 + $0x40] sm:$0xff] %v1091_v38 }
 0x1bd   : > { %1099 = vst [vmem:[%s2080_s12] sm:$0xff] %v1083_v41 }
 0x1f3   : > { %v1258_v26 = vpop.f32.mrf.mxu0  ;;  %v1270_v32 = vpop.f32.mrf.mxu1 }
 0x1f4   : > { %v1047_v25 = vmul.f32 %v1258_v26, %v2063_v16  ;;  %v1055_v40 = vmul.f32 %v1270_v32, %v2063_v16 }
 0x1f5   : > { %v968_v34 = vpop.f32.mrf.mxu0  ;;  %v1008_v35 = vpop.f32.mrf.mxu1 }
 0x1f6   : > { %v1070_v42 = vadd.f32 %v2068_v46, %v1047_v25  ;;  %v1078_v31 = vadd.f32 %v2068_v46, %v1055_v40  ;;  %v1046_v43 = vmul.f32 %v2063_v16, %v968_v34  ;;  %v1054_v44 = vmul.f32 %v2063_v16, %v1008_v35 }
 0x1f8   : > { %v1086_v2 = vmax.f32 %v1070_v42, 0.0  ;;  %v1094_v36 = vmax.f32 %v1078_v31, 0.0  ;;  %v1069_v51 = vadd.f32 %v2068_v46, %v1046_v43  ;;  %v1077_v20 = vadd.f32 %v2068_v46, %v1054_v44 }
 0x1fa   : > { %1102 = vst [vmem:[%s2080_s12 + $0x18] sm:$0xff] %v1086_v2  ;;  %1110 = vst [vmem:[%s2080_s12 + $0x58] sm:$0xff] %v1094_v36  ;;  %v1085_v4 = vmax.f32 %v1069_v51, 0.0  ;;  %v1093_v52 = vmax.f32 %v1077_v20, 0.0 }
 0x1fc   : > { %1101 = vst [vmem:[%s2080_s12 + $0x10] sm:$0xff] %v1085_v4  ;;  %1109 = vst [vmem:[%s2080_s12 + $0x50] sm:$0xff] %v1093_v52 }
 0x22f   : > { %v1273_v21 = vpop.f32.mrf.mxu1 }
 0x230   : > { %v1261_v55 = vpop.f32.mrf.mxu0  ;;  %v1057_v56 = vmul.f32 %v1273_v21, %v2063_v16 }
 0x231   : > { %v1049_v1 = vmul.f32 %v1261_v55, %v2063_v16  ;;  %v1018_v62 = vpop.f32.mrf.mxu1 }
 0x232   : > { %v1080_v5 = vadd.f32 %v2068_v46, %v1057_v56  ;;  %v978_v6 = vpop.f32.mrf.mxu0  ;;  %v1056_v61 = vmul.f32 %v2063_v16, %v1018_v62 }
 0x233   : > { %v1072_v27 = vadd.f32 %v2068_v46, %v1049_v1  ;;  %v1048_v8 = vmul.f32 %v2063_v16, %v978_v6 }
 0x234   : > { %v1096_v17 = vmax.f32 %v1080_v5, 0.0  ;;  %v1079_v22 = vadd.f32 %v2068_v46, %v1056_v61 }
 0x235   : > { %v1088_v23 = vmax.f32 %v1072_v27, 0.0  ;;  %v1071_v50 = vadd.f32 %v2068_v46, %v1048_v8 }
 0x236   : > { %1112 = vst [vmem:[%s2080_s12 + $0x68] sm:$0xff] %v1096_v17  ;;  %v1095_v19 = vmax.f32 %v1079_v22, 0.0 }
 0x237   : > { %1104 = vst [vmem:[%s2080_s12 + $0x28] sm:$0xff] %v1088_v23  ;;  %v1087_v29 = vmax.f32 %v1071_v50, 0.0 }
 0x238   : > { %1111 = vst [vmem:[%s2080_s12 + $0x60] sm:$0xff] %v1095_v19 }
 0x239   : > { %1103 = vst [vmem:[%s2080_s12 + $0x20] sm:$0xff] %v1087_v29 }
 0x24b   : > { %v1276_v28 = vpop.f32.mrf.mxu1 }
 0x24c   : > { %v1264_v45 = vpop.f32.mrf.mxu0  ;;  %v1059_v10 = vmul.f32 %v1276_v28, %v2063_v16 }
 0x24d   : > { %v1051_v49 = vmul.f32 %v1264_v45, %v2063_v16  ;;  %v1028_v24 = vpop.f32.mrf.mxu1 }
 0x24e   : > { %v1082_v7 = vadd.f32 %v2068_v46, %v1059_v10  ;;  %v988_v59 = vpop.f32.mrf.mxu0  ;;  %v1058_v11 = vmul.f32 %v2063_v16, %v1028_v24 }
 0x24f   : > { %v1074_v13 = vadd.f32 %v2068_v46, %v1051_v49  ;;  %v1050_v12 = vmul.f32 %v2063_v16, %v988_v59 }
 0x250   : > { %v1098_v15 = vmax.f32 %v1082_v7, 0.0  ;;  %v1081_v30 = vadd.f32 %v2068_v46, %v1058_v11 }
 0x251   : > { %v1090_v14 = vmax.f32 %v1074_v13, 0.0  ;;  %v1073_v3 = vadd.f32 %v2068_v46, %v1050_v12 }
 0x252   : > { %1114 = vst [vmem:[%s2080_s12 + $0x78] sm:$0xff] %v1098_v15  ;;  %v1097_v37 = vmax.f32 %v1081_v30, 0.0 }
 0x253   : > { %1106 = vst [vmem:[%s2080_s12 + $0x38] sm:$0xff] %v1090_v14  ;;  %v1089_v39 = vmax.f32 %v1073_v3, 0.0 }
 0x254   : > { %1113 = vst [vmem:[%s2080_s12 + $0x70] sm:$0xff] %v1097_v37 }
 0x255   : > { %1105 = vst [vmem:[%s2080_s12 + $0x30] sm:$0xff] %v1089_v39 }
 0x256   : > { %1349 = shalt.err (!%p1346_p3)
}
 0x257   : > { %s1350_s5 = scalar_lea.hbm %s2124_s28, 2048  ;;  %s1354_s9 = scalar_lea.hbm %s2178_s4, 8192 }
 0x258   : > { %p1351_p4 = scmp.ne.s32.totalorder %s2124_s28, %s1350_s5  ;;  %p1355_p9 = scmp.lt.s32.totalorder %s2124_s28, %s2178_s4 }
 0x259   : > { %p1356_p10 = scmp.lt.s32.totalorder %s1354_s9, %s1350_s5 }
 0x25a   : > { %p1352_p7 = pnand %p1351_p4, %p1471_p5 }
 0x25b   : > { %p1357_p11 = por %p1356_p10, %p1355_p9 }
 0x25c   : > { %p1353_p8 = pneg %p1352_p7 }
 0x25e   : > { %p1358_p12 = pnand %p1357_p11, %p1353_p8 }
 0x260   : > { %1361 = shalt.err (!%p1358_p12)
}
 0x261   : > { %s1407_s12 = smov 128  }
 0x262   : > { %1288 = dma.vmem_to_hbm [thread:$0]  (%p1471_p5), %s2127_s22, 2048, %s2124_s28, %s2133_s19, %s1407_s12, %s1407_s12, %s1399_s7  }
 0x263 PF: > { %p1294_p13 = scmp.ge.s32.totalorder %s1396_s18, 2  ;;  %s1144_s20 = sand.u32 1, %s1384_s15  }
 0x264   : > { %s1145_s23 = scalar_lea.sflag [#allocation3], %s1144_s20 }
 0x265   : > { %p1291_p0 = pnand %p1294_p13, %p1475_p6 }
 0x267   : > { %p1292_p1 = pneg %p1291_p0 }
 0x269   : > { %1379 = dma.done.wait (%p1292_p1), %s1145_s23, 2048  }
 0x26a   : > { %1381 = vsyncadd (%p1292_p1), %s1145_s23, 4294965248  ;;  %p14_p2 = scmp.ge.s32.totalorder %s1458_s21, 6   ;;  %s2196_s15 = smov %s1388_s16 }
 0x26b   : > { %s2197_s16 = smov %s1392_s17  ;;  %s2198_s17 = smov %s1469_s24 }
 0x26c   : > { %s2199_s18 = smov %s1458_s21  ;;  %16 = sbr.rel (!%p14_p2) target bundleno = 3 (0x3), region = 71 }
 0x271   :  { %1150 = vsyncpa [#allocation3], 1 }
 0x272   :  { %1152 = vsyncpa [#allocation3 + $0x1], 1 }

// kernel: tpu_custom_call.1
= control target key start
LH: loop header
LB: loop body
LE: loop exit
PB: predicated region body
PF: predicated region fallthrough
CT: control target
= control target key end

     0   :  { %9 = vsyncpa [#allocation3], 0  ;;  %s2174_s0 = inlined_call_operand.vmem [shape: f32[4,168,4], index: 0, kind: input, shape index: {}]   ;;  %s2175_s1 = inlined_call_operand.vmem [shape: f32[1,36,128], index: 1, kind: input, shape index: {}]   ;;  %s2176_s2 = inlined_call_operand.vmem [shape: f32[1,128], index: 2, kind: input, shape index: {}]   ;;  %s2177_s3 = inlined_call_operand.vmem [shape: f32[1,128], index: 3, kind: input, shape index: {}]   ;;  %s2178_s4 = inlined_call_operand.hbm [shape: f32[4,128,128], index: 4, kind: output, shape index: {}]  }
   0x1   :  { %11 = vsyncpa [#allocation3 + $0x1], 0  ;;  %s1433_s15 = smov 0   ;;  %s1435_s16 = smov 0  }
   0x2   :  { %s1437_s17 = smov 0   ;;  %s1439_s18 = smov 0  }
   0x3 LB: > { %s1454_s19 = sadd.s32 4294967295, %s1396_s18   ;;  %s1191_s20 = sadd.s32 4294967294, %s1396_s18   ;;  %s1396_s18 = sphi %s1439_s18, %s2199_s18   ;;  %s1392_s17 = sphi %s1437_s17, %s2198_s17   ;;  %s1388_s16 = sphi %s1435_s16, %s2197_s16   ;;  %s1384_s15 = sphi %s1433_s15, %s2196_s15  }
   0x4   : > { %s1458_s21 = sadd.s32 1, %s1396_s18   ;;  %s113_s22 = sadd.s32 1, %s1392_s17 }
   0x5   : > { %s110_s23 = ssub.s32 %s1396_s18, %s1458_s21  ;;  %p123_p0 = scmp.ne.s32.totalorder %s1392_s17, %s1388_s16 }
   0x6   : > { %p111_p1 = scmp.eq.s32.totalorder %s110_s23, 0  ;;  %p124_p2 = scmp.eq.s32.totalorder %s1454_s19, 3 }
   0x7   : > { %p129_p3 = scmp.ne.s32.totalorder %s1388_s16, %s1384_s15  ;;  %p130_p4 = scmp.eq.s32.totalorder %s1191_s20, 3 }
   0x8   : > { %s1469_s24 = scalar_select %p111_p1, %s1392_s17, %s113_s22  }
   0x9   : > { %p1471_p5 = por %p124_p2, %p123_p0  ;;  %p1475_p6 = por %p130_p4, %p129_p3 }
   0xa   : > { %p1194_p7 = scmp.ge.s32.totalorder %s1396_s18, 1  ;;  %p165_p8 = scmp.lt.s32.totalorder %s1396_s18, 5 }
   0xc   : > { %p166_p9 = pnand %p1194_p7, %p165_p8 }
   0xe   : > { %169 = sbr.rel (%p166_p9) target bundleno = 611 (0x263), region = 36 }
  0x13   : > { %p191_p10 = scmp.lt.s32.totalorder %s1454_s19, 3  ;;  %s1398_s6 = smov 4   ;;  %v838_v28 = vld [vmem:[%s2175_s1 + $0x20] sm:$0xf]  ;;  %vm888_vm0 = vcmask 1043456   ;;  %v837_v29 = vld [vmem:[%s2175_s1 + $0x18] sm:$0xff] }
  0x14   : > { %s1399_s7 = smov 8   ;;  %s1400_s8 = smov 12   ;;  %1243 = vmatprep.subr.msk.mxu0 %vm888_vm0, %v838_v28  ;;  %1277 = vmatprep.subr.msk.mxu1 %vm888_vm0, %v838_v28  ;;  %v836_v32 = vld [vmem:[%s2175_s1 + $0x10] sm:$0xff]  ;;  %v835_v33 = vld [vmem:[%s2175_s1 + $0x8] sm:$0xff]  ;;  %v834_v34 = vld [vmem:[%s2175_s1] sm:$0xff]  ;;  %vm698_vm1 = vcmask 31744  }
  0x15   : > { %s192_s27 = scalar_select %p191_p10, %s1454_s19, 3  ;;  %1244 = vmatpush3.msk.msra.mxu0 %vm888_vm0, %v838_v28  ;;  %1282 = vmatpush3.msk.msra.mxu1 %vm888_vm0, %v838_v28  ;;  %vm715_vm2 = vcmask 64512   ;;  %vm732_vm3 = vcmask 97280   ;;  %vm749_vm4 = vcmask 130048   ;;  %vm766_vm5 = vcmask 162816  }
  0x16   : > { %s1401_s9 = smov 16   ;;  %s1402_s10 = smov 20   ;;  %1245 = vmatprep.subr.mxu0 %v837_v29  ;;  %1278 = vmatprep.subr.mxu1 %v837_v29  ;;  %vm783_vm6 = vcmask 195584   ;;  %vm800_vm7 = vcmask 228352   ;;  %vm817_vm8 = vcmask 261120   ;;  %vm839_vm9 = vcmask 293888  }
  0x17   : > { %s1287_s28 = smul.u32 168, %s192_s27  ;;  %s1403_s11 = smov 24   ;;  %1246 = vmatpush3.msra.mxu0 %v837_v29  ;;  %1283 = vmatpush3.msra.mxu1 %v837_v29 }
  0x18   : > { %s1404_s12 = smov 28   ;;  %1247 = vmatprep.subr.mxu0 %v836_v32  ;;  %1279 = vmatprep.subr.mxu1 %v836_v32  ;;  %s1405_s30 = smov 32  }
  0x19   : > { %s1486_s5 = scalar_lea.vmem %s2174_s0, %s1287_s28  ;;  %1248 = vmatpush3.msra.mxu0 %v836_v32  ;;  %1284 = vmatpush3.msra.mxu1 %v836_v32  ;;  %s1221_s20 = sshll.u32 %s1454_s19, 11 }
  0x1a   : > { %v213_v0 = vld [vmem:[%s1486_s5 + $0x9] sm:$0xff]  ;;  %v212_v1 = vld [vmem:[%s1486_s5 + $0x1] sm:$0xff]  ;;  %v1527_v10 = vld [vmem:[%s1486_s5 + $0x58] sm:$0xff]  ;;  %1249 = vmatprep.subr.mxu0 %v835_v33  ;;  %1280 = vmatprep.subr.mxu1 %v835_v33  ;;  %s2124_s28 = scalar_lea.hbm %s2178_s4, %s1221_s20 }
  0x1b   : > { %274 = vrot.lane.b32.xlu1 %v213_v0, %s1398_s6  ;;  %272 = vrot.lane.b32.xlu0 %v212_v1, %s1398_s6  ;;  %v1493_v2 = vld [vmem:[%s1486_s5 + $0x49] sm:$0xff]  ;;  %v1496_v3 = vld [vmem:[%s1486_s5 + $0x41] sm:$0xff] }
  0x1c   : > { %v1503_v4 = vld [vmem:[%s1486_s5 + $0x42] sm:$0xff]  ;;  %v1510_v6 = vld [vmem:[%s1486_s5 + $0x4a] sm:$0xff]  ;;  %v1530_v11 = vld [vmem:[%s1486_s5 + $0x18] sm:$0xff]  ;;  %1250 = vmatpush3.msra.mxu0 %v835_v33  ;;  %1285 = vmatpush3.msra.mxu1 %v835_v33 }
  0x1d   : > { %v228_v5 = vld [vmem:[%s1486_s5 + $0x2] sm:$0xff]  ;;  %v229_v7 = vld [vmem:[%s1486_s5 + $0xa] sm:$0xff]  ;;  %v1547_v14 = vld [vmem:[%s1486_s5 + $0x59] sm:$0xff]  ;;  %1251 = vmatprep.subr.mxu0 %v834_v34  ;;  %1281 = vmatprep.subr.mxu1 %v834_v34 }
  0x1e   : > { %v1517_v8 = vld [vmem:[%s1486_s5 + $0x50] sm:$0xff]  ;;  %v215_v15 = vld [vmem:[%s1486_s5 + $0x19] sm:$0xff]  ;;  %v1591_v22 = vld [vmem:[%s1486_s5 + $0x68] sm:$0xff]  ;;  %1252 = vmatpush3.msra.mxu0 %v834_v34  ;;  %1286 = vmatpush3.msra.mxu1 %v834_v34 }
  0x1f   : > { %290 = vrot.lane.b32.xlu1 %v1493_v2, %s1398_s6  ;;  %288 = vrot.lane.b32.xlu0 %v1496_v3, %s1398_s6  ;;  %v1520_v9 = vld [vmem:[%s1486_s5 + $0x10] sm:$0xff]  ;;  %v1567_v18 = vld [vmem:[%s1486_s5 + $0x5a] sm:$0xff] }
  0x20   : > { %v1537_v12 = vld [vmem:[%s1486_s5 + $0x51] sm:$0xff]  ;;  %2186 = vst [vmem:[#allocation5_spill] sm:$0xff] %v1567_v18  ;;  %v231_v19 = vld [vmem:[%s1486_s5 + $0x1a] sm:$0xff]  ;;  %v1594_v23 = vld [vmem:[%s1486_s5 + $0x28] sm:$0xff] }
  0x21   : > { %v214_v13 = vld [vmem:[%s1486_s5 + $0x11] sm:$0xff]  ;;  %v1574_v20 = vld [vmem:[%s1486_s5 + $0x60] sm:$0xff]  ;;  %v225_v26 = vld [vmem:[%s1486_s5 + $0x69] sm:$0xff] }
  0x22   : > { %v1554_v16 = vld [vmem:[%s1486_s5 + $0x52] sm:$0xff]  ;;  %v1577_v21 = vld [vmem:[%s1486_s5 + $0x20] sm:$0xff]  ;;  %v217_v27 = vld [vmem:[%s1486_s5 + $0x29] sm:$0xff] }
  0x23   : > { %352 = vrot.lane.b32.xlu1 %v1503_v4, %s1399_s7  ;;  %336 = vrot.lane.b32.xlu0 %v228_v5, %s1399_s7  ;;  %v230_v17 = vld [vmem:[%s1486_s5 + $0x12] sm:$0xff]  ;;  %v224_v24 = vld [vmem:[%s1486_s5 + $0x61] sm:$0xff] }
  0x24   : > { %v216_v25 = vld [vmem:[%s1486_s5 + $0x21] sm:$0xff]  ;;  %v241_v35 = vld [vmem:[%s1486_s5 + $0x6a] sm:$0xff]  ;;  %v1678_v45 = vld [vmem:[%s1486_s5 + $0x78] sm:$0xff] }
  0x25   : > { %v240_v30 = vld [vmem:[%s1486_s5 + $0x62] sm:$0xff]  ;;  %v233_v36 = vld [vmem:[%s1486_s5 + $0x2a] sm:$0xff]  ;;  %2189 = vst [vmem:[#allocation8_spill] sm:$0xff] %v1678_v45  ;;  %v1681_v46 = vld [vmem:[%s1486_s5 + $0x38] sm:$0xff] }
  0x26   : > { %v232_v31 = vld [vmem:[%s1486_s5 + $0x22] sm:$0xff]  ;;  %v1650_v37 = vld [vmem:[%s1486_s5 + $0x70] sm:$0xff]  ;;  %2190 = vst [vmem:[#allocation9_spill] sm:$0xff] %v1681_v46  ;;  %v227_v57 = vld [vmem:[%s1486_s5 + $0x79] sm:$0xff] }
  0x27   : > { %354 = vrot.lane.b32.xlu1 %v1510_v6, %s1399_s7  ;;  %338 = vrot.lane.b32.xlu0 %v229_v7, %s1399_s7  ;;  %2187 = vst [vmem:[#allocation6_spill] sm:$0xff] %v1650_v37  ;;  %v1653_v38 = vld [vmem:[%s1486_s5 + $0x30] sm:$0xff]  ;;  %v219_v58 = vld [vmem:[%s1486_s5 + $0x39] sm:$0xff] }
  0x28   : > { %2188 = vst [vmem:[#allocation7_spill] sm:$0xff] %v1653_v38  ;;  %v226_v49 = vld [vmem:[%s1486_s5 + $0x71] sm:$0xff]  ;;  %v244_v33 = vld [vmem:[%s1486_s5 + $0x80] sm:$0xff] }
  0x29   : > { %v218_v50 = vld [vmem:[%s1486_s5 + $0x31] sm:$0xff] }
  0x2a   : > { %v242_v61 = vld [vmem:[%s1486_s5 + $0x72] sm:$0xff] }
  0x2b   : > { %416 = vrot.lane.b32.xlu1 %v1517_v8, %s1400_s8  ;;  %400 = vrot.lane.b32.xlu0 %v1520_v9, %s1400_s8  ;;  %v234_v62 = vld [vmem:[%s1486_s5 + $0x32] sm:$0xff] }
  0x2f   : > { %418 = vrot.lane.b32.xlu1 %v1527_v10, %s1400_s8  ;;  %402 = vrot.lane.b32.xlu0 %v1530_v11, %s1400_s8 }
  0x33   : > { %466 = vrot.lane.b32.xlu1 %v1537_v12, %s1401_s9  ;;  %450 = vrot.lane.b32.xlu0 %v214_v13, %s1401_s9 }
  0x37   : > { %292 = vrot.lane.b32.xlu1 %v1537_v12, %s1398_s6  ;;  %276 = vrot.lane.b32.xlu0 %v214_v13, %s1398_s6 }
  0x3b   : > { %468 = vrot.lane.b32.xlu1 %v1547_v14, %s1401_s9  ;;  %452 = vrot.lane.b32.xlu0 %v215_v15, %s1401_s9 }
  0x3f   : > { %516 = vrot.lane.b32.xlu1 %v1554_v16, %s1402_s10  ;;  %500 = vrot.lane.b32.xlu0 %v230_v17, %s1402_s10 }
  0x43   : > { %294 = vrot.lane.b32.xlu1 %v1547_v14, %s1398_s6  ;;  %278 = vrot.lane.b32.xlu0 %v215_v15, %s1398_s6 }
  0x47   : > { %356 = vrot.lane.b32.xlu1 %v1554_v16, %s1399_s7  ;;  %340 = vrot.lane.b32.xlu0 %v230_v17, %s1399_s7 }
  0x4b   : > { %518 = vrot.lane.b32.xlu1 %v1567_v18, %s1402_s10  ;;  %502 = vrot.lane.b32.xlu0 %v231_v19, %s1402_s10 }
  0x4f   : > { %566 = vrot.lane.b32.xlu1 %v1574_v20, %s1403_s11  ;;  %550 = vrot.lane.b32.xlu0 %v1577_v21, %s1403_s11 }
  0x53   : > { %358 = vrot.lane.b32.xlu1 %v1567_v18, %s1399_s7  ;;  %342 = vrot.lane.b32.xlu0 %v231_v19, %s1399_s7  ;;  %v243_v19 = vld [vmem:[%s1486_s5 + $0x7a] sm:$0xff] }
  0x57   : > { %420 = vrot.lane.b32.xlu1 %v1574_v20, %s1400_s8  ;;  %404 = vrot.lane.b32.xlu0 %v1577_v21, %s1400_s8 }
  0x5b   : > { %568 = vrot.lane.b32.xlu1 %v1591_v22, %s1403_s11  ;;  %552 = vrot.lane.b32.xlu0 %v1594_v23, %s1403_s11 }
  0x5f   : > { %616 = vrot.lane.b32.xlu1 %v224_v24, %s1404_s12  ;;  %600 = vrot.lane.b32.xlu0 %v216_v25, %s1404_s12 }
  0x63   : > { %422 = vrot.lane.b32.xlu1 %v1591_v22, %s1400_s8  ;;  %406 = vrot.lane.b32.xlu0 %v1594_v23, %s1400_s8 }
  0x67   : > { %470 = vrot.lane.b32.xlu1 %v224_v24, %s1401_s9  ;;  %454 = vrot.lane.b32.xlu0 %v216_v25, %s1401_s9 }
  0x6b   : > { %618 = vrot.lane.b32.xlu1 %v225_v26, %s1404_s12  ;;  %602 = vrot.lane.b32.xlu0 %v217_v27, %s1404_s12 }
  0x6f   : > { %666 = vrot.lane.b32.xlu1 %v240_v30, %s1405_s30  ;;  %650 = vrot.lane.b32.xlu0 %v232_v31, %s1405_s30 }
  0x73   : > { %296 = vrot.lane.b32.xlu1 %v224_v24, %s1398_s6  ;;  %280 = vrot.lane.b32.xlu0 %v216_v25, %s1398_s6  ;;  %v235_v24 = vld [vmem:[%s1486_s5 + $0x3a] sm:$0xff] }
  0x77   : > { %472 = vrot.lane.b32.xlu1 %v225_v26, %s1401_s9  ;;  %456 = vrot.lane.b32.xlu0 %v217_v27, %s1401_s9 }
  0x7b   : > { %520 = vrot.lane.b32.xlu1 %v240_v30, %s1402_s10  ;;  %504 = vrot.lane.b32.xlu0 %v232_v31, %s1402_s10 }
  0x7f   : > { %668 = vrot.lane.b32.xlu1 %v241_v35, %s1405_s30  ;;  %652 = vrot.lane.b32.xlu0 %v233_v36, %s1405_s30 }
  0x83   : > { %298 = vrot.lane.b32.xlu1 %v225_v26, %s1398_s6  ;;  %282 = vrot.lane.b32.xlu0 %v217_v27, %s1398_s6 }
  0x87   : > { %360 = vrot.lane.b32.xlu1 %v240_v30, %s1399_s7  ;;  %344 = vrot.lane.b32.xlu0 %v232_v31, %s1399_s7 }
  0x8b   : > { %522 = vrot.lane.b32.xlu1 %v241_v35, %s1402_s10  ;;  %506 = vrot.lane.b32.xlu0 %v233_v36, %s1402_s10 }
  0x8d   : > { %v1655_v39 = vpop.permute.xlu1 %274  ;;  %v1657_v40 = vpop.permute.xlu0 %272 }
  0x8f   : > { %570 = vrot.lane.b32.xlu1 %v1650_v37, %s1403_s11  ;;  %554 = vrot.lane.b32.xlu0 %v1653_v38, %s1403_s11 }
  0x91   : > { %v1663_v41 = vpop.permute.xlu1 %290  ;;  %v1665_v42 = vpop.permute.xlu0 %288 }
  0x93   : > { %362 = vrot.lane.b32.xlu1 %v241_v35, %s1399_s7  ;;  %346 = vrot.lane.b32.xlu0 %v233_v36, %s1399_s7  ;;  %v204_v36 = vld [vmem:[%s1486_s5 + $0x40] sm:$0xff] }
  0x95   : > { %v1669_v43 = vpop.permute.xlu1 %352  ;;  %v1671_v44 = vpop.permute.xlu0 %336 }
  0x97   : > { %424 = vrot.lane.b32.xlu1 %v1650_v37, %s1400_s8  ;;  %408 = vrot.lane.b32.xlu0 %v1653_v38, %s1400_s8 }
  0x99   : > { %v1683_v47 = vpop.permute.xlu1 %354  ;;  %v1685_v48 = vpop.permute.xlu0 %338 }
  0x9b   : > { %572 = vrot.lane.b32.xlu1 %v1678_v45, %s1403_s11  ;;  %556 = vrot.lane.b32.xlu0 %v1681_v46, %s1403_s11 }
  0x9d   : > { %v1693_v51 = vpop.permute.xlu1 %416  ;;  %v1695_v52 = vpop.permute.xlu0 %400 }
  0x9f   : > { %620 = vrot.lane.b32.xlu1 %v226_v49, %s1404_s12  ;;  %604 = vrot.lane.b32.xlu0 %v218_v50, %s1404_s12 }
  0xa1   : > { %v1699_v53 = vpop.permute.xlu1 %418  ;;  %v1701_v54 = vpop.permute.xlu0 %402 }
  0xa3   : > { %426 = vrot.lane.b32.xlu1 %v1678_v45, %s1400_s8  ;;  %410 = vrot.lane.b32.xlu0 %v1681_v46, %s1400_s8  ;;  %v245_v45 = vld [vmem:[%s1486_s5 + $0x88] sm:$0xff] }
  0xa5   : > { %v1707_v55 = vpop.permute.xlu1 %466  ;;  %v1709_v56 = vpop.permute.xlu0 %450 }
  0xa7   : > { %474 = vrot.lane.b32.xlu1 %v226_v49, %s1401_s9  ;;  %458 = vrot.lane.b32.xlu0 %v218_v50, %s1401_s9 }
  0xa9   : > { %v293_v59 = vpop.permute.xlu1 %292  ;;  %v277_v60 = vpop.permute.xlu0 %276 }
  0xab   : > { %622 = vrot.lane.b32.xlu1 %v227_v57, %s1404_s12  ;;  %606 = vrot.lane.b32.xlu0 %v219_v58, %s1404_s12 }
  0xad   : > { %v1719_v63 = vpop.permute.xlu1 %468  ;;  %v1721_v0 = vpop.permute.xlu0 %452 }
  0xaf   : > { %670 = vrot.lane.b32.xlu1 %v242_v61, %s1405_s30  ;;  %654 = vrot.lane.b32.xlu0 %v234_v62, %s1405_s30 }
  0xb1   : > { %v1725_v1 = vpop.permute.xlu1 %516  ;;  %v1727_v5 = vpop.permute.xlu0 %500 }
  0xb3   : > { %300 = vrot.lane.b32.xlu1 %v226_v49, %s1398_s6  ;;  %284 = vrot.lane.b32.xlu0 %v218_v50, %s1398_s6 }
  0xb5   : > { %v1731_v7 = vpop.permute.xlu1 %294  ;;  %v1733_v13 = vpop.permute.xlu0 %278 }
  0xb7   : > { %476 = vrot.lane.b32.xlu1 %v227_v57, %s1401_s9  ;;  %460 = vrot.lane.b32.xlu0 %v219_v58, %s1401_s9 }
  0xb9   : > { %v357_v15 = vpop.permute.xlu1 %356  ;;  %v341_v17 = vpop.permute.xlu0 %340 }
  0xbb   : > { %524 = vrot.lane.b32.xlu1 %v242_v61, %s1402_s10  ;;  %508 = vrot.lane.b32.xlu0 %v234_v62, %s1402_s10 }
  0xbd   : > { %v1741_v25 = vpop.permute.xlu1 %518  ;;  %v1743_v26 = vpop.permute.xlu0 %502 }
  0xbf   : > { %672 = vrot.lane.b32.xlu1 %v243_v19, %s1405_s30  ;;  %656 = vrot.lane.b32.xlu0 %v235_v24, %s1405_s30 }
  0xc1   : > { %v1747_v27 = vpop.permute.xlu1 %566  ;;  %v1749_v28 = vpop.permute.xlu0 %550 }
  0xc3   : > { %302 = vrot.lane.b32.xlu1 %v227_v57, %s1398_s6  ;;  %286 = vrot.lane.b32.xlu0 %v219_v58, %s1398_s6 }
  0xc5   : > { %v1753_v29 = vpop.permute.xlu1 %358  ;;  %v1755_v30 = vpop.permute.xlu0 %342 }
  0xc7   : > { %364 = vrot.lane.b32.xlu1 %v242_v61, %s1399_s7  ;;  %348 = vrot.lane.b32.xlu0 %v234_v62, %s1399_s7  ;;  %v709_v61 = vsel %vm698_vm1, %v1517_v8, %v293_v59  ;;  %v701_v62 = vsel %vm698_vm1, %v1520_v9, %v277_v60  ;;  %v205_v9 = vld [vmem:[%s1486_s5 + $0x48] sm:$0xff] }
  0xc8   : > { %v718_v46 = vsel %vm715_vm2, %v701_v62, %v341_v17  ;;  %v707_v17 = vsel %vm698_vm1, %v204_v36, %v1665_v42 }
  0xc9   : > { %v421_v31 = vpop.permute.xlu1 %420  ;;  %v405_v32 = vpop.permute.xlu0 %404 }
  0xca   : > { %v735_v59 = vsel %vm732_vm3, %v718_v46, %v405_v32  ;;  %v724_v46 = vsel %vm715_vm2, %v707_v17, %v1669_v43 }
  0xcb   : > { %526 = vrot.lane.b32.xlu1 %v243_v19, %s1402_s10  ;;  %510 = vrot.lane.b32.xlu0 %v235_v24, %s1402_s10 }
  0xcd   : > { %v1762_v34 = vpop.permute.xlu1 %568  ;;  %v1764_v35 = vpop.permute.xlu0 %552 }
  0xcf   : > { %574 = vrot.lane.b32.xlu1 %v244_v33, %s1403_s11  ;;  %558 = vrot.lane.b32.xlu0 %v204_v36, %s1403_s11 }
  0xd1   : > { %v617_v49 = vpop.permute.xlu1 %616  ;;  %v601_v50 = vpop.permute.xlu0 %600 }
  0xd3   : > { %366 = vrot.lane.b32.xlu1 %v243_v19, %s1399_s7  ;;  %350 = vrot.lane.b32.xlu0 %v235_v24, %s1399_s7  ;;  %v196_v19 = vld [vmem:[%s1486_s5] sm:$0xff]  ;;  %v726_v24 = vsel %vm715_vm2, %v709_v61, %v357_v15 }
  0xd4   : > { %v743_v38 = vsel %vm732_vm3, %v726_v24, %v421_v31  ;;  %v699_v15 = vsel %vm698_vm1, %v196_v19, %v1657_v40  ;;  %v197_v19 = vld [vmem:[%s1486_s5 + $0x8] sm:$0xff] }
  0xd5   : > { %v1771_v57 = vpop.permute.xlu1 %422  ;;  %v1773_v58 = vpop.permute.xlu0 %406 }
  0xd7   : > { %428 = vrot.lane.b32.xlu1 %v244_v33, %s1400_s8  ;;  %412 = vrot.lane.b32.xlu0 %v204_v36, %s1400_s8 }
  0xd9   : > { %v471_v37 = vpop.permute.xlu1 %470  ;;  %v455_v18 = vpop.permute.xlu0 %454 }
  0xda   : > { %v1789_v60 = vsel %vm749_vm4, %v743_v38, %v471_v37  ;;  %v1792_v33 = vsel %vm749_vm4, %v735_v59, %v455_v18  ;;  %v716_v37 = vsel %vm715_vm2, %v699_v15, %v1671_v44  ;;  %v246_v38 = vld [vmem:[%s1486_s5 + $0x81] sm:$0xff]  ;;  %v741_v18 = vsel %vm732_vm3, %v724_v46, %v1693_v51  ;;  %v247_v59 = vld [vmem:[%s1486_s5 + $0x89] sm:$0xff] }
  0xdb   : > { %576 = vrot.lane.b32.xlu1 %v245_v45, %s1403_s11  ;;  %560 = vrot.lane.b32.xlu0 %v205_v9, %s1403_s11  ;;  %v733_v40 = vsel %vm732_vm3, %v716_v37, %v1695_v52  ;;  %v758_v32 = vsel %vm749_vm4, %v741_v18, %v1707_v55  ;;  %v248_v46 = vld [vmem:[%s1486_s5 + $0x82] sm:$0xff] }
  0xdc   : > { %v750_v43 = vsel %vm749_vm4, %v733_v40, %v1709_v56  ;;  %v775_v44 = vsel %vm766_vm5, %v758_v32, %v1725_v1 }
  0xdd   : > { %v619_v42 = vpop.permute.xlu1 %618  ;;  %v603_v31 = vpop.permute.xlu0 %602  ;;  %v767_v36 = vsel %vm766_vm5, %v750_v43, %v1727_v5  ;;  %v792_v51 = vsel %vm783_vm6, %v775_v44, %v1747_v27 }
  0xde   : > { %v784_v52 = vsel %vm783_vm6, %v767_v36, %v1749_v28  ;;  %v809_v55 = vsel %vm800_vm7, %v792_v51, %v617_v49  ;;  %v710_v49 = vsel %vm698_vm1, %v1527_v10, %v1731_v7 }
  0xdf   : > { %624 = vrot.lane.b32.xlu1 %v246_v38, %s1404_s12  ;;  %608 = vrot.lane.b32.xlu0 %v1496_v3, %s1404_s12  ;;  %v801_v56 = vsel %vm800_vm7, %v784_v52, %v601_v50  ;;  %v702_v50 = vsel %vm698_vm1, %v1530_v11, %v1733_v13 }
  0xe0   : > { %v719_v24 = vsel %vm715_vm2, %v702_v50, %v1755_v30  ;;  %v700_v30 = vsel %vm698_vm1, %v197_v19, %v1655_v39  ;;  %v253_v50 = vld [vmem:[%s1486_s5 + $0x99] sm:$0xff] }
  0xe1   : > { %v667_v1 = vpop.permute.xlu1 %666  ;;  %v651_v5 = vpop.permute.xlu0 %650  ;;  %v736_v11 = vsel %vm732_vm3, %v719_v24, %v1773_v58  ;;  %v717_v58 = vsel %vm715_vm2, %v700_v30, %v1685_v48  ;;  %v2191_v30 = vld [vmem:[#allocation5_spill] sm:$0xff] }
  0xe2   : > { %v826_v61 = vsel %vm817_vm8, %v809_v55, %v667_v1  ;;  %v818_v62 = vsel %vm817_vm8, %v801_v56, %v651_v5  ;;  %v734_v39 = vsel %vm732_vm3, %v717_v58, %v1701_v54  ;;  %v251_v56 = vld [vmem:[%s1486_s5 + $0x98] sm:$0xff] }
  0xe3   : > { %430 = vrot.lane.b32.xlu1 %v245_v45, %s1400_s8  ;;  %1265 = vmatprep.mubr.msk.f32.mxu1 %vm839_vm9, %v826_v61  ;;  %v727_v45 = vsel %vm715_vm2, %v710_v49, %v1753_v29  ;;  %v751_v48 = vsel %vm749_vm4, %v734_v39, %v1721_v0 }
  0xe4   : > { %414 = vrot.lane.b32.xlu0 %v205_v9, %s1400_s8  ;;  %1253 = vmatprep.mubr.msk.f32.mxu0 %vm839_vm9, %v818_v62  ;;  %v744_v7 = vsel %vm732_vm3, %v727_v45, %v1771_v57  ;;  %v768_v18 = vsel %vm766_vm5, %v751_v48, %v1743_v26 }
  0xe5   : > { %v297_v27 = vpop.permute.xlu1 %296  ;;  %v281_v28 = vpop.permute.xlu0 %280  ;;  %v785_v54 = vsel %vm783_vm6, %v768_v18, %v1764_v35 }
  0xe6   : > { %v802_v0 = vsel %vm800_vm7, %v785_v54, %v603_v31  ;;  %v711_v31 = vsel %vm698_vm1, %v1574_v20, %v297_v27  ;;  %v703_v43 = vsel %vm698_vm1, %v1577_v21, %v281_v28  ;;  %v250_v20 = vld [vmem:[%s1486_s5 + $0x90] sm:$0xff] }
  0xe7   : > { %478 = vrot.lane.b32.xlu1 %v246_v38, %s1401_s9 }
  0xe8   : > { %462 = vrot.lane.b32.xlu0 %v1496_v3, %s1401_s9  ;;  %v708_v3 = vsel %vm698_vm1, %v205_v9, %v1663_v41 }
  0xe9   : > { %v473_v13 = vpop.permute.xlu1 %472  ;;  %v457_v15 = vpop.permute.xlu0 %456  ;;  %v725_v57 = vsel %vm715_vm2, %v708_v3, %v1683_v47 }
  0xea   : > { %v1852_v17 = vsel %vm749_vm4, %v744_v7, %v473_v13  ;;  %v1855_v29 = vsel %vm749_vm4, %v736_v11, %v457_v15  ;;  %v742_v37 = vsel %vm732_vm3, %v725_v57, %v1699_v53  ;;  %v255_v7 = vld [vmem:[%s1486_s5 + $0x9a] sm:$0xff] }
  0xeb   : > { %626 = vrot.lane.b32.xlu1 %v247_v59, %s1404_s12  ;;  %v759_v47 = vsel %vm749_vm4, %v742_v37, %v1719_v63 }
  0xec   : > { %610 = vrot.lane.b32.xlu0 %v1493_v2, %s1404_s12  ;;  %v776_v9 = vsel %vm766_vm5, %v759_v47, %v1741_v25 }
  0xed   : > { %v1873_v38 = vpop.permute.xlu1 %520  ;;  %v1875_v41 = vpop.permute.xlu0 %504  ;;  %v793_v53 = vsel %vm783_vm6, %v776_v9, %v1762_v34 }
  0xee   : > { %v810_v63 = vsel %vm800_vm7, %v793_v53, %v619_v42  ;;  %v249_v42 = vld [vmem:[%s1486_s5 + $0x8a] sm:$0xff]  ;;  %v777_v37 = vsel %vm766_vm5, %v1789_v60, %v1873_v38  ;;  %v769_v39 = vsel %vm766_vm5, %v1792_v33, %v1875_v41 }
  0xef   : > { %674 = vrot.lane.b32.xlu1 %v248_v46, %s1405_s30 }
  0xf0   : > { %658 = vrot.lane.b32.xlu0 %v1503_v4, %s1405_s30 }
  0xf1   : > { %v669_v25 = vpop.permute.xlu1 %668  ;;  %v653_v40 = vpop.permute.xlu0 %652 }
  0xf2   : > { %v827_v26 = vsel %vm817_vm8, %v810_v63, %v669_v25  ;;  %v819_v32 = vsel %vm817_vm8, %v802_v0, %v653_v40 }
  0xf3   : > { %480 = vrot.lane.b32.xlu1 %v247_v59, %s1401_s9  ;;  %1266 = vmatmul.mubr.msk.f32.vlgmr.msra.gmra.mxu1 %vm839_vm9, %v827_v26 }
  0xf4   : > { %464 = vrot.lane.b32.xlu0 %v1493_v2, %s1401_s9  ;;  %1254 = vmatmul.mubr.msk.f32.vlgmr.msra.gmra.mxu0 %vm839_vm9, %v819_v32 }
  0xf5   : > { %v299_v34 = vpop.permute.xlu1 %298  ;;  %v283_v35 = vpop.permute.xlu0 %282 }
  0xf6   : > { %v712_v1 = vsel %vm698_vm1, %v1591_v22, %v299_v34  ;;  %v704_v5 = vsel %vm698_vm1, %v1594_v23, %v283_v35 }
  0xf7   : > { %528 = vrot.lane.b32.xlu1 %v248_v46, %s1402_s10 }
  0xf8   : > { %512 = vrot.lane.b32.xlu0 %v1503_v4, %s1402_s10 }
  0xf9   : > { %v361_v44 = vpop.permute.xlu1 %360  ;;  %v345_v2 = vpop.permute.xlu0 %344 }
  0xfa   : > { %v728_v36 = vsel %vm715_vm2, %v711_v31, %v361_v44  ;;  %v720_v51 = vsel %vm715_vm2, %v703_v43, %v345_v2 }
  0xfb   : > { %676 = vrot.lane.b32.xlu1 %v249_v42, %s1405_s30 }
  0xfc   : > { %660 = vrot.lane.b32.xlu0 %v1510_v6, %s1405_s30 }
  0xfd   : > { %v1914_v4 = vpop.permute.xlu1 %522  ;;  %v1916_v52 = vpop.permute.xlu0 %506 }
  0xfe   : > { %v778_v34 = vsel %vm766_vm5, %v1852_v17, %v1914_v4  ;;  %v770_v35 = vsel %vm766_vm5, %v1855_v29, %v1916_v52  ;;  %v2192_v4 = vld [vmem:[#allocation6_spill] sm:$0xff] }
  0xff   : > { %530 = vrot.lane.b32.xlu1 %v249_v42, %s1402_s10 }
 0x100   : > { %514 = vrot.lane.b32.xlu0 %v1510_v6, %s1402_s10 }
 0x101   : > { %v571_v21 = vpop.permute.xlu1 %570  ;;  %v555_v55 = vpop.permute.xlu0 %554 }
 0x102   : > { %v794_v47 = vsel %vm783_vm6, %v777_v37, %v571_v21  ;;  %v786_v48 = vsel %vm783_vm6, %v769_v39, %v555_v55  ;;  %v2193_v21 = vld [vmem:[#allocation7_spill] sm:$0xff] }
 0x103   : > { %578 = vrot.lane.b32.xlu1 %v250_v20, %s1403_s11 }
 0x104   : > { %562 = vrot.lane.b32.xlu0 %v1517_v8, %s1403_s11  ;;  %v252_v8 = vld [vmem:[%s1486_s5 + $0x91] sm:$0xff] }
 0x105   : > { %v363_v61 = vpop.permute.xlu1 %362  ;;  %v347_v62 = vpop.permute.xlu0 %346 }
 0x106   : > { %v729_v6 = vsel %vm715_vm2, %v712_v1, %v363_v61  ;;  %v721_v27 = vsel %vm715_vm2, %v704_v5, %v347_v62 }
 0x107   : > { %580 = vrot.lane.b32.xlu1 %v251_v56, %s1403_s11 }
 0x108   : > { %564 = vrot.lane.b32.xlu0 %v1527_v10, %s1403_s11  ;;  %v254_v10 = vld [vmem:[%s1486_s5 + $0x92] sm:$0xff]  ;;  %s188_s5 = sand.u32 1, %s1388_s16  }
 0x109   : > { %v425_v28 = vpop.permute.xlu1 %424  ;;  %v409_v49 = vpop.permute.xlu0 %408  ;;  %s1195_s11 = sshll.u32 %s188_s5, 7  ;;  %s2133_s19 = scalar_lea.sflag [#allocation3], %s188_s5 }
 0x10a   : > { %v745_v22 = vsel %vm732_vm3, %v728_v36, %v425_v28  ;;  %v737_v23 = vsel %vm732_vm3, %v720_v51, %v409_v49 }
 0x10b   : > { %628 = vrot.lane.b32.xlu1 %v252_v8, %s1404_s12 }
 0x10c   : > { %612 = vrot.lane.b32.xlu0 %v1537_v12, %s1404_s12 }
 0x10d   : > { %v573_v19 = vpop.permute.xlu1 %572  ;;  %v557_v45 = vpop.permute.xlu0 %556 }
 0x10e   : > { %v795_v42 = vsel %vm783_vm6, %v778_v34, %v573_v19  ;;  %v787_v31 = vsel %vm783_vm6, %v770_v35, %v557_v45 }
 0x10f   : > { %630 = vrot.lane.b32.xlu1 %v253_v50, %s1404_s12 }
 0x110   : > { %614 = vrot.lane.b32.xlu0 %v1547_v14, %s1404_s12  ;;  %s2080_s12 = scalar_lea.vmem [#allocation2], %s1195_s11 }
 0x111   : > { %v621_v24 = vpop.permute.xlu1 %620  ;;  %v605_v59 = vpop.permute.xlu0 %604  ;;  %s1129_s22 = sshll.u32 %s2080_s12, 4  ;;  %s2127_s22 = int_to_ptr.vmem [resolvable:$true] %s1129_s22 }
 0x112   : > { %v811_v9 = vsel %vm800_vm7, %v794_v47, %v621_v24  ;;  %v803_v18 = vsel %vm800_vm7, %v786_v48, %v605_v59  ;;  %s1336_s29 = scalar_lea.vmem %s2127_s22, 2048 }
 0x113   : > { %678 = vrot.lane.b32.xlu1 %v254_v10, %s1405_s30  ;;  %p1337_p11 = scmp.ne.s32.totalorder %s2127_s22, %s1336_s29 }
 0x114   : > { %662 = vrot.lane.b32.xlu0 %v1554_v16, %s1405_s30 }
 0x115   : > { %v427_v11 = vpop.permute.xlu1 %426  ;;  %v411_v13 = vpop.permute.xlu0 %410  ;;  %p1338_p12 = pnand %p1337_p11, %p1471_p5 }
 0x116   : > { %v746_v12 = vsel %vm732_vm3, %v729_v6, %v427_v11  ;;  %v738_v15 = vsel %vm732_vm3, %v721_v27, %v411_v13 }
 0x117   : > { %680 = vrot.lane.b32.xlu1 %v255_v7, %s1405_s30  ;;  %p1339_p13 = pneg %p1338_p12 }
 0x118   : > { %664 = vrot.lane.b32.xlu0 %v2191_v30, %s1405_s30  ;;  %s1406_s30 = smov [#allocation2]  }
 0x119   : > { %v475_v14 = vpop.permute.xlu1 %474  ;;  %v459_v3 = vpop.permute.xlu0 %458  ;;  %s1340_s13 = sshll.u32 %s1406_s30, 4  ;;  %s1341_s13 = int_to_ptr.vmem [resolvable:$false] %s1340_s13 }
 0x11a   : > { %v1956_v57 = vsel %vm749_vm4, %v745_v22, %v475_v14  ;;  %v1959_v58 = vsel %vm749_vm4, %v737_v23, %v459_v3  ;;  %s1342_s14 = scalar_lea.vmem %s1341_s13, 4096  ;;  %p1343_p0 = scmp.lt.s32.totalorder %s2127_s22, %s1341_s13 }
 0x11b   : > { %p1344_p1 = scmp.lt.s32.totalorder %s1342_s14, %s1336_s29 }
 0x11d   : > { %v623_v16 = vpop.permute.xlu1 %622  ;;  %v607_v46 = vpop.permute.xlu0 %606  ;;  %p1345_p2 = por %p1344_p1, %p1343_p0 }
 0x11e   : > { %v812_v43 = vsel %vm800_vm7, %v795_v42, %v623_v16  ;;  %v804_v44 = vsel %vm800_vm7, %v787_v31, %v607_v46 }
 0x11f   : > { %p1346_p3 = pnand %p1345_p2, %p1339_p13 }
 0x121   : > { %v671_v53 = vpop.permute.xlu1 %670  ;;  %v655_v54 = vpop.permute.xlu0 %654 }
 0x122   : > { %v828_v63 = vsel %vm817_vm8, %v811_v9, %v671_v53  ;;  %v820_v0 = vsel %vm817_vm8, %v803_v18, %v655_v54 }
 0x123   : > { %1256 = vmatprep.mubr.msk.f32.mxu0 %vm839_vm9, %v820_v0  ;;  %1268 = vmatprep.mubr.msk.f32.mxu1 %vm839_vm9, %v828_v63 }
 0x125   : > { %v301_v60 = vpop.permute.xlu1 %300  ;;  %v285_v33 = vpop.permute.xlu0 %284 }
 0x126   : > { %v713_v52 = vsel %vm698_vm1, %v2192_v4, %v301_v60  ;;  %v705_v55 = vsel %vm698_vm1, %v2193_v21, %v285_v33 }
 0x129   : > { %v477_v38 = vpop.permute.xlu1 %476  ;;  %v461_v41 = vpop.permute.xlu0 %460 }
 0x12a   : > { %v763_v25 = vsel %vm749_vm4, %v746_v12, %v477_v38  ;;  %v755_v40 = vsel %vm749_vm4, %v738_v15, %v461_v41 }
 0x12d   : > { %v525_v26 = vpop.permute.xlu1 %524  ;;  %v509_v32 = vpop.permute.xlu0 %508 }
 0x12e   : > { %v779_v15 = vsel %vm766_vm5, %v1956_v57, %v525_v26  ;;  %v771_v30 = vsel %vm766_vm5, %v1959_v58, %v509_v32 }
 0x131   : > { %v673_v2 = vpop.permute.xlu1 %672  ;;  %v657_v36 = vpop.permute.xlu0 %656 }
 0x132   : > { %v829_v51 = vsel %vm817_vm8, %v812_v43, %v673_v2  ;;  %v821_v20 = vsel %vm817_vm8, %v804_v44, %v657_v36 }
 0x133   : > { %1257 = vmatmul.mubr.msk.f32.gmra.mxu0 %vm839_vm9, %v821_v20  ;;  %1269 = vmatmul.mubr.msk.f32.gmra.mxu1 %vm839_vm9, %v829_v51 }
 0x135   : > { %v1991_v17 = vpop.permute.xlu1 %302  ;;  %v1993_v29 = vpop.permute.xlu0 %286 }
 0x139   : > { %v365_v56 = vpop.permute.xlu1 %364  ;;  %v349_v1 = vpop.permute.xlu0 %348 }
 0x13a   : > { %v730_v5 = vsel %vm715_vm2, %v713_v52, %v365_v56  ;;  %v722_v61 = vsel %vm715_vm2, %v705_v55, %v349_v1  ;;  %v2194_v52 = vld [vmem:[#allocation8_spill] sm:$0xff]  ;;  %v2195_v1 = vld [vmem:[#allocation9_spill] sm:$0xff] }
 0x13b   : > { %v714_v21 = vsel %vm698_vm1, %v2194_v52, %v1991_v17 }
 0x13d   : > { %v527_v62 = vpop.permute.xlu1 %526  ;;  %v511_v6 = vpop.permute.xlu0 %510 }
 0x13e   : > { %v780_v53 = vsel %vm766_vm5, %v763_v25, %v527_v62  ;;  %v772_v54 = vsel %vm766_vm5, %v755_v40, %v511_v6  ;;  %v706_v62 = vsel %vm698_vm1, %v2195_v1, %v1993_v29 }
 0x141   : > { %v575_v27 = vpop.permute.xlu1 %574  ;;  %v559_v8 = vpop.permute.xlu0 %558 }
 0x142   : > { %v796_v14 = vsel %vm783_vm6, %v779_v15, %v575_v27  ;;  %v788_v3 = vsel %vm783_vm6, %v771_v30, %v559_v8 }
 0x145   : > { %v367_v28 = vpop.permute.xlu1 %366  ;;  %v351_v49 = vpop.permute.xlu0 %350 }
 0x146   : > { %v723_v27 = vsel %vm715_vm2, %v706_v62, %v351_v49 }
 0x149   : > { %v429_v22 = vpop.permute.xlu1 %428  ;;  %v413_v23 = vpop.permute.xlu0 %412 }
 0x14a   : > { %v747_v2 = vsel %vm732_vm3, %v730_v5, %v429_v22  ;;  %v739_v51 = vsel %vm732_vm3, %v722_v61, %v413_v23  ;;  %v731_v5 = vsel %vm715_vm2, %v714_v21, %v367_v28 }
 0x14d   : > { %v577_v50 = vpop.permute.xlu1 %576  ;;  %v561_v19 = vpop.permute.xlu0 %560 }
 0x14e   : > { %v797_v63 = vsel %vm783_vm6, %v780_v53, %v577_v50  ;;  %v789_v0 = vsel %vm783_vm6, %v772_v54, %v561_v19 }
 0x151   : > { %v625_v45 = vpop.permute.xlu1 %624  ;;  %v609_v10 = vpop.permute.xlu0 %608 }
 0x152   : > { %v813_v16 = vsel %vm800_vm7, %v796_v14, %v625_v45  ;;  %v805_v37 = vsel %vm800_vm7, %v788_v3, %v609_v10 }
 0x155   : > { %v431_v24 = vpop.permute.xlu1 %430 }
 0x156   : > { %v415_v59 = vpop.permute.xlu0 %414  ;;  %v748_v8 = vsel %vm732_vm3, %v731_v5, %v431_v24 }
 0x157   : > { %v740_v50 = vsel %vm732_vm3, %v723_v27, %v415_v59 }
 0x159   : > { %v479_v7 = vpop.permute.xlu1 %478 }
 0x15a   : > { %v463_v11 = vpop.permute.xlu0 %462  ;;  %v764_v20 = vsel %vm749_vm4, %v747_v2, %v479_v7 }
 0x15b   : > { %v756_v55 = vsel %vm749_vm4, %v739_v51, %v463_v11 }
 0x15d   : > { %v627_v13 = vpop.permute.xlu1 %626 }
 0x15e   : > { %v611_v12 = vpop.permute.xlu0 %610  ;;  %v814_v60 = vsel %vm800_vm7, %v797_v63, %v627_v13 }
 0x15f   : > { %v806_v38 = vsel %vm800_vm7, %v789_v0, %v611_v12 }
 0x161   : > { %v675_v46 = vpop.permute.xlu1 %674 }
 0x162   : > { %v830_v39 = vsel %vm817_vm8, %v813_v16, %v675_v46  ;;  %v659_v47 = vpop.permute.xlu0 %658  ;;  %v2063_v16 = vld [vmem:[%s2176_s2] ss:$0 sm:$0xff] }
 0x163   : > { %v822_v48 = vsel %vm817_vm8, %v805_v37, %v659_v47  ;;  %1271 = vmatprep.mubr.msk.f32.mxu1 %vm839_vm9, %v830_v39  ;;  %v2068_v46 = vld [vmem:[%s2177_s3] ss:$0 sm:$0xff] }
 0x164   : > { %1259 = vmatprep.mubr.msk.f32.mxu0 %vm839_vm9, %v822_v48 }
 0x165   : > { %v481_v57 = vpop.permute.xlu1 %480 }
 0x166   : > { %v465_v58 = vpop.permute.xlu0 %464  ;;  %v765_v19 = vsel %vm749_vm4, %v748_v8, %v481_v57 }
 0x167   : > { %v757_v10 = vsel %vm749_vm4, %v740_v50, %v465_v58 }
 0x169   : > { %v529_v9 = vpop.permute.xlu1 %528 }
 0x16a   : > { %v513_v18 = vpop.permute.xlu0 %512  ;;  %v781_v56 = vsel %vm766_vm5, %v764_v20, %v529_v9 }
 0x16b   : > { %v773_v6 = vsel %vm766_vm5, %v756_v55, %v513_v18 }
 0x16d   : > { %v677_v33 = vpop.permute.xlu1 %676 }
 0x16e   : > { %v831_v41 = vsel %vm817_vm8, %v814_v60, %v677_v33  ;;  %v661_v26 = vpop.permute.xlu0 %660 }
 0x16f   : > { %v823_v32 = vsel %vm817_vm8, %v806_v38, %v661_v26  ;;  %1272 = vmatmul.mubr.msk.f32.gmra.mxu1 %vm839_vm9, %v831_v41 }
 0x170   : > { %1260 = vmatmul.mubr.msk.f32.gmra.mxu0 %vm839_vm9, %v823_v32 }
 0x171   : > { %v531_v25 = vpop.permute.xlu1 %530 }
 0x172   : > { %v515_v40 = vpop.permute.xlu0 %514  ;;  %v782_v49 = vsel %vm766_vm5, %v765_v19, %v531_v25 }
 0x173   : > { %v774_v7 = vsel %vm766_vm5, %v757_v10, %v515_v40 }
 0x175   : > { %v579_v34 = vpop.permute.xlu1 %578 }
 0x176   : > { %v563_v35 = vpop.permute.xlu0 %562  ;;  %v798_v61 = vsel %vm783_vm6, %v781_v56, %v579_v34 }
 0x177   : > { %v790_v17 = vsel %vm783_vm6, %v773_v6, %v563_v35 }
 0x179   : > { %v581_v42 = vpop.permute.xlu1 %580 }
 0x17a   : > { %v565_v31 = vpop.permute.xlu0 %564  ;;  %v799_v59 = vsel %vm783_vm6, %v782_v49, %v581_v42 }
 0x17b   : > { %v791_v11 = vsel %vm783_vm6, %v774_v7, %v565_v31 }
 0x17d   : > { %v629_v43 = vpop.permute.xlu1 %628 }
 0x17e   : > { %v613_v44 = vpop.permute.xlu0 %612  ;;  %v815_v22 = vsel %vm800_vm7, %v798_v61, %v629_v43 }
 0x17f   : > { %v807_v29 = vsel %vm800_vm7, %v790_v17, %v613_v44 }
 0x181   : > { %v631_v36 = vpop.permute.xlu1 %630 }
 0x182   : > { %v615_v4 = vpop.permute.xlu0 %614  ;;  %v816_v13 = vsel %vm800_vm7, %v799_v59, %v631_v36 }
 0x183   : > { %v808_v15 = vsel %vm800_vm7, %v791_v11, %v615_v4 }
 0x185   : > { %v679_v23 = vpop.permute.xlu1 %678 }
 0x186   : > { %v832_v28 = vsel %vm817_vm8, %v815_v22, %v679_v23  ;;  %v663_v45 = vpop.permute.xlu0 %662 }
 0x187   : > { %v824_v24 = vsel %vm817_vm8, %v807_v29, %v663_v45  ;;  %1274 = vmatprep.mubr.msk.f32.mxu1 %vm839_vm9, %v832_v28 }
 0x188   : > { %1262 = vmatprep.mubr.msk.f32.mxu0 %vm839_vm9, %v824_v24 }
 0x189   : > { %v681_v12 = vpop.permute.xlu1 %680 }
 0x18a   : > { %v833_v30 = vsel %vm817_vm8, %v816_v13, %v681_v12  ;;  %v665_v14 = vpop.permute.xlu0 %664 }
 0x18b   : > { %v825_v3 = vsel %vm817_vm8, %v808_v15, %v665_v14  ;;  %1275 = vmatmul.mubr.msk.f32.gmra.mxu1 %vm839_vm9, %v833_v30 }
 0x18c   : > { %1263 = vmatmul.mubr.msk.f32.gmra.mxu0 %vm839_vm9, %v825_v3 }
 0x1b3   : > { %v1267_v37 = vpop.f32.mrf.mxu1 }
 0x1b4   : > { %v1255_v39 = vpop.f32.mrf.mxu0  ;;  %v1053_v47 = vmul.f32 %v1267_v37, %v2063_v16 }
 0x1b5   : > { %v1045_v48 = vmul.f32 %v1255_v39, %v2063_v16  ;;  %v998_v57 = vpop.f32.mrf.mxu1 }
 0x1b6   : > { %v1076_v58 = vadd.f32 %v2068_v46, %v1053_v47  ;;  %v958_v9 = vpop.f32.mrf.mxu0  ;;  %v1052_v18 = vmul.f32 %v2063_v16, %v998_v57 }
 0x1b7   : > { %v1068_v53 = vadd.f32 %v2068_v46, %v1045_v48  ;;  %v1044_v54 = vmul.f32 %v2063_v16, %v958_v9 }
 0x1b8   : > { %v1092_v63 = vmax.f32 %v1076_v58, 0.0  ;;  %v1075_v0 = vadd.f32 %v2068_v46, %v1052_v18 }
 0x1b9   : > { %v1084_v60 = vmax.f32 %v1068_v53, 0.0  ;;  %v1067_v33 = vadd.f32 %v2068_v46, %v1044_v54 }
 0x1ba   : > { %1108 = vst [vmem:[%s2080_s12 + $0x48] sm:$0xff] %v1092_v63  ;;  %v1091_v38 = vmax.f32 %v1075_v0, 0.0 }
 0x1bb   : > { %1100 = vst [vmem:[%s2080_s12 + $0x8] sm:$0xff] %v1084_v60  ;;  %v1083_v41 = vmax.f32 %v1067_v33, 0.0 }
 0x1bc   : > { %1107 = vst [vmem:[%s2080_s12 + $0x40] sm:$0xff] %v1091_v38 }
 0x1bd   : > { %1099 = vst [vmem:[%s2080_s12] sm:$0xff] %v1083_v41 }
 0x1f3   : > { %v1258_v26 = vpop.f32.mrf.mxu0  ;;  %v1270_v32 = vpop.f32.mrf.mxu1 }
 0x1f4   : > { %v1047_v25 = vmul.f32 %v1258_v26, %v2063_v16  ;;  %v1055_v40 = vmul.f32 %v1270_v32, %v2063_v16 }
 0x1f5   : > { %v968_v34 = vpop.f32.mrf.mxu0  ;;  %v1008_v35 = vpop.f32.mrf.mxu1 }
 0x1f6   : > { %v1070_v42 = vadd.f32 %v2068_v46, %v1047_v25  ;;  %v1078_v31 = vadd.f32 %v2068_v46, %v1055_v40  ;;  %v1046_v43 = vmul.f32 %v2063_v16, %v968_v34  ;;  %v1054_v44 = vmul.f32 %v2063_v16, %v1008_v35 }
 0x1f8   : > { %v1086_v2 = vmax.f32 %v1070_v42, 0.0  ;;  %v1094_v36 = vmax.f32 %v1078_v31, 0.0  ;;  %v1069_v51 = vadd.f32 %v2068_v46, %v1046_v43  ;;  %v1077_v20 = vadd.f32 %v2068_v46, %v1054_v44 }
 0x1fa   : > { %1102 = vst [vmem:[%s2080_s12 + $0x18] sm:$0xff] %v1086_v2  ;;  %1110 = vst [vmem:[%s2080_s12 + $0x58] sm:$0xff] %v1094_v36  ;;  %v1085_v4 = vmax.f32 %v1069_v51, 0.0  ;;  %v1093_v52 = vmax.f32 %v1077_v20, 0.0 }
 0x1fc   : > { %1101 = vst [vmem:[%s2080_s12 + $0x10] sm:$0xff] %v1085_v4  ;;  %1109 = vst [vmem:[%s2080_s12 + $0x50] sm:$0xff] %v1093_v52 }
 0x22f   : > { %v1273_v21 = vpop.f32.mrf.mxu1 }
 0x230   : > { %v1261_v55 = vpop.f32.mrf.mxu0  ;;  %v1057_v56 = vmul.f32 %v1273_v21, %v2063_v16 }
 0x231   : > { %v1049_v1 = vmul.f32 %v1261_v55, %v2063_v16  ;;  %v1018_v62 = vpop.f32.mrf.mxu1 }
 0x232   : > { %v1080_v5 = vadd.f32 %v2068_v46, %v1057_v56  ;;  %v978_v6 = vpop.f32.mrf.mxu0  ;;  %v1056_v61 = vmul.f32 %v2063_v16, %v1018_v62 }
 0x233   : > { %v1072_v27 = vadd.f32 %v2068_v46, %v1049_v1  ;;  %v1048_v8 = vmul.f32 %v2063_v16, %v978_v6 }
 0x234   : > { %v1096_v17 = vmax.f32 %v1080_v5, 0.0  ;;  %v1079_v22 = vadd.f32 %v2068_v46, %v1056_v61 }
 0x235   : > { %v1088_v23 = vmax.f32 %v1072_v27, 0.0  ;;  %v1071_v50 = vadd.f32 %v2068_v46, %v1048_v8 }
 0x236   : > { %1112 = vst [vmem:[%s2080_s12 + $0x68] sm:$0xff] %v1096_v17  ;;  %v1095_v19 = vmax.f32 %v1079_v22, 0.0 }
 0x237   : > { %1104 = vst [vmem:[%s2080_s12 + $0x28] sm:$0xff] %v1088_v23  ;;  %v1087_v29 = vmax.f32 %v1071_v50, 0.0 }
 0x238   : > { %1111 = vst [vmem:[%s2080_s12 + $0x60] sm:$0xff] %v1095_v19 }
 0x239   : > { %1103 = vst [vmem:[%s2080_s12 + $0x20] sm:$0xff] %v1087_v29 }
 0x24b   : > { %v1276_v28 = vpop.f32.mrf.mxu1 }
 0x24c   : > { %v1264_v45 = vpop.f32.mrf.mxu0  ;;  %v1059_v10 = vmul.f32 %v1276_v28, %v2063_v16 }
 0x24d   : > { %v1051_v49 = vmul.f32 %v1264_v45, %v2063_v16  ;;  %v1028_v24 = vpop.f32.mrf.mxu1 }
 0x24e   : > { %v1082_v7 = vadd.f32 %v2068_v46, %v1059_v10  ;;  %v988_v59 = vpop.f32.mrf.mxu0  ;;  %v1058_v11 = vmul.f32 %v2063_v16, %v1028_v24 }
 0x24f   : > { %v1074_v13 = vadd.f32 %v2068_v46, %v1051_v49  ;;  %v1050_v12 = vmul.f32 %v2063_v16, %v988_v59 }
 0x250   : > { %v1098_v15 = vmax.f32 %v1082_v7, 0.0  ;;  %v1081_v30 = vadd.f32 %v2068_v46, %v1058_v11 }
 0x251   : > { %v1090_v14 = vmax.f32 %v1074_v13, 0.0  ;;  %v1073_v3 = vadd.f32 %v2068_v46, %v1050_v12 }
 0x252   : > { %1114 = vst [vmem:[%s2080_s12 + $0x78] sm:$0xff] %v1098_v15  ;;  %v1097_v37 = vmax.f32 %v1081_v30, 0.0 }
 0x253   : > { %1106 = vst [vmem:[%s2080_s12 + $0x38] sm:$0xff] %v1090_v14  ;;  %v1089_v39 = vmax.f32 %v1073_v3, 0.0 }
 0x254   : > { %1113 = vst [vmem:[%s2080_s12 + $0x70] sm:$0xff] %v1097_v37 }
 0x255   : > { %1105 = vst [vmem:[%s2080_s12 + $0x30] sm:$0xff] %v1089_v39 }
 0x256   : > { %1349 = shalt.err (!%p1346_p3)
}
 0x257   : > { %s1350_s5 = scalar_lea.hbm %s2124_s28, 2048  ;;  %s1354_s9 = scalar_lea.hbm %s2178_s4, 8192 }
 0x258   : > { %p1351_p4 = scmp.ne.s32.totalorder %s2124_s28, %s1350_s5  ;;  %p1355_p9 = scmp.lt.s32.totalorder %s2124_s28, %s2178_s4 }
 0x259   : > { %p1356_p10 = scmp.lt.s32.totalorder %s1354_s9, %s1350_s5 }
 0x25a   : > { %p1352_p7 = pnand %p1351_p4, %p1471_p5 }
 0x25b   : > { %p1357_p11 = por %p1356_p10, %p1355_p9 }
 0x25c   : > { %p1353_p8 = pneg %p1352_p7 }
 0x25e   : > { %p1358_p12 = pnand %p1357_p11, %p1353_p8 }
 0x260   : > { %1361 = shalt.err (!%p1358_p12)
}
 0x261   : > { %s1407_s12 = smov 128  }
 0x262   : > { %1288 = dma.vmem_to_hbm [thread:$0]  (%p1471_p5), %s2127_s22, 2048, %s2124_s28, %s2133_s19, %s1407_s12, %s1407_s12, %s1399_s7  }
 0x263 PF: > { %p1294_p13 = scmp.ge.s32.totalorder %s1396_s18, 2  ;;  %s1144_s20 = sand.u32 1, %s1384_s15  }
 0x264   : > { %s1145_s23 = scalar_lea.sflag [#allocation3], %s1144_s20 }
 0x265   : > { %p1291_p0 = pnand %p1294_p13, %p1475_p6 }
 0x267   : > { %p1292_p1 = pneg %p1291_p0 }
 0x269   : > { %1379 = dma.done.wait (%p1292_p1), %s1145_s23, 2048  }
 0x26a   : > { %1381 = vsyncadd (%p1292_p1), %s1145_s23, 4294965248  ;;  %p14_p2 = scmp.ge.s32.totalorder %s1458_s21, 6   ;;  %s2196_s15 = smov %s1388_s16 }
 0x26b   : > { %s2197_s16 = smov %s1392_s17  ;;  %s2198_s17 = smov %s1469_s24 }
 0x26c   : > { %s2199_s18 = smov %s1458_s21  ;;  %16 = sbr.rel (!%p14_p2) target bundleno = 3 (0x3), region = 71 }
 0x271   :  { %1150 = vsyncpa [#allocation3], 1 }
 0x272   :  { %1152 = vsyncpa [#allocation3 + $0x1], 1 }

// kernel: tpu_custom_call.1
= control target key start
LH: loop header
LB: loop body
LE: loop exit
PB: predicated region body
PF: predicated region fallthrough
CT: control target
= control target key end

     0   :  { %9 = vsyncpa [#allocation3], 0  ;;  %s3913_s0 = inlined_call_operand.vmem [shape: f32[4,168,4], index: 0, kind: input, shape index: {}]   ;;  %s3914_s1 = inlined_call_operand.vmem [shape: f32[9,4,128], index: 1, kind: input, shape index: {}]   ;;  %s3915_s2 = inlined_call_operand.vmem [shape: f32[1,128], index: 2, kind: input, shape index: {}]   ;;  %s3916_s3 = inlined_call_operand.vmem [shape: f32[1,128], index: 3, kind: input, shape index: {}]   ;;  %s3917_s4 = inlined_call_operand.hbm [shape: f32[4,128,128], index: 4, kind: output, shape index: {}]  }
   0x1   :  { %11 = vsyncpa [#allocation3 + $0x1], 0  ;;  %s3085_s15 = smov 0   ;;  %s3087_s16 = smov 0  }
   0x2   :  { %s3089_s17 = smov 0   ;;  %s3091_s18 = smov 0  }
   0x3 LB: > { %s3106_s19 = sadd.s32 4294967295, %s3055_s18   ;;  %s2389_s20 = sadd.s32 4294967294, %s3055_s18   ;;  %s3055_s18 = sphi %s3091_s18, %s3961_s18   ;;  %s3051_s17 = sphi %s3089_s17, %s3960_s17   ;;  %s3047_s16 = sphi %s3087_s16, %s3959_s16   ;;  %s3043_s15 = sphi %s3085_s15, %s3958_s15  }
   0x4   : > { %s3110_s21 = sadd.s32 1, %s3055_s18   ;;  %s113_s22 = sadd.s32 1, %s3051_s17 }
   0x5   : > { %s110_s23 = ssub.s32 %s3055_s18, %s3110_s21  ;;  %p123_p0 = scmp.ne.s32.totalorder %s3051_s17, %s3047_s16 }
   0x6   : > { %p111_p1 = scmp.eq.s32.totalorder %s110_s23, 0  ;;  %p124_p2 = scmp.eq.s32.totalorder %s3106_s19, 3 }
   0x7   : > { %p129_p3 = scmp.ne.s32.totalorder %s3047_s16, %s3043_s15  ;;  %p130_p4 = scmp.eq.s32.totalorder %s2389_s20, 3 }
   0x8   : > { %s3121_s24 = scalar_select %p111_p1, %s3051_s17, %s113_s22  }
   0x9   : > { %p3123_p5 = por %p124_p2, %p123_p0  ;;  %p3127_p6 = por %p130_p4, %p129_p3 }
   0xa   : > { %p2392_p7 = scmp.ge.s32.totalorder %s3055_s18, 1  ;;  %p165_p8 = scmp.lt.s32.totalorder %s3055_s18, 5 }
   0xc   : > { %p166_p9 = pnand %p2392_p7, %p165_p8 }
   0xe   : > { %169 = sbr.rel (%p166_p9) target bundleno = 388 (0x184), region = 36 }
  0x13   : > { %v2395_v0 = vld [vmem:[%s3914_s1 + $0x4] sm:$0xf]  ;;  %vm280_vm0 = vcmask 1043456   ;;  %p191_p10 = scmp.lt.s32.totalorder %s3106_s19, 3  ;;  %v212_v1 = vld [vmem:[%s3914_s1] sm:$0xf] }
  0x14   : > { %2951 = vmatprep.subr.msk.mxu1 %vm280_vm0, %v2395_v0  ;;  %2717 = vmatprep.subr.msk.mxu0 %vm280_vm0, %v2395_v0  ;;  %v2430_v2 = vld [vmem:[%s3914_s1 + $0x8] sm:$0xf]  ;;  %vm231_vm1 = vcmask 31744   ;;  %v2448_v9 = vld [vmem:[%s3914_s1 + $0xc] sm:$0xf]  ;;  %s2563_s14 = sshll.u32 %s3106_s19, 11 }
  0x15   : > { %2952 = vmatpush3.msk.msra.mxu1 %vm280_vm0, %v2395_v0  ;;  %2718 = vmatpush3.msk.msra.mxu0 %vm280_vm0, %v2395_v0  ;;  %s192_s7 = scalar_select %p191_p10, %s3106_s19, 3  ;;  %v2466_v10 = vld [vmem:[%s3914_s1 + $0x10] sm:$0xf]  ;;  %v3256_v27 = vld [vmem:[%s3914_s1 + $0x14] sm:$0xf] }
  0x16   : > { %2743 = vmatprep.subr.msk.mxu1 %vm280_vm0, %v212_v1  ;;  %2769 = vmatprep.subr.msk.mxu0 %vm280_vm0, %v2430_v2  ;;  %v3261_v28 = vld [vmem:[%s3914_s1 + $0x18] sm:$0xf]  ;;  %v2520_v55 = vld [vmem:[%s3914_s1 + $0x1c] sm:$0xf]  ;;  %v2538_v56 = vld [vmem:[%s3914_s1 + $0x20] sm:$0xf]  ;;  %s3865_s27 = scalar_lea.hbm %s3917_s4, %s2563_s14 }
  0x17   : > { %s2953_s8 = smul.u32 168, %s192_s7  ;;  %s188_s7 = sand.u32 1, %s3047_s16  }
  0x18   : > { %s2393_s12 = sshll.u32 %s188_s7, 7  ;;  %s3873_s19 = scalar_lea.sflag [#allocation3], %s188_s7 }
  0x19   : > { %s3153_s11 = scalar_lea.vmem %s3913_s0, %s2953_s8  ;;  %s3793_s13 = scalar_lea.vmem [#allocation2], %s2393_s12 }
  0x1a   : > { %v213_v3 = vld [vmem:[%s3153_s11 + $0x1] sm:$0xff]  ;;  %v214_v5 = vld [vmem:[%s3153_s11 + $0x9] sm:$0xff]  ;;  %v3167_v7 = vld [vmem:[%s3153_s11 + $0x11] sm:$0xff]  ;;  %s2327_s20 = sshll.u32 %s3793_s13, 4  ;;  %s3057_s29 = smov [#allocation2]   ;;  %s3867_s20 = int_to_ptr.vmem [resolvable:$true] %s2327_s20 }
  0x1b   : > { %v3157_v4 = vld [vmem:[%s3153_s11 + $0x41] sm:$0xff]  ;;  %2719 = vmatprep.mubr.msk.f32.mxu0 %vm231_vm1, %v213_v3  ;;  %v3164_v6 = vld [vmem:[%s3153_s11 + $0x49] sm:$0xff]  ;;  %v3170_v8 = vld [vmem:[%s3153_s11 + $0x51] sm:$0xff]  ;;  %s2995_s28 = scalar_lea.vmem %s3867_s20, 2048  ;;  %s2999_s30 = sshll.u32 %s3057_s29, 4  ;;  %s3000_s30 = int_to_ptr.vmem [resolvable:$false] %s2999_s30 }
  0x1c   : > { %2731 = vmatprep.mubr.msk.f32.mxu1 %vm231_vm1, %v3157_v4  ;;  %2720 = vmatmul.mubr.msk.f32.vlgmr.msra.gmra.mxu0 %vm231_vm1, %v214_v5  ;;  %v3184_v11 = vld [vmem:[%s3153_s11 + $0x19] sm:$0xff]  ;;  %v3194_v13 = vld [vmem:[%s3153_s11 + $0x21] sm:$0xff]  ;;  %v3210_v15 = vld [vmem:[%s3153_s11 + $0x29] sm:$0xff]  ;;  %p2996_p11 = scmp.ne.s32.totalorder %s3867_s20, %s2995_s28  ;;  %s3001_s5 = scalar_lea.vmem %s3000_s30, 4096 }
  0x1d   : > { %2732 = vmatmul.mubr.msk.f32.vlgmr.msra.gmra.mxu1 %vm231_vm1, %v3164_v6  ;;  %2770 = vmatpush3.msk.msra.mxu0 %vm280_vm0, %v2430_v2  ;;  %v3187_v12 = vld [vmem:[%s3153_s11 + $0x59] sm:$0xff]  ;;  %v3197_v14 = vld [vmem:[%s3153_s11 + $0x61] sm:$0xff]  ;;  %v3213_v16 = vld [vmem:[%s3153_s11 + $0x69] sm:$0xff]  ;;  %p3002_p0 = scmp.lt.s32.totalorder %s3867_s20, %s3000_s30  ;;  %p3003_p1 = scmp.lt.s32.totalorder %s3001_s5, %s2995_s28 }
  0x1e   : > { %2744 = vmatpush3.msk.msra.mxu1 %vm280_vm0, %v212_v1  ;;  %2722 = vmatprep.mubr.msk.f32.mxu0 %vm231_vm1, %v3167_v7  ;;  %v3216_v17 = vld [vmem:[%s3153_s11 + $0x31] sm:$0xff]  ;;  %v3230_v19 = vld [vmem:[%s3153_s11 + $0x39] sm:$0xff]  ;;  %v625_v22 = vld [vmem:[%s3153_s11 + $0x2] sm:$0xff]  ;;  %p2997_p12 = pnand %p2996_p11, %p3123_p5 }
  0x1f   : > { %2734 = vmatprep.mubr.msk.f32.mxu1 %vm231_vm1, %v3170_v8  ;;  %2795 = vmatprep.subr.msk.mxu1 %vm280_vm0, %v2448_v9  ;;  %v3219_v18 = vld [vmem:[%s3153_s11 + $0x71] sm:$0xff]  ;;  %v3233_v20 = vld [vmem:[%s3153_s11 + $0x79] sm:$0xff]  ;;  %v197_v23 = vld [vmem:[%s3153_s11 + $0x8] sm:$0xff]  ;;  %p3004_p2 = por %p3003_p1, %p3002_p0 }
  0x20   : > { %2821 = vmatprep.subr.msk.mxu0 %vm280_vm0, %v2466_v10  ;;  %2723 = vmatmul.mubr.msk.f32.gmra.mxu0 %vm231_vm1, %v3184_v11  ;;  %v196_v21 = vld [vmem:[%s3153_s11] sm:$0xff]  ;;  %v626_v24 = vld [vmem:[%s3153_s11 + $0xa] sm:$0xff]  ;;  %v3249_v26 = vld [vmem:[%s3153_s11 + $0x12] sm:$0xff]  ;;  %p2998_p13 = pneg %p2997_p12 }
  0x21   : > { %2735 = vmatmul.mubr.msk.f32.gmra.mxu1 %vm231_vm1, %v3187_v12  ;;  %2725 = vmatprep.mubr.msk.f32.mxu0 %vm231_vm1, %v3194_v13  ;;  %v3246_v25 = vld [vmem:[%s3153_s11 + $0x10] sm:$0xff]  ;;  %v199_v29 = vld [vmem:[%s3153_s11 + $0x18] sm:$0xff]  ;;  %v3274_v31 = vld [vmem:[%s3153_s11 + $0x20] sm:$0xff] }
  0x22   : > { %2737 = vmatprep.mubr.msk.f32.mxu1 %vm231_vm1, %v3197_v14  ;;  %v3267_v30 = vld [vmem:[%s3153_s11 + $0x1a] sm:$0xff]  ;;  %v3277_v32 = vld [vmem:[%s3153_s11 + $0x22] sm:$0xff]  ;;  %v3294_v34 = vld [vmem:[%s3153_s11 + $0x2a] sm:$0xff]  ;;  %p3005_p3 = pnand %p3004_p2, %p2998_p13 }
  0x23   : > { %v3291_v33 = vld [vmem:[%s3153_s11 + $0x28] sm:$0xff]  ;;  %v3297_v35 = vld [vmem:[%s3153_s11 + $0x30] sm:$0xff]  ;;  %v3311_v37 = vld [vmem:[%s3153_s11 + $0x38] sm:$0xff] }
  0x24   : > { %2726 = vmatmul.mubr.msk.f32.gmra.mxu0 %vm231_vm1, %v3210_v15  ;;  %v3300_v36 = vld [vmem:[%s3153_s11 + $0x32] sm:$0xff]  ;;  %v3314_v38 = vld [vmem:[%s3153_s11 + $0x3a] sm:$0xff]  ;;  %v3320_v40 = vld [vmem:[%s3153_s11 + $0x42] sm:$0xff] }
  0x25   : > { %2738 = vmatmul.mubr.msk.f32.gmra.mxu1 %vm231_vm1, %v3213_v16  ;;  %2728 = vmatprep.mubr.msk.f32.mxu0 %vm231_vm1, %v3216_v17  ;;  %v3317_v39 = vld [vmem:[%s3153_s11 + $0x40] sm:$0xff]  ;;  %v3331_v41 = vld [vmem:[%s3153_s11 + $0x48] sm:$0xff]  ;;  %v3337_v43 = vld [vmem:[%s3153_s11 + $0x50] sm:$0xff] }
  0x26   : > { %2740 = vmatprep.mubr.msk.f32.mxu1 %vm231_vm1, %v3219_v18  ;;  %v3334_v42 = vld [vmem:[%s3153_s11 + $0x4a] sm:$0xff]  ;;  %v3340_v44 = vld [vmem:[%s3153_s11 + $0x52] sm:$0xff]  ;;  %v3354_v46 = vld [vmem:[%s3153_s11 + $0x5a] sm:$0xff] }
  0x27   : > { %v3351_v45 = vld [vmem:[%s3153_s11 + $0x58] sm:$0xff]  ;;  %v3357_v47 = vld [vmem:[%s3153_s11 + $0x60] sm:$0xff]  ;;  %v3371_v49 = vld [vmem:[%s3153_s11 + $0x68] sm:$0xff] }
  0x28   : > { %2729 = vmatmul.mubr.msk.f32.gmra.mxu0 %vm231_vm1, %v3230_v19  ;;  %v3360_v48 = vld [vmem:[%s3153_s11 + $0x62] sm:$0xff]  ;;  %v3374_v50 = vld [vmem:[%s3153_s11 + $0x6a] sm:$0xff]  ;;  %v3380_v52 = vld [vmem:[%s3153_s11 + $0x72] sm:$0xff] }
  0x29   : > { %2741 = vmatmul.mubr.msk.f32.gmra.mxu1 %vm231_vm1, %v3233_v20  ;;  %2771 = vmatprep.mubr.msk.f32.mxu0 %vm231_vm1, %v625_v22  ;;  %v3377_v51 = vld [vmem:[%s3153_s11 + $0x70] sm:$0xff]  ;;  %v3391_v53 = vld [vmem:[%s3153_s11 + $0x78] sm:$0xff]  ;;  %v869_v57 = vld [vmem:[%s3153_s11 + $0x80] sm:$0xff] }
  0x2a   : > { %2745 = vmatprep.mubr.msk.f32.mxu1 %vm231_vm1, %v196_v21  ;;  %v3394_v54 = vld [vmem:[%s3153_s11 + $0x7a] sm:$0xff]  ;;  %v870_v59 = vld [vmem:[%s3153_s11 + $0x88] sm:$0xff]  ;;  %v1559_v62 = vld [vmem:[%s3153_s11 + $0x90] sm:$0xff] }
  0x2b   : > { %v3465_v58 = vld [vmem:[%s3153_s11 + $0x81] sm:$0xff]  ;;  %v3476_v60 = vld [vmem:[%s3153_s11 + $0x89] sm:$0xff]  ;;  %v1560_v0 = vld [vmem:[%s3153_s11 + $0x98] sm:$0xff] }
  0x2c   : > { %2772 = vmatmul.mubr.msk.f32.vlgmr.msra.gmra.mxu0 %vm231_vm1, %v626_v24  ;;  %v1329_v61 = vld [vmem:[%s3153_s11 + $0x82] sm:$0xff]  ;;  %v1330_v63 = vld [vmem:[%s3153_s11 + $0x8a] sm:$0xff]  ;;  %v2019_v2 = vld [vmem:[%s3153_s11 + $0x92] sm:$0xff] }
  0x2d   : > { %2746 = vmatmul.mubr.msk.f32.vlgmr.msra.gmra.mxu1 %vm231_vm1, %v197_v23  ;;  %2822 = vmatpush3.msk.msra.mxu0 %vm280_vm0, %v2466_v10  ;;  %v1789_v1 = vld [vmem:[%s3153_s11 + $0x91] sm:$0xff]  ;;  %v1790_v3 = vld [vmem:[%s3153_s11 + $0x99] sm:$0xff] }
  0x2e   : > { %2796 = vmatpush3.msk.msra.mxu1 %vm280_vm0, %v2448_v9  ;;  %2748 = vmatprep.mubr.msk.f32.mxu1 %vm231_vm1, %v3246_v25 }
  0x2f   : > { %2774 = vmatprep.mubr.msk.f32.mxu0 %vm231_vm1, %v3249_v26  ;;  %2847 = vmatprep.subr.msk.mxu1 %vm280_vm0, %v3256_v27 }
  0x30   : > { %2873 = vmatprep.subr.msk.mxu0 %vm280_vm0, %v3261_v28  ;;  %2775 = vmatmul.mubr.msk.f32.gmra.mxu0 %vm231_vm1, %v3267_v30 }
  0x31   : > { %2749 = vmatmul.mubr.msk.f32.gmra.mxu1 %vm231_vm1, %v199_v29  ;;  %2777 = vmatprep.mubr.msk.f32.mxu0 %vm231_vm1, %v3277_v32 }
  0x32   : > { %2751 = vmatprep.mubr.msk.f32.mxu1 %vm231_vm1, %v3274_v31 }
  0x34   : > { %2778 = vmatmul.mubr.msk.f32.gmra.mxu0 %vm231_vm1, %v3294_v34 }
  0x35   : > { %2752 = vmatmul.mubr.msk.f32.gmra.mxu1 %vm231_vm1, %v3291_v33  ;;  %2780 = vmatprep.mubr.msk.f32.mxu0 %vm231_vm1, %v3300_v36 }
  0x36   : > { %2754 = vmatprep.mubr.msk.f32.mxu1 %vm231_vm1, %v3297_v35 }
  0x38   : > { %2781 = vmatmul.mubr.msk.f32.gmra.mxu0 %vm231_vm1, %v3314_v38 }
  0x39   : > { %2755 = vmatmul.mubr.msk.f32.gmra.mxu1 %vm231_vm1, %v3311_v37  ;;  %2783 = vmatprep.mubr.msk.f32.mxu0 %vm231_vm1, %v3320_v40 }
  0x3a   : > { %2757 = vmatprep.mubr.msk.f32.mxu1 %vm231_vm1, %v3317_v39 }
  0x3c   : > { %2784 = vmatmul.mubr.msk.f32.gmra.mxu0 %vm231_vm1, %v3334_v42 }
  0x3d   : > { %2758 = vmatmul.mubr.msk.f32.gmra.mxu1 %vm231_vm1, %v3331_v41  ;;  %2786 = vmatprep.mubr.msk.f32.mxu0 %vm231_vm1, %v3340_v44 }
  0x3e   : > { %2760 = vmatprep.mubr.msk.f32.mxu1 %vm231_vm1, %v3337_v43 }
  0x40   : > { %2787 = vmatmul.mubr.msk.f32.gmra.mxu0 %vm231_vm1, %v3354_v46 }
  0x41   : > { %2761 = vmatmul.mubr.msk.f32.gmra.mxu1 %vm231_vm1, %v3351_v45  ;;  %2789 = vmatprep.mubr.msk.f32.mxu0 %vm231_vm1, %v3360_v48 }
  0x42   : > { %2763 = vmatprep.mubr.msk.f32.mxu1 %vm231_vm1, %v3357_v47 }
  0x44   : > { %2790 = vmatmul.mubr.msk.f32.gmra.mxu0 %vm231_vm1, %v3374_v50 }
  0x45   : > { %2764 = vmatmul.mubr.msk.f32.gmra.mxu1 %vm231_vm1, %v3371_v49  ;;  %2792 = vmatprep.mubr.msk.f32.mxu0 %vm231_vm1, %v3380_v52 }
  0x46   : > { %2766 = vmatprep.mubr.msk.f32.mxu1 %vm231_vm1, %v3377_v51 }
  0x48   : > { %2793 = vmatmul.mubr.msk.f32.gmra.mxu0 %vm231_vm1, %v3394_v54 }
  0x49   : > { %2767 = vmatmul.mubr.msk.f32.gmra.mxu1 %vm231_vm1, %v3391_v53  ;;  %2823 = vmatprep.mubr.msk.f32.mxu0 %vm231_vm1, %v3167_v7 }
  0x4a   : > { %2797 = vmatprep.mubr.msk.f32.mxu1 %vm231_vm1, %v3246_v25 }
  0x4c   : > { %2824 = vmatmul.mubr.msk.f32.vlgmr.msra.gmra.mxu0 %vm231_vm1, %v3184_v11 }
  0x4d   : > { %2798 = vmatmul.mubr.msk.f32.vlgmr.msra.gmra.mxu1 %vm231_vm1, %v199_v29  ;;  %2874 = vmatpush3.msk.msra.mxu0 %vm280_vm0, %v3261_v28 }
  0x4e   : > { %2848 = vmatpush3.msk.msra.mxu1 %vm280_vm0, %v3256_v27  ;;  %2800 = vmatprep.mubr.msk.f32.mxu1 %vm231_vm1, %v3274_v31 }
  0x4f   : > { %2826 = vmatprep.mubr.msk.f32.mxu0 %vm231_vm1, %v3194_v13  ;;  %2899 = vmatprep.subr.msk.mxu1 %vm280_vm0, %v2520_v55 }
  0x50   : > { %2925 = vmatprep.subr.msk.mxu0 %vm280_vm0, %v2538_v56  ;;  %2827 = vmatmul.mubr.msk.f32.gmra.mxu0 %vm231_vm1, %v3210_v15 }
  0x51   : > { %2801 = vmatmul.mubr.msk.f32.gmra.mxu1 %vm231_vm1, %v3291_v33  ;;  %2829 = vmatprep.mubr.msk.f32.mxu0 %vm231_vm1, %v3216_v17 }
  0x52   : > { %2803 = vmatprep.mubr.msk.f32.mxu1 %vm231_vm1, %v3297_v35 }
  0x54   : > { %2830 = vmatmul.mubr.msk.f32.gmra.mxu0 %vm231_vm1, %v3230_v19 }
  0x55   : > { %2804 = vmatmul.mubr.msk.f32.gmra.mxu1 %vm231_vm1, %v3311_v37  ;;  %2832 = vmatprep.mubr.msk.f32.mxu0 %vm231_vm1, %v3157_v4 }
  0x56   : > { %2806 = vmatprep.mubr.msk.f32.mxu1 %vm231_vm1, %v3317_v39 }
  0x58   : > { %2833 = vmatmul.mubr.msk.f32.gmra.mxu0 %vm231_vm1, %v3164_v6 }
  0x59   : > { %2807 = vmatmul.mubr.msk.f32.gmra.mxu1 %vm231_vm1, %v3331_v41  ;;  %2835 = vmatprep.mubr.msk.f32.mxu0 %vm231_vm1, %v3170_v8 }
  0x5a   : > { %2809 = vmatprep.mubr.msk.f32.mxu1 %vm231_vm1, %v3337_v43 }
  0x5c   : > { %2836 = vmatmul.mubr.msk.f32.gmra.mxu0 %vm231_vm1, %v3187_v12 }
  0x5d   : > { %2810 = vmatmul.mubr.msk.f32.gmra.mxu1 %vm231_vm1, %v3351_v45  ;;  %2838 = vmatprep.mubr.msk.f32.mxu0 %vm231_vm1, %v3197_v14 }
  0x5e   : > { %2812 = vmatprep.mubr.msk.f32.mxu1 %vm231_vm1, %v3357_v47 }
  0x60   : > { %2839 = vmatmul.mubr.msk.f32.gmra.mxu0 %vm231_vm1, %v3213_v16 }
  0x61   : > { %2813 = vmatmul.mubr.msk.f32.gmra.mxu1 %vm231_vm1, %v3371_v49  ;;  %2841 = vmatprep.mubr.msk.f32.mxu0 %vm231_vm1, %v3219_v18 }
  0x62   : > { %2815 = vmatprep.mubr.msk.f32.mxu1 %vm231_vm1, %v3377_v51 }
  0x64   : > { %2842 = vmatmul.mubr.msk.f32.gmra.mxu0 %vm231_vm1, %v3233_v20 }
  0x65   : > { %2816 = vmatmul.mubr.msk.f32.gmra.mxu1 %vm231_vm1, %v3391_v53  ;;  %2844 = vmatprep.mubr.msk.f32.mxu0 %vm231_vm1, %v3465_v58 }
  0x66   : > { %2818 = vmatprep.mubr.msk.f32.mxu1 %vm231_vm1, %v869_v57 }
  0x68   : > { %2845 = vmatmul.mubr.msk.f32.gmra.mxu0 %vm231_vm1, %v3476_v60 }
  0x69   : > { %2819 = vmatmul.mubr.msk.f32.gmra.mxu1 %vm231_vm1, %v870_v59  ;;  %2875 = vmatprep.mubr.msk.f32.mxu0 %vm231_vm1, %v3274_v31 }
  0x6a   : > { %2849 = vmatprep.mubr.msk.f32.mxu1 %vm231_vm1, %v3249_v26 }
  0x6c   : > { %2876 = vmatmul.mubr.msk.f32.vlgmr.msra.gmra.mxu0 %vm231_vm1, %v3291_v33 }
  0x6d   : > { %2850 = vmatmul.mubr.msk.f32.vlgmr.msra.gmra.mxu1 %vm231_vm1, %v3267_v30  ;;  %2926 = vmatpush3.msk.msra.mxu0 %vm280_vm0, %v2538_v56 }
  0x6e   : > { %2900 = vmatpush3.msk.msra.mxu1 %vm280_vm0, %v2520_v55  ;;  %2852 = vmatprep.mubr.msk.f32.mxu1 %vm231_vm1, %v3277_v32 }
  0x6f   : > { %2878 = vmatprep.mubr.msk.f32.mxu0 %vm231_vm1, %v3297_v35 }
  0x70   : > { %2879 = vmatmul.mubr.msk.f32.gmra.mxu0 %vm231_vm1, %v3311_v37 }
  0x71   : > { %2853 = vmatmul.mubr.msk.f32.gmra.mxu1 %vm231_vm1, %v3294_v34  ;;  %2881 = vmatprep.mubr.msk.f32.mxu0 %vm231_vm1, %v3317_v39 }
  0x72   : > { %2855 = vmatprep.mubr.msk.f32.mxu1 %vm231_vm1, %v3300_v36 }
  0x74   : > { %2882 = vmatmul.mubr.msk.f32.gmra.mxu0 %vm231_vm1, %v3331_v41 }
  0x75   : > { %2856 = vmatmul.mubr.msk.f32.gmra.mxu1 %vm231_vm1, %v3314_v38  ;;  %2884 = vmatprep.mubr.msk.f32.mxu0 %vm231_vm1, %v3337_v43 }
  0x76   : > { %2858 = vmatprep.mubr.msk.f32.mxu1 %vm231_vm1, %v3320_v40 }
  0x78   : > { %2885 = vmatmul.mubr.msk.f32.gmra.mxu0 %vm231_vm1, %v3351_v45 }
  0x79   : > { %2859 = vmatmul.mubr.msk.f32.gmra.mxu1 %vm231_vm1, %v3334_v42  ;;  %2887 = vmatprep.mubr.msk.f32.mxu0 %vm231_vm1, %v3357_v47 }
  0x7a   : > { %2861 = vmatprep.mubr.msk.f32.mxu1 %vm231_vm1, %v3340_v44 }
  0x7c   : > { %2888 = vmatmul.mubr.msk.f32.gmra.mxu0 %vm231_vm1, %v3371_v49 }
  0x7d   : > { %2862 = vmatmul.mubr.msk.f32.gmra.mxu1 %vm231_vm1, %v3354_v46  ;;  %2890 = vmatprep.mubr.msk.f32.mxu0 %vm231_vm1, %v3377_v51 }
  0x7e   : > { %2864 = vmatprep.mubr.msk.f32.mxu1 %vm231_vm1, %v3360_v48 }
  0x80   : > { %2891 = vmatmul.mubr.msk.f32.gmra.mxu0 %vm231_vm1, %v3391_v53 }
  0x81   : > { %2865 = vmatmul.mubr.msk.f32.gmra.mxu1 %vm231_vm1, %v3374_v50  ;;  %2893 = vmatprep.mubr.msk.f32.mxu0 %vm231_vm1, %v869_v57 }
  0x82   : > { %2867 = vmatprep.mubr.msk.f32.mxu1 %vm231_vm1, %v3380_v52 }
  0x84   : > { %2894 = vmatmul.mubr.msk.f32.gmra.mxu0 %vm231_vm1, %v870_v59 }
  0x85   : > { %2868 = vmatmul.mubr.msk.f32.gmra.mxu1 %vm231_vm1, %v3394_v54  ;;  %2896 = vmatprep.mubr.msk.f32.mxu0 %vm231_vm1, %v1559_v62 }
  0x86   : > { %2870 = vmatprep.mubr.msk.f32.mxu1 %vm231_vm1, %v1329_v61 }
  0x88   : > { %2897 = vmatmul.mubr.msk.f32.gmra.mxu0 %vm231_vm1, %v1560_v0 }
  0x89   : > { %2871 = vmatmul.mubr.msk.f32.gmra.mxu1 %vm231_vm1, %v1330_v63  ;;  %2927 = vmatprep.mubr.msk.f32.mxu0 %vm231_vm1, %v3277_v32 }
  0x8a   : > { %2901 = vmatprep.mubr.msk.f32.mxu1 %vm231_vm1, %v3194_v13 }
  0x8c   : > { %2928 = vmatmul.mubr.msk.f32.vlgmr.msra.gmra.mxu0 %vm231_vm1, %v3294_v34 }
  0x8d   : > { %2902 = vmatmul.mubr.msk.f32.vlgmr.msra.gmra.mxu1 %vm231_vm1, %v3210_v15  ;;  %2930 = vmatprep.mubr.msk.f32.mxu0 %vm231_vm1, %v3300_v36 }
  0x8e   : > { %2904 = vmatprep.mubr.msk.f32.mxu1 %vm231_vm1, %v3216_v17 }
  0x90   : > { %2931 = vmatmul.mubr.msk.f32.gmra.mxu0 %vm231_vm1, %v3314_v38 }
  0x91   : > { %2905 = vmatmul.mubr.msk.f32.gmra.mxu1 %vm231_vm1, %v3230_v19  ;;  %2933 = vmatprep.mubr.msk.f32.mxu0 %vm231_vm1, %v3320_v40 }
  0x92   : > { %2907 = vmatprep.mubr.msk.f32.mxu1 %vm231_vm1, %v3157_v4  ;;  %v2020_v4 = vld [vmem:[%s3153_s11 + $0x9a] sm:$0xff] }
  0x94   : > { %2934 = vmatmul.mubr.msk.f32.gmra.mxu0 %vm231_vm1, %v3334_v42 }
  0x95   : > { %2908 = vmatmul.mubr.msk.f32.gmra.mxu1 %vm231_vm1, %v3164_v6  ;;  %2936 = vmatprep.mubr.msk.f32.mxu0 %vm231_vm1, %v3340_v44 }
  0x96   : > { %2910 = vmatprep.mubr.msk.f32.mxu1 %vm231_vm1, %v3170_v8 }
  0x98   : > { %2937 = vmatmul.mubr.msk.f32.gmra.mxu0 %vm231_vm1, %v3354_v46 }
  0x99   : > { %2911 = vmatmul.mubr.msk.f32.gmra.mxu1 %vm231_vm1, %v3187_v12  ;;  %2939 = vmatprep.mubr.msk.f32.mxu0 %vm231_vm1, %v3360_v48 }
  0x9a   : > { %2913 = vmatprep.mubr.msk.f32.mxu1 %vm231_vm1, %v3197_v14 }
  0x9c   : > { %2940 = vmatmul.mubr.msk.f32.gmra.mxu0 %vm231_vm1, %v3374_v50 }
  0x9d   : > { %2914 = vmatmul.mubr.msk.f32.gmra.mxu1 %vm231_vm1, %v3213_v16  ;;  %2942 = vmatprep.mubr.msk.f32.mxu0 %vm231_vm1, %v3380_v52 }
  0x9e   : > { %2916 = vmatprep.mubr.msk.f32.mxu1 %vm231_vm1, %v3219_v18 }
  0xa0   : > { %2943 = vmatmul.mubr.msk.f32.gmra.mxu0 %vm231_vm1, %v3394_v54 }
  0xa1   : > { %2917 = vmatmul.mubr.msk.f32.gmra.mxu1 %vm231_vm1, %v3233_v20  ;;  %2945 = vmatprep.mubr.msk.f32.mxu0 %vm231_vm1, %v1329_v61 }
  0xa2   : > { %2919 = vmatprep.mubr.msk.f32.mxu1 %vm231_vm1, %v3465_v58 }
  0xa4   : > { %2946 = vmatmul.mubr.msk.f32.gmra.mxu0 %vm231_vm1, %v1330_v63 }
  0xa5   : > { %2920 = vmatmul.mubr.msk.f32.gmra.mxu1 %vm231_vm1, %v3476_v60  ;;  %2948 = vmatprep.mubr.msk.f32.mxu0 %vm231_vm1, %v2019_v2 }
  0xa6   : > { %2922 = vmatprep.mubr.msk.f32.mxu1 %vm231_vm1, %v1789_v1 }
  0xa8   : > { %2949 = vmatmul.mubr.msk.f32.gmra.mxu0 %vm231_vm1, %v2020_v4 }
  0xa9   : > { %2923 = vmatmul.mubr.msk.f32.gmra.mxu1 %vm231_vm1, %v1790_v3 }
  0xdc   : > { %v2721_v5 = vpop.f32.mrf.mxu0 }
  0xdd   : > { %v2733_v6 = vpop.f32.mrf.mxu1 }
  0xde   : > { %v350_v7 = vpop.f32.mrf.mxu0 }
  0xdf   : > { %v390_v8 = vpop.f32.mrf.mxu1 }
  0xe0   : > { %v2724_v9 = vpop.f32.mrf.mxu0 }
  0xe1   : > { %v2736_v10 = vpop.f32.mrf.mxu1 }
  0xe2   : > { %v360_v11 = vpop.f32.mrf.mxu0 }
  0xe3   : > { %v400_v12 = vpop.f32.mrf.mxu1 }
  0xe4   : > { %v2727_v13 = vpop.f32.mrf.mxu0 }
  0xe5   : > { %v2739_v14 = vpop.f32.mrf.mxu1 }
  0xe6   : > { %v370_v15 = vpop.f32.mrf.mxu0 }
  0xe7   : > { %v410_v16 = vpop.f32.mrf.mxu1 }
  0xe8   : > { %v2730_v17 = vpop.f32.mrf.mxu0 }
  0xe9   : > { %v2742_v18 = vpop.f32.mrf.mxu1 }
  0xea   : > { %v380_v19 = vpop.f32.mrf.mxu0 }
  0xeb   : > { %v3607_v20 = vpop.f32.mrf.mxu1 }
  0xec   : > { %v2773_v22 = vpop.f32.mrf.mxu0 }
  0xed   : > { %v2747_v21 = vpop.f32.mrf.mxu1 }
  0xee   : > { %v552_v23 = vadd.f32 %v2747_v21, %v2721_v5  ;;  %v760_v25 = vpop.f32.mrf.mxu0 }
  0xef   : > { %v546_v24 = vpop.f32.mrf.mxu1 }
  0xf0   : > { %v3609_v26 = vadd.f32 %v2773_v22, %v552_v23  ;;  %v547_v27 = vadd.f32 %v546_v24, %v350_v7  ;;  %v2776_v29 = vpop.f32.mrf.mxu0 }
  0xf1   : > { %v2750_v28 = vpop.f32.mrf.mxu1 }
  0xf2   : > { %v3611_v30 = vadd.f32 %v760_v25, %v547_v27  ;;  %v562_v31 = vadd.f32 %v2750_v28, %v2724_v9  ;;  %v770_v33 = vpop.f32.mrf.mxu0 }
  0xf3   : > { %v556_v32 = vpop.f32.mrf.mxu1 }
  0xf4   : > { %v3613_v34 = vadd.f32 %v2776_v29, %v562_v31  ;;  %v557_v35 = vadd.f32 %v556_v32, %v360_v11  ;;  %v2779_v37 = vpop.f32.mrf.mxu0 }
  0xf5   : > { %v2753_v36 = vpop.f32.mrf.mxu1 }
  0xf6   : > { %v3615_v38 = vadd.f32 %v770_v33, %v557_v35  ;;  %v572_v39 = vadd.f32 %v2753_v36, %v2727_v13  ;;  %v780_v41 = vpop.f32.mrf.mxu0 }
  0xf7   : > { %v566_v40 = vpop.f32.mrf.mxu1 }
  0xf8   : > { %v3617_v42 = vadd.f32 %v2779_v37, %v572_v39  ;;  %v567_v43 = vadd.f32 %v566_v40, %v370_v15  ;;  %v2782_v45 = vpop.f32.mrf.mxu0 }
  0xf9   : > { %v2756_v44 = vpop.f32.mrf.mxu1 }
  0xfa   : > { %v3619_v46 = vadd.f32 %v780_v41, %v567_v43  ;;  %v582_v47 = vadd.f32 %v2756_v44, %v2730_v17  ;;  %v790_v49 = vpop.f32.mrf.mxu0 }
  0xfb   : > { %v576_v48 = vpop.f32.mrf.mxu1 }
  0xfc   : > { %v3621_v50 = vadd.f32 %v2782_v45, %v582_v47  ;;  %v577_v51 = vadd.f32 %v576_v48, %v380_v19  ;;  %v2785_v53 = vpop.f32.mrf.mxu0 }
  0xfd   : > { %v2759_v52 = vpop.f32.mrf.mxu1 }
  0xfe   : > { %v3623_v54 = vadd.f32 %v790_v49, %v577_v51  ;;  %v592_v55 = vadd.f32 %v2759_v52, %v2733_v6  ;;  %v800_v57 = vpop.f32.mrf.mxu0 }
  0xff   : > { %v586_v56 = vpop.f32.mrf.mxu1 }
 0x100   : > { %v3625_v58 = vadd.f32 %v2785_v53, %v592_v55  ;;  %v587_v59 = vadd.f32 %v586_v56, %v390_v8  ;;  %v2788_v61 = vpop.f32.mrf.mxu0 }
 0x101   : > { %v2762_v60 = vpop.f32.mrf.mxu1 }
 0x102   : > { %v3627_v62 = vadd.f32 %v800_v57, %v587_v59  ;;  %v602_v63 = vadd.f32 %v2762_v60, %v2736_v10  ;;  %v810_v1 = vpop.f32.mrf.mxu0 }
 0x103   : > { %v596_v0 = vpop.f32.mrf.mxu1 }
 0x104   : > { %v3629_v2 = vadd.f32 %v2788_v61, %v602_v63  ;;  %v597_v3 = vadd.f32 %v596_v0, %v400_v12  ;;  %v2791_v5 = vpop.f32.mrf.mxu0 }
 0x105   : > { %v2765_v4 = vpop.f32.mrf.mxu1 }
 0x106   : > { %v3631_v7 = vadd.f32 %v810_v1, %v597_v3  ;;  %v612_v6 = vadd.f32 %v2765_v4, %v2739_v14  ;;  %v820_v11 = vpop.f32.mrf.mxu0 }
 0x107   : > { %v606_v9 = vpop.f32.mrf.mxu1 }
 0x108   : > { %v3633_v13 = vadd.f32 %v2791_v5, %v612_v6  ;;  %v607_v8 = vadd.f32 %v606_v9, %v410_v16  ;;  %v2794_v17 = vpop.f32.mrf.mxu0 }
 0x109   : > { %v2768_v15 = vpop.f32.mrf.mxu1 }
 0x10a   : > { %v3635_v19 = vadd.f32 %v820_v11, %v607_v8  ;;  %v622_v10 = vadd.f32 %v2768_v15, %v2742_v18  ;;  %v830_v22 = vpop.f32.mrf.mxu0 }
 0x10b   : > { %v616_v21 = vpop.f32.mrf.mxu1 }
 0x10c   : > { %v3637_v23 = vadd.f32 %v2794_v17, %v622_v10  ;;  %v617_v12 = vadd.f32 %v616_v21, %v3607_v20  ;;  %v2825_v25 = vpop.f32.mrf.mxu0 }
 0x10d   : > { %v2799_v24 = vpop.f32.mrf.mxu1 }
 0x10e   : > { %3920 = vst [vmem:[#allocation5_spill] sm:$0xff] %v3637_v23  ;;  %v3640_v27 = vadd.f32 %v830_v22, %v617_v12  ;;  %v1220_v28 = vpop.f32.mrf.mxu0 }
 0x10f   : > { %v990_v14 = vpop.f32.mrf.mxu1 }
 0x110   : > { %3921 = vst [vmem:[#allocation6_spill] sm:$0xff] %v3640_v27  ;;  %v3642_v31 = vpop.f32.mrf.mxu0 }
 0x111   : > { %v2802_v29 = vpop.f32.mrf.mxu1 }
 0x112   : > { %v3644_v32 = vpop.f32.mrf.mxu0 }
 0x113   : > { %v1000_v16 = vpop.f32.mrf.mxu1 }
 0x114   : > { %v3648_v18 = vpop.f32.mrf.mxu0 }
 0x115   : > { %v3646_v33 = vpop.f32.mrf.mxu1 }
 0x116   : > { %v3650_v36 = vpop.f32.mrf.mxu0 }
 0x117   : > { %v1010_v35 = vpop.f32.mrf.mxu1 }
 0x118   : > { %v3652_v37 = vpop.f32.mrf.mxu0 }
 0x119   : > { %v2808_v20 = vpop.f32.mrf.mxu1 }
 0x11a   : > { %v3656_v40 = vpop.f32.mrf.mxu0 }
 0x11b   : > { %v3654_v39 = vpop.f32.mrf.mxu1 }
 0x11c   : > { %v3660_v43 = vpop.f32.mrf.mxu0 }
 0x11d   : > { %v3658_v41 = vpop.f32.mrf.mxu1 }
 0x11e   : > { %v3664_v45 = vpop.f32.mrf.mxu0 }
 0x11f   : > { %v3662_v44 = vpop.f32.mrf.mxu1 }
 0x120   : > { %v3668_v48 = vpop.f32.mrf.mxu0 }
 0x121   : > { %v3666_v47 = vpop.f32.mrf.mxu1 }
 0x122   : > { %v3672_v51 = vpop.f32.mrf.mxu0 }
 0x123   : > { %v3670_v49 = vpop.f32.mrf.mxu1  ;;  %3922 = vst [vmem:[#allocation7_spill] sm:$0xff] %v3672_v51 }
 0x124   : > { %v3676_v53 = vpop.f32.mrf.mxu0 }
 0x125   : > { %v3674_v52 = vpop.f32.mrf.mxu1  ;;  %3923 = vst [vmem:[#allocation8_spill] sm:$0xff] %v3676_v53 }
 0x126   : > { %v3680_v56 = vpop.f32.mrf.mxu0 }
 0x127   : > { %v3678_v55 = vpop.f32.mrf.mxu1  ;;  %3924 = vst [vmem:[#allocation9_spill] sm:$0xff] %v3680_v56  ;;  %v1070_v56 = vadd.f32 %v2799_v24, %v3609_v26  ;;  %v1071_v26 = vadd.f32 %v1000_v16, %v3615_v38  ;;  %v1075_v16 = vadd.f32 %v3654_v39, %v3623_v54  ;;  %v1080_v54 = vadd.f32 %v3666_v47, %v3629_v2  ;;  %v3769_v47 = vld [vmem:[%s3916_s3] ss:$0 sm:$0xff] }
 0x128   : > { %v3684_v59 = vpop.f32.mrf.mxu0 }
 0x129   : > { %v3682_v57 = vpop.f32.mrf.mxu1  ;;  %3926 = vst [vmem:[#allocation11_spill] sm:$0xff] %v3684_v59  ;;  %v1301_v38 = vadd.f32 %v3644_v32, %v1071_v26 }
 0x12a   : > { %3925 = vst [vmem:[#allocation10_spill] sm:$0xff] %v3682_v57  ;;  %v3688_v61 = vpop.f32.mrf.mxu0 }
 0x12b   : > { %v3686_v60 = vpop.f32.mrf.mxu1  ;;  %3928 = vst [vmem:[#allocation13_spill] sm:$0xff] %v3688_v61 }
 0x12c   : > { %3927 = vst [vmem:[#allocation12_spill] sm:$0xff] %v3686_v60  ;;  %v2877_v0 = vpop.f32.mrf.mxu0 }
 0x12d   : > { %v2851_v63 = vpop.f32.mrf.mxu1 }
 0x12e   : > { %v1680_v3 = vpop.f32.mrf.mxu0 }
 0x12f   : > { %v1450_v1 = vpop.f32.mrf.mxu1 }
 0x130   : > { %v2880_v5 = vpop.f32.mrf.mxu0 }
 0x131   : > { %v2854_v4 = vpop.f32.mrf.mxu1 }
 0x132   : > { %v3690_v9 = vpop.f32.mrf.mxu0 }
 0x133   : > { %v1460_v6 = vpop.f32.mrf.mxu1 }
 0x134   : > { %v3692_v8 = vpop.f32.mrf.mxu0 }
 0x135   : > { %v2857_v11 = vpop.f32.mrf.mxu1 }
 0x136   : > { %v3694_v17 = vpop.f32.mrf.mxu0 }
 0x137   : > { %v1470_v15 = vpop.f32.mrf.mxu1 }
 0x138   : > { %v3698_v21 = vpop.f32.mrf.mxu0 }
 0x139   : > { %v3696_v10 = vpop.f32.mrf.mxu1  ;;  %3929 = vst [vmem:[#allocation14_spill] sm:$0xff] %v3698_v21 }
 0x13a   : > { %v3702_v12 = vpop.f32.mrf.mxu0 }
 0x13b   : > { %v3700_v22 = vpop.f32.mrf.mxu1  ;;  %3930 = vst [vmem:[#allocation15_spill] sm:$0xff] %v3702_v12  ;;  %v1069_v12 = vadd.f32 %v990_v14, %v3611_v30 }
 0x13c   : > { %v3706_v59 = vpop.f32.mrf.mxu0 }
 0x13d   : > { %v3704_v61 = vpop.f32.mrf.mxu1  ;;  %3932 = vst [vmem:[#allocation17_spill] sm:$0xff] %v3706_v59  ;;  %v1300_v59 = vadd.f32 %v2825_v25, %v1070_v56  ;;  %v1074_v25 = vadd.f32 %v3646_v33, %v3617_v42  ;;  %v1077_v42 = vadd.f32 %v3662_v44, %v3627_v62 }
 0x13e   : > { %3931 = vst [vmem:[#allocation16_spill] sm:$0xff] %v3704_v61  ;;  %v3710_v27 = vpop.f32.mrf.mxu0 }
 0x13f   : > { %v3708_v60 = vpop.f32.mrf.mxu1  ;;  %3934 = vst [vmem:[#allocation19_spill] sm:$0xff] %v3710_v27  ;;  %v1530_v24 = vadd.f32 %v2851_v63, %v1300_v59 }
 0x140   : > { %3933 = vst [vmem:[#allocation18_spill] sm:$0xff] %v3708_v60  ;;  %v3714_v23 = vpop.f32.mrf.mxu0  ;;  %v1072_v60 = vadd.f32 %v2802_v29, %v3613_v34  ;;  %v1073_v34 = vadd.f32 %v1010_v35, %v3619_v46  ;;  %v1076_v29 = vadd.f32 %v2808_v20, %v3621_v50  ;;  %v1531_v35 = vadd.f32 %v1460_v6, %v1301_v38 }
 0x141   : > { %v3712_v57 = vpop.f32.mrf.mxu1  ;;  %3936 = vst [vmem:[#allocation21_spill] sm:$0xff] %v3714_v23  ;;  %v1299_v23 = vadd.f32 %v1220_v28, %v1069_v12  ;;  %v1760_v59 = vadd.f32 %v2877_v0, %v1530_v24 }
 0x142   : > { %3935 = vst [vmem:[#allocation20_spill] sm:$0xff] %v3712_v57  ;;  %v3719_v21 = vpop.f32.mrf.mxu0  ;;  %v1302_v30 = vadd.f32 %v3642_v31, %v1072_v60  ;;  %v1304_v60 = vadd.f32 %v3648_v18, %v1074_v25  ;;  %v1303_v32 = vadd.f32 %v3650_v36, %v1073_v34  ;;  %v1306_v63 = vadd.f32 %v3652_v37, %v1076_v29 }
 0x143   : > { %v3717_v53 = vpop.f32.mrf.mxu1  ;;  %3938 = vst [vmem:[#allocation23_spill] sm:$0xff] %v3719_v21  ;;  %v1529_v14 = vadd.f32 %v1450_v1, %v1299_v23  ;;  %v1078_v23 = vadd.f32 %v3658_v41, %v3625_v58  ;;  %v3761_v58 = vld [vmem:[%s3915_s2] ss:$0 sm:$0xff]  ;;  %v1305_v41 = vadd.f32 %v3656_v40, %v1075_v16  ;;  %v1307_v37 = vadd.f32 %v3664_v45, %v1077_v42 }
 0x144   : > { %3937 = vst [vmem:[#allocation22_spill] sm:$0xff] %v3717_v53  ;;  %v3724_v61 = vpop.f32.mrf.mxu0  ;;  %v1532_v31 = vadd.f32 %v2854_v4, %v1302_v30  ;;  %v1534_v1 = vadd.f32 %v2857_v11, %v1304_v60  ;;  %v1533_v2 = vadd.f32 %v1470_v15, %v1303_v32  ;;  %v1761_v6 = vadd.f32 %v3690_v9, %v1531_v35  ;;  %v3943_v32 = vld [vmem:[#allocation9_spill] sm:$0xff] }
 0x145   : > { %v3722_v51 = vpop.f32.mrf.mxu1  ;;  %v1759_v33 = vadd.f32 %v1680_v3, %v1529_v14  ;;  %v1308_v36 = vadd.f32 %v3660_v43, %v1078_v23  ;;  %v1310_v43 = vadd.f32 %v3668_v48, %v1080_v54  ;;  %v1079_v45 = vadd.f32 %v3670_v49, %v3631_v7  ;;  %v3940_v23 = vld [vmem:[#allocation14_spill] sm:$0xff]  ;;  %v3944_v54 = vld [vmem:[#allocation15_spill] sm:$0xff] }
 0x146   : > { %v3729_v57 = vpop.f32.mrf.mxu0  ;;  %v1762_v44 = vadd.f32 %v2880_v5, %v1532_v31  ;;  %v1082_v11 = vadd.f32 %v3674_v52, %v3633_v13  ;;  %v1536_v15 = vadd.f32 %v3696_v10, %v1306_v63  ;;  %v1081_v34 = vadd.f32 %v3678_v55, %v3635_v19 }
 0x147   : > { %v3727_v27 = vpop.f32.mrf.mxu1  ;;  %v1764_v48 = vadd.f32 %v3692_v8, %v1534_v1  ;;  %v1763_v7 = vadd.f32 %v3694_v17, %v1533_v2  ;;  %v1535_v49 = vadd.f32 %v3700_v22, %v1305_v41  ;;  %v3945_v2 = vld [vmem:[#allocation17_spill] sm:$0xff] }
 0x148   : > { %v3734_v21 = vpop.f32.mrf.mxu0  ;;  %v1766_v42 = vadd.f32 %v3940_v23, %v1536_v15  ;;  %v1311_v63 = vadd.f32 %v3943_v32, %v1081_v34  ;;  %v3950_v34 = vld [vmem:[#allocation6_spill] sm:$0xff] }
 0x149   : > { %v3732_v53 = vpop.f32.mrf.mxu1 }
 0x14a   : > { %v3743_v28 = vpop.f32.mrf.mxu0  ;;  %v1541_v32 = vadd.f32 %v3727_v27, %v1311_v63 }
 0x14b   : > { %v3741_v56 = vpop.f32.mrf.mxu1 }
 0x14c   : > { %v2929_v50 = vpop.f32.mrf.mxu0 }
 0x14d   : > { %v2903_v46 = vpop.f32.mrf.mxu1 }
 0x14e   : > { %v1990_v20 = vadd.f32 %v2903_v46, %v1760_v59  ;;  %v2140_v39 = vpop.f32.mrf.mxu0  ;;  %v3939_v59 = vld [vmem:[#allocation7_spill] sm:$0xff]  ;;  %v3941_v46 = vld [vmem:[#allocation16_spill] sm:$0xff] }
 0x14f   : > { %v1910_v62 = vpop.f32.mrf.mxu1  ;;  %v1309_v31 = vadd.f32 %v3939_v59, %v1079_v45  ;;  %v1538_v19 = vadd.f32 %v3941_v46, %v1308_v36  ;;  %v3953_v59 = vld [vmem:[#allocation19_spill] sm:$0xff] }
 0x150   : > { %v2220_v18 = vadd.f32 %v2929_v50, %v1990_v20  ;;  %v1989_v0 = vadd.f32 %v1910_v62, %v1759_v33  ;;  %v2932_v4 = vpop.f32.mrf.mxu0  ;;  %v3942_v20 = vld [vmem:[#allocation8_spill] sm:$0xff]  ;;  %v1765_v62 = vadd.f32 %v3944_v54, %v1535_v49 }
 0x151   : > { %v2906_v3 = vpop.f32.mrf.mxu1  ;;  %v1312_v60 = vadd.f32 %v3942_v20, %v1082_v11 }
 0x152   : > { %v2243_v40 = vmul.f32 %v3761_v58, %v2220_v18  ;;  %v2219_v5 = vadd.f32 %v2140_v39, %v1989_v0  ;;  %v1992_v12 = vadd.f32 %v2906_v3, %v1762_v44  ;;  %v2150_v24 = vpop.f32.mrf.mxu0  ;;  %v1768_v3 = vadd.f32 %v3945_v2, %v1538_v19 }
 0x153   : > { %v1920_v26 = vpop.f32.mrf.mxu1  ;;  %v1542_v19 = vadd.f32 %v3722_v51, %v1312_v60 }
 0x154   : > { %v2266_v9 = vadd.f32 %v3769_v47, %v2243_v40  ;;  %v2242_v30 = vmul.f32 %v3761_v58, %v2219_v5  ;;  %v2222_v14 = vadd.f32 %v2932_v4, %v1992_v12  ;;  %v1991_v25 = vadd.f32 %v1920_v26, %v1761_v6  ;;  %v2935_v52 = vpop.f32.mrf.mxu0  ;;  %v3946_v4 = vld [vmem:[#allocation18_spill] sm:$0xff]  ;;  %v3947_v40 = vld [vmem:[#allocation20_spill] sm:$0xff] }
 0x155   : > { %v2909_v13 = vpop.f32.mrf.mxu1  ;;  %v1537_v6 = vadd.f32 %v3946_v4, %v1307_v37  ;;  %v1540_v5 = vadd.f32 %v3947_v40, %v1310_v43  ;;  %v3952_v37 = vld [vmem:[#allocation22_spill] sm:$0xff]  ;;  %v1772_v2 = vadd.f32 %v3724_v61, %v1542_v19 }
 0x156   : > { %v2282_v10 = vmax.f32 %v2266_v9, 0.0  ;;  %v2265_v29 = vadd.f32 %v3769_v47, %v2242_v30  ;;  %v2245_v38 = vmul.f32 %v3761_v58, %v2222_v14  ;;  %v2221_v16 = vadd.f32 %v2150_v24, %v1991_v25  ;;  %v2160_v50 = vpop.f32.mrf.mxu0  ;;  %v3948_v30 = vld [vmem:[#allocation5_spill] sm:$0xff]  ;;  %v3949_v14 = vld [vmem:[#allocation10_spill] sm:$0xff] }
 0x157   : > { %v1994_v55 = vadd.f32 %v2909_v13, %v1764_v48  ;;  %v1930_v8 = vpop.f32.mrf.mxu1  ;;  %v1084_v25 = vadd.f32 %v3949_v14, %v3948_v30  ;;  %v3951_v48 = vld [vmem:[#allocation12_spill] sm:$0xff]  ;;  %v1539_v49 = vadd.f32 %v3952_v37, %v1309_v31  ;;  %v1767_v23 = vadd.f32 %v3953_v59, %v1537_v6 }
 0x158   : > { %2298 = vst [vmem:[%s3793_s13 + $0x8] sm:$0xff] %v2282_v10  ;;  %v2281_v17 = vmax.f32 %v2265_v29, 0.0  ;;  %v2268_v22 = vadd.f32 %v3769_v47, %v2245_v38  ;;  %v2244_v33 = vmul.f32 %v3761_v58, %v2221_v16  ;;  %v1993_v35 = vadd.f32 %v1930_v8, %v1763_v7  ;;  %v2938_v44 = vpop.f32.mrf.mxu0 }
 0x159   : > { %v2224_v39 = vadd.f32 %v2935_v52, %v1994_v55  ;;  %v2912_v41 = vpop.f32.mrf.mxu1  ;;  %v1083_v7 = vadd.f32 %v3951_v48, %v3950_v34 }
 0x15a   : > { %2297 = vst [vmem:[%s3793_s13] sm:$0xff] %v2281_v17  ;;  %v2284_v18 = vmax.f32 %v2268_v22, 0.0  ;;  %v2267_v0 = vadd.f32 %v3769_v47, %v2244_v33  ;;  %v2223_v36 = vadd.f32 %v2160_v50, %v1993_v35  ;;  %v1996_v1 = vadd.f32 %v2912_v41, %v1766_v42  ;;  %v2170_v11 = vpop.f32.mrf.mxu0  ;;  %v3954_v42 = vld [vmem:[#allocation21_spill] sm:$0xff]  ;;  %v3955_v35 = vld [vmem:[#allocation23_spill] sm:$0xff] }
 0x15b   : > { %v2247_v12 = vmul.f32 %v3761_v58, %v2224_v39  ;;  %v1940_v45 = vpop.f32.mrf.mxu1  ;;  %v1770_v46 = vadd.f32 %v3954_v42, %v1540_v5  ;;  %v1769_v20 = vadd.f32 %v3955_v35, %v1539_v49 }
 0x15c   : > { %2300 = vst [vmem:[%s3793_s13 + $0x18] sm:$0xff] %v2284_v18  ;;  %v2283_v15 = vmax.f32 %v2267_v0, 0.0  ;;  %v2246_v26 = vmul.f32 %v3761_v58, %v2223_v36  ;;  %v2226_v24 = vadd.f32 %v2938_v44, %v1996_v1  ;;  %v1995_v9 = vadd.f32 %v1940_v45, %v1765_v62  ;;  %v2941_v52 = vpop.f32.mrf.mxu0  ;;  %v3956_v18 = vld [vmem:[#allocation11_spill] sm:$0xff]  ;;  %v3957_v36 = vld [vmem:[#allocation13_spill] sm:$0xff] }
 0x15d   : > { %v2270_v43 = vadd.f32 %v3769_v47, %v2247_v12  ;;  %v2915_v13 = vpop.f32.mrf.mxu1  ;;  %v1314_v0 = vadd.f32 %v3956_v18, %v1084_v25  ;;  %v1313_v1 = vadd.f32 %v3957_v36, %v1083_v7  ;;  %v1771_v12 = vadd.f32 %v3729_v57, %v1541_v32 }
 0x15e   : > { %2299 = vst [vmem:[%s3793_s13 + $0x10] sm:$0xff] %v2283_v15  ;;  %v2269_v10 = vadd.f32 %v3769_v47, %v2246_v26  ;;  %v2249_v29 = vmul.f32 %v3761_v58, %v2226_v24  ;;  %v2225_v38 = vadd.f32 %v2170_v11, %v1995_v9  ;;  %v1998_v16 = vadd.f32 %v2915_v13, %v1768_v3  ;;  %v2180_v8 = vpop.f32.mrf.mxu0 }
 0x15f   : > { %v2286_v31 = vmax.f32 %v2270_v43, 0.0  ;;  %v1950_v55 = vpop.f32.mrf.mxu1  ;;  %v1544_v45 = vadd.f32 %v3732_v53, %v1314_v0  ;;  %v1543_v11 = vadd.f32 %v3741_v56, %v1313_v1 }
 0x160   : > { %v2285_v50 = vmax.f32 %v2269_v10, 0.0  ;;  %v2272_v17 = vadd.f32 %v3769_v47, %v2249_v29  ;;  %v2248_v22 = vmul.f32 %v3761_v58, %v2225_v38  ;;  %v2228_v33 = vadd.f32 %v2941_v52, %v1998_v16  ;;  %v2944_v39 = vpop.f32.mrf.mxu0 }
 0x161   : > { %2302 = vst [vmem:[%s3793_s13 + $0x28] sm:$0xff] %v2286_v31  ;;  %v1997_v54 = vadd.f32 %v1950_v55, %v1767_v23  ;;  %v2918_v62 = vpop.f32.mrf.mxu1  ;;  %v1774_v37 = vadd.f32 %v3734_v21, %v1544_v45  ;;  %v1773_v49 = vadd.f32 %v3743_v28, %v1543_v11 }
 0x162   : > { %2301 = vst [vmem:[%s3793_s13 + $0x20] sm:$0xff] %v2285_v50  ;;  %v2288_v51 = vmax.f32 %v2272_v17, 0.0  ;;  %v2271_v60 = vadd.f32 %v3769_v47, %v2248_v22  ;;  %v2251_v41 = vmul.f32 %v3761_v58, %v2228_v33  ;;  %v2000_v44 = vadd.f32 %v2918_v62, %v1770_v46  ;;  %v2190_v3 = vpop.f32.mrf.mxu0 }
 0x163   : > { %v2227_v27 = vadd.f32 %v2180_v8, %v1997_v54  ;;  %v1960_v63 = vpop.f32.mrf.mxu1 }
 0x164   : > { %2304 = vst [vmem:[%s3793_s13 + $0x38] sm:$0xff] %v2288_v51  ;;  %v2287_v4 = vmax.f32 %v2271_v60, 0.0  ;;  %v2274_v6 = vadd.f32 %v3769_v47, %v2251_v41  ;;  %v2230_v40 = vadd.f32 %v2944_v39, %v2000_v44  ;;  %v1999_v5 = vadd.f32 %v1960_v63, %v1769_v20  ;;  %v2947_v61 = vpop.f32.mrf.mxu0 }
 0x165   : > { %v2250_v15 = vmul.f32 %v3761_v58, %v2227_v27  ;;  %v2921_v26 = vpop.f32.mrf.mxu1 }
 0x166   : > { %2303 = vst [vmem:[%s3793_s13 + $0x30] sm:$0xff] %v2287_v4  ;;  %v2290_v24 = vmax.f32 %v2274_v6, 0.0  ;;  %v2253_v9 = vmul.f32 %v3761_v58, %v2230_v40  ;;  %v2229_v30 = vadd.f32 %v2190_v3, %v1999_v5  ;;  %v2002_v14 = vadd.f32 %v2921_v26, %v1772_v2  ;;  %v2200_v48 = vpop.f32.mrf.mxu0 }
 0x167   : > { %v2273_v25 = vadd.f32 %v3769_v47, %v2250_v15  ;;  %v1970_v34 = vpop.f32.mrf.mxu1 }
 0x168   : > { %2306 = vst [vmem:[%s3793_s13 + $0x48] sm:$0xff] %v2290_v24  ;;  %v2276_v53 = vadd.f32 %v3769_v47, %v2253_v9  ;;  %v2252_v57 = vmul.f32 %v3761_v58, %v2229_v30  ;;  %v2232_v56 = vadd.f32 %v2947_v61, %v2002_v14  ;;  %v2001_v7 = vadd.f32 %v1970_v34, %v1771_v12  ;;  %v2950_v52 = vpop.f32.mrf.mxu0 }
 0x169   : > { %v2289_v43 = vmax.f32 %v2273_v25, 0.0  ;;  %v2924_v13 = vpop.f32.mrf.mxu1 }
 0x16a   : > { %v2292_v10 = vmax.f32 %v2276_v53, 0.0  ;;  %v2275_v29 = vadd.f32 %v3769_v47, %v2252_v57  ;;  %v2255_v38 = vmul.f32 %v3761_v58, %v2232_v56  ;;  %v2231_v16 = vadd.f32 %v2200_v48, %v2001_v7  ;;  %v2210_v31 = vpop.f32.mrf.mxu0 }
 0x16b   : > { %2305 = vst [vmem:[%s3793_s13 + $0x40] sm:$0xff] %v2289_v43  ;;  %v2004_v59 = vadd.f32 %v2924_v13, %v1774_v37  ;;  %v1980_v23 = vpop.f32.mrf.mxu1 }
 0x16c   : > { %2308 = vst [vmem:[%s3793_s13 + $0x58] sm:$0xff] %v2292_v10  ;;  %v2291_v21 = vmax.f32 %v2275_v29, 0.0  ;;  %v2278_v28 = vadd.f32 %v3769_v47, %v2255_v38  ;;  %v2254_v42 = vmul.f32 %v3761_v58, %v2231_v16  ;;  %v2003_v46 = vadd.f32 %v1980_v23, %v1773_v49 }
 0x16d   : > { %v2234_v19 = vadd.f32 %v2950_v52, %v2004_v59 }
 0x16e   : > { %2307 = vst [vmem:[%s3793_s13 + $0x50] sm:$0xff] %v2291_v21  ;;  %v2294_v55 = vmax.f32 %v2278_v28, 0.0  ;;  %v2277_v8 = vadd.f32 %v3769_v47, %v2254_v42  ;;  %v2233_v50 = vadd.f32 %v2210_v31, %v2003_v46 }
 0x16f   : > { %v2257_v17 = vmul.f32 %v3761_v58, %v2234_v19 }
 0x170   : > { %2310 = vst [vmem:[%s3793_s13 + $0x68] sm:$0xff] %v2294_v55  ;;  %v2293_v22 = vmax.f32 %v2277_v8, 0.0  ;;  %v2256_v33 = vmul.f32 %v3761_v58, %v2233_v50 }
 0x171   : > { %v2280_v35 = vadd.f32 %v3769_v47, %v2257_v17 }
 0x172   : > { %2309 = vst [vmem:[%s3793_s13 + $0x60] sm:$0xff] %v2293_v22  ;;  %v2279_v20 = vadd.f32 %v3769_v47, %v2256_v33 }
 0x173   : > { %v2296_v32 = vmax.f32 %v2280_v35, 0.0 }
 0x174   : > { %v2295_v54 = vmax.f32 %v2279_v20, 0.0 }
 0x175   : > { %2312 = vst [vmem:[%s3793_s13 + $0x78] sm:$0xff] %v2296_v32 }
 0x176   : > { %2311 = vst [vmem:[%s3793_s13 + $0x70] sm:$0xff] %v2295_v54 }
 0x177   : > { %3008 = shalt.err (!%p3005_p3)
}
 0x178   : > { %s3009_s6 = scalar_lea.hbm %s3865_s27, 2048  ;;  %s3013_s9 = scalar_lea.hbm %s3917_s4, 8192 }
 0x179   : > { %p3010_p4 = scmp.ne.s32.totalorder %s3865_s27, %s3009_s6  ;;  %p3014_p9 = scmp.lt.s32.totalorder %s3865_s27, %s3917_s4 }
 0x17a   : > { %p3015_p10 = scmp.lt.s32.totalorder %s3013_s9, %s3009_s6 }
 0x17b   : > { %p3011_p7 = pnand %p3010_p4, %p3123_p5 }
 0x17c   : > { %p3016_p11 = por %p3015_p10, %p3014_p9 }
 0x17d   : > { %p3012_p8 = pneg %p3011_p7 }
 0x17f   : > { %p3017_p12 = pnand %p3016_p11, %p3012_p8 }
 0x181   : > { %3020 = shalt.err (!%p3017_p12)
}
 0x182   : > { %s3058_s12 = smov 128   ;;  %s3059_s13 = smov 8  }
 0x183   : > { %2954 = dma.vmem_to_hbm [thread:$0]  (%p3123_p5), %s3867_s20, 2048, %s3865_s27, %s3873_s19, %s3058_s12, %s3058_s12, %s3059_s13  }
 0x184 PF: > { %p2960_p13 = scmp.ge.s32.totalorder %s3055_s18, 2  ;;  %s2342_s14 = sand.u32 1, %s3043_s15  }
 0x185   : > { %s2343_s22 = scalar_lea.sflag [#allocation3], %s2342_s14 }
 0x186   : > { %p2957_p0 = pnand %p2960_p13, %p3127_p6 }
 0x188   : > { %p2958_p1 = pneg %p2957_p0 }
 0x18a   : > { %3038 = dma.done.wait (%p2958_p1), %s2343_s22, 2048  }
 0x18b   : > { %3040 = vsyncadd (%p2958_p1), %s2343_s22, 4294965248  ;;  %p14_p2 = scmp.ge.s32.totalorder %s3110_s21, 6   ;;  %s3958_s15 = smov %s3047_s16 }
 0x18c   : > { %s3959_s16 = smov %s3051_s17  ;;  %s3960_s17 = smov %s3121_s24 }
 0x18d   : > { %s3961_s18 = smov %s3110_s21  ;;  %16 = sbr.rel (!%p14_p2) target bundleno = 3 (0x3), region = 79 }
 0x192   :  { %2348 = vsyncpa [#allocation3], 1 }
 0x193   :  { %2350 = vsyncpa [#allocation3 + $0x1], 1 }

// kernel: tpu_custom_call.1
= control target key start
LH: loop header
LB: loop body
LE: loop exit
PB: predicated region body
PF: predicated region fallthrough
CT: control target
= control target key end

     0   :  { %9 = vsyncpa [#allocation3], 0  ;;  %s3913_s0 = inlined_call_operand.vmem [shape: f32[4,168,4], index: 0, kind: input, shape index: {}]   ;;  %s3914_s1 = inlined_call_operand.vmem [shape: f32[9,4,128], index: 1, kind: input, shape index: {}]   ;;  %s3915_s2 = inlined_call_operand.vmem [shape: f32[1,128], index: 2, kind: input, shape index: {}]   ;;  %s3916_s3 = inlined_call_operand.vmem [shape: f32[1,128], index: 3, kind: input, shape index: {}]   ;;  %s3917_s4 = inlined_call_operand.hbm [shape: f32[4,128,128], index: 4, kind: output, shape index: {}]  }
   0x1   :  { %11 = vsyncpa [#allocation3 + $0x1], 0  ;;  %s3085_s15 = smov 0   ;;  %s3087_s16 = smov 0  }
   0x2   :  { %s3089_s17 = smov 0   ;;  %s3091_s18 = smov 0  }
   0x3 LB: > { %s3106_s19 = sadd.s32 4294967295, %s3055_s18   ;;  %s2389_s20 = sadd.s32 4294967294, %s3055_s18   ;;  %s3055_s18 = sphi %s3091_s18, %s3961_s18   ;;  %s3051_s17 = sphi %s3089_s17, %s3960_s17   ;;  %s3047_s16 = sphi %s3087_s16, %s3959_s16   ;;  %s3043_s15 = sphi %s3085_s15, %s3958_s15  }
   0x4   : > { %s3110_s21 = sadd.s32 1, %s3055_s18   ;;  %s113_s22 = sadd.s32 1, %s3051_s17 }
   0x5   : > { %s110_s23 = ssub.s32 %s3055_s18, %s3110_s21  ;;  %p123_p0 = scmp.ne.s32.totalorder %s3051_s17, %s3047_s16 }
   0x6   : > { %p111_p1 = scmp.eq.s32.totalorder %s110_s23, 0  ;;  %p124_p2 = scmp.eq.s32.totalorder %s3106_s19, 3 }
   0x7   : > { %p129_p3 = scmp.ne.s32.totalorder %s3047_s16, %s3043_s15  ;;  %p130_p4 = scmp.eq.s32.totalorder %s2389_s20, 3 }
   0x8   : > { %s3121_s24 = scalar_select %p111_p1, %s3051_s17, %s113_s22  }
   0x9   : > { %p3123_p5 = por %p124_p2, %p123_p0  ;;  %p3127_p6 = por %p130_p4, %p129_p3 }
   0xa   : > { %p2392_p7 = scmp.ge.s32.totalorder %s3055_s18, 1  ;;  %p165_p8 = scmp.lt.s32.totalorder %s3055_s18, 5 }
   0xc   : > { %p166_p9 = pnand %p2392_p7, %p165_p8 }
   0xe   : > { %169 = sbr.rel (%p166_p9) target bundleno = 388 (0x184), region = 36 }
  0x13   : > { %v2395_v0 = vld [vmem:[%s3914_s1 + $0x4] sm:$0xf]  ;;  %vm280_vm0 = vcmask 1043456   ;;  %p191_p10 = scmp.lt.s32.totalorder %s3106_s19, 3  ;;  %v212_v1 = vld [vmem:[%s3914_s1] sm:$0xf] }
  0x14   : > { %2951 = vmatprep.subr.msk.mxu1 %vm280_vm0, %v2395_v0  ;;  %2717 = vmatprep.subr.msk.mxu0 %vm280_vm0, %v2395_v0  ;;  %v2430_v2 = vld [vmem:[%s3914_s1 + $0x8] sm:$0xf]  ;;  %vm231_vm1 = vcmask 31744   ;;  %v2448_v9 = vld [vmem:[%s3914_s1 + $0xc] sm:$0xf]  ;;  %s2563_s14 = sshll.u32 %s3106_s19, 11 }
  0x15   : > { %2952 = vmatpush3.msk.msra.mxu1 %vm280_vm0, %v2395_v0  ;;  %2718 = vmatpush3.msk.msra.mxu0 %vm280_vm0, %v2395_v0  ;;  %s192_s7 = scalar_select %p191_p10, %s3106_s19, 3  ;;  %v2466_v10 = vld [vmem:[%s3914_s1 + $0x10] sm:$0xf]  ;;  %v3256_v27 = vld [vmem:[%s3914_s1 + $0x14] sm:$0xf] }
  0x16   : > { %2743 = vmatprep.subr.msk.mxu1 %vm280_vm0, %v212_v1  ;;  %2769 = vmatprep.subr.msk.mxu0 %vm280_vm0, %v2430_v2  ;;  %v3261_v28 = vld [vmem:[%s3914_s1 + $0x18] sm:$0xf]  ;;  %v2520_v55 = vld [vmem:[%s3914_s1 + $0x1c] sm:$0xf]  ;;  %v2538_v56 = vld [vmem:[%s3914_s1 + $0x20] sm:$0xf]  ;;  %s3865_s27 = scalar_lea.hbm %s3917_s4, %s2563_s14 }
  0x17   : > { %s2953_s8 = smul.u32 168, %s192_s7  ;;  %s188_s7 = sand.u32 1, %s3047_s16  }
  0x18   : > { %s2393_s12 = sshll.u32 %s188_s7, 7  ;;  %s3873_s19 = scalar_lea.sflag [#allocation3], %s188_s7 }
  0x19   : > { %s3153_s11 = scalar_lea.vmem %s3913_s0, %s2953_s8  ;;  %s3793_s13 = scalar_lea.vmem [#allocation2], %s2393_s12 }
  0x1a   : > { %v213_v3 = vld [vmem:[%s3153_s11 + $0x1] sm:$0xff]  ;;  %v214_v5 = vld [vmem:[%s3153_s11 + $0x9] sm:$0xff]  ;;  %v3167_v7 = vld [vmem:[%s3153_s11 + $0x11] sm:$0xff]  ;;  %s2327_s20 = sshll.u32 %s3793_s13, 4  ;;  %s3057_s29 = smov [#allocation2]   ;;  %s3867_s20 = int_to_ptr.vmem [resolvable:$true] %s2327_s20 }
  0x1b   : > { %v3157_v4 = vld [vmem:[%s3153_s11 + $0x41] sm:$0xff]  ;;  %2719 = vmatprep.mubr.msk.f32.mxu0 %vm231_vm1, %v213_v3  ;;  %v3164_v6 = vld [vmem:[%s3153_s11 + $0x49] sm:$0xff]  ;;  %v3170_v8 = vld [vmem:[%s3153_s11 + $0x51] sm:$0xff]  ;;  %s2995_s28 = scalar_lea.vmem %s3867_s20, 2048  ;;  %s2999_s30 = sshll.u32 %s3057_s29, 4  ;;  %s3000_s30 = int_to_ptr.vmem [resolvable:$false] %s2999_s30 }
  0x1c   : > { %2731 = vmatprep.mubr.msk.f32.mxu1 %vm231_vm1, %v3157_v4  ;;  %2720 = vmatmul.mubr.msk.f32.vlgmr.msra.gmra.mxu0 %vm231_vm1, %v214_v5  ;;  %v3184_v11 = vld [vmem:[%s3153_s11 + $0x19] sm:$0xff]  ;;  %v3194_v13 = vld [vmem:[%s3153_s11 + $0x21] sm:$0xff]  ;;  %v3210_v15 = vld [vmem:[%s3153_s11 + $0x29] sm:$0xff]  ;;  %p2996_p11 = scmp.ne.s32.totalorder %s3867_s20, %s2995_s28  ;;  %s3001_s5 = scalar_lea.vmem %s3000_s30, 4096 }
  0x1d   : > { %2732 = vmatmul.mubr.msk.f32.vlgmr.msra.gmra.mxu1 %vm231_vm1, %v3164_v6  ;;  %2770 = vmatpush3.msk.msra.mxu0 %vm280_vm0, %v2430_v2  ;;  %v3187_v12 = vld [vmem:[%s3153_s11 + $0x59] sm:$0xff]  ;;  %v3197_v14 = vld [vmem:[%s3153_s11 + $0x61] sm:$0xff]  ;;  %v3213_v16 = vld [vmem:[%s3153_s11 + $0x69] sm:$0xff]  ;;  %p3002_p0 = scmp.lt.s32.totalorder %s3867_s20, %s3000_s30  ;;  %p3003_p1 = scmp.lt.s32.totalorder %s3001_s5, %s2995_s28 }
  0x1e   : > { %2744 = vmatpush3.msk.msra.mxu1 %vm280_vm0, %v212_v1  ;;  %2722 = vmatprep.mubr.msk.f32.mxu0 %vm231_vm1, %v3167_v7  ;;  %v3216_v17 = vld [vmem:[%s3153_s11 + $0x31] sm:$0xff]  ;;  %v3230_v19 = vld [vmem:[%s3153_s11 + $0x39] sm:$0xff]  ;;  %v625_v22 = vld [vmem:[%s3153_s11 + $0x2] sm:$0xff]  ;;  %p2997_p12 = pnand %p2996_p11, %p3123_p5 }
  0x1f   : > { %2734 = vmatprep.mubr.msk.f32.mxu1 %vm231_vm1, %v3170_v8  ;;  %2795 = vmatprep.subr.msk.mxu1 %vm280_vm0, %v2448_v9  ;;  %v3219_v18 = vld [vmem:[%s3153_s11 + $0x71] sm:$0xff]  ;;  %v3233_v20 = vld [vmem:[%s3153_s11 + $0x79] sm:$0xff]  ;;  %v197_v23 = vld [vmem:[%s3153_s11 + $0x8] sm:$0xff]  ;;  %p3004_p2 = por %p3003_p1, %p3002_p0 }
  0x20   : > { %2821 = vmatprep.subr.msk.mxu0 %vm280_vm0, %v2466_v10  ;;  %2723 = vmatmul.mubr.msk.f32.gmra.mxu0 %vm231_vm1, %v3184_v11  ;;  %v196_v21 = vld [vmem:[%s3153_s11] sm:$0xff]  ;;  %v626_v24 = vld [vmem:[%s3153_s11 + $0xa] sm:$0xff]  ;;  %v3249_v26 = vld [vmem:[%s3153_s11 + $0x12] sm:$0xff]  ;;  %p2998_p13 = pneg %p2997_p12 }
  0x21   : > { %2735 = vmatmul.mubr.msk.f32.gmra.mxu1 %vm231_vm1, %v3187_v12  ;;  %2725 = vmatprep.mubr.msk.f32.mxu0 %vm231_vm1, %v3194_v13  ;;  %v3246_v25 = vld [vmem:[%s3153_s11 + $0x10] sm:$0xff]  ;;  %v199_v29 = vld [vmem:[%s3153_s11 + $0x18] sm:$0xff]  ;;  %v3274_v31 = vld [vmem:[%s3153_s11 + $0x20] sm:$0xff] }
  0x22   : > { %2737 = vmatprep.mubr.msk.f32.mxu1 %vm231_vm1, %v3197_v14  ;;  %v3267_v30 = vld [vmem:[%s3153_s11 + $0x1a] sm:$0xff]  ;;  %v3277_v32 = vld [vmem:[%s3153_s11 + $0x22] sm:$0xff]  ;;  %v3294_v34 = vld [vmem:[%s3153_s11 + $0x2a] sm:$0xff]  ;;  %p3005_p3 = pnand %p3004_p2, %p2998_p13 }
  0x23   : > { %v3291_v33 = vld [vmem:[%s3153_s11 + $0x28] sm:$0xff]  ;;  %v3297_v35 = vld [vmem:[%s3153_s11 + $0x30] sm:$0xff]  ;;  %v3311_v37 = vld [vmem:[%s3153_s11 + $0x38] sm:$0xff] }
  0x24   : > { %2726 = vmatmul.mubr.msk.f32.gmra.mxu0 %vm231_vm1, %v3210_v15  ;;  %v3300_v36 = vld [vmem:[%s3153_s11 + $0x32] sm:$0xff]  ;;  %v3314_v38 = vld [vmem:[%s3153_s11 + $0x3a] sm:$0xff]  ;;  %v3320_v40 = vld [vmem:[%s3153_s11 + $0x42] sm:$0xff] }
  0x25   : > { %2738 = vmatmul.mubr.msk.f32.gmra.mxu1 %vm231_vm1, %v3213_v16  ;;  %2728 = vmatprep.mubr.msk.f32.mxu0 %vm231_vm1, %v3216_v17  ;;  %v3317_v39 = vld [vmem:[%s3153_s11 + $0x40] sm:$0xff]  ;;  %v3331_v41 = vld [vmem:[%s3153_s11 + $0x48] sm:$0xff]  ;;  %v3337_v43 = vld [vmem:[%s3153_s11 + $0x50] sm:$0xff] }
  0x26   : > { %2740 = vmatprep.mubr.msk.f32.mxu1 %vm231_vm1, %v3219_v18  ;;  %v3334_v42 = vld [vmem:[%s3153_s11 + $0x4a] sm:$0xff]  ;;  %v3340_v44 = vld [vmem:[%s3153_s11 + $0x52] sm:$0xff]  ;;  %v3354_v46 = vld [vmem:[%s3153_s11 + $0x5a] sm:$0xff] }
  0x27   : > { %v3351_v45 = vld [vmem:[%s3153_s11 + $0x58] sm:$0xff]  ;;  %v3357_v47 = vld [vmem:[%s3153_s11 + $0x60] sm:$0xff]  ;;  %v3371_v49 = vld [vmem:[%s3153_s11 + $0x68] sm:$0xff] }
  0x28   : > { %2729 = vmatmul.mubr.msk.f32.gmra.mxu0 %vm231_vm1, %v3230_v19  ;;  %v3360_v48 = vld [vmem:[%s3153_s11 + $0x62] sm:$0xff]  ;;  %v3374_v50 = vld [vmem:[%s3153_s11 + $0x6a] sm:$0xff]  ;;  %v3380_v52 = vld [vmem:[%s3153_s11 + $0x72] sm:$0xff] }
  0x29   : > { %2741 = vmatmul.mubr.msk.f32.gmra.mxu1 %vm231_vm1, %v3233_v20  ;;  %2771 = vmatprep.mubr.msk.f32.mxu0 %vm231_vm1, %v625_v22  ;;  %v3377_v51 = vld [vmem:[%s3153_s11 + $0x70] sm:$0xff]  ;;  %v3391_v53 = vld [vmem:[%s3153_s11 + $0x78] sm:$0xff]  ;;  %v869_v57 = vld [vmem:[%s3153_s11 + $0x80] sm:$0xff] }
  0x2a   : > { %2745 = vmatprep.mubr.msk.f32.mxu1 %vm231_vm1, %v196_v21  ;;  %v3394_v54 = vld [vmem:[%s3153_s11 + $0x7a] sm:$0xff]  ;;  %v870_v59 = vld [vmem:[%s3153_s11 + $0x88] sm:$0xff]  ;;  %v1559_v62 = vld [vmem:[%s3153_s11 + $0x90] sm:$0xff] }
  0x2b   : > { %v3465_v58 = vld [vmem:[%s3153_s11 + $0x81] sm:$0xff]  ;;  %v3476_v60 = vld [vmem:[%s3153_s11 + $0x89] sm:$0xff]  ;;  %v1560_v0 = vld [vmem:[%s3153_s11 + $0x98] sm:$0xff] }
  0x2c   : > { %2772 = vmatmul.mubr.msk.f32.vlgmr.msra.gmra.mxu0 %vm231_vm1, %v626_v24  ;;  %v1329_v61 = vld [vmem:[%s3153_s11 + $0x82] sm:$0xff]  ;;  %v1330_v63 = vld [vmem:[%s3153_s11 + $0x8a] sm:$0xff]  ;;  %v2019_v2 = vld [vmem:[%s3153_s11 + $0x92] sm:$0xff] }
  0x2d   : > { %2746 = vmatmul.mubr.msk.f32.vlgmr.msra.gmra.mxu1 %vm231_vm1, %v197_v23  ;;  %2822 = vmatpush3.msk.msra.mxu0 %vm280_vm0, %v2466_v10  ;;  %v1789_v1 = vld [vmem:[%s3153_s11 + $0x91] sm:$0xff]  ;;  %v1790_v3 = vld [vmem:[%s3153_s11 + $0x99] sm:$0xff] }
  0x2e   : > { %2796 = vmatpush3.msk.msra.mxu1 %vm280_vm0, %v2448_v9  ;;  %2748 = vmatprep.mubr.msk.f32.mxu1 %vm231_vm1, %v3246_v25 }
  0x2f   : > { %2774 = vmatprep.mubr.msk.f32.mxu0 %vm231_vm1, %v3249_v26  ;;  %2847 = vmatprep.subr.msk.mxu1 %vm280_vm0, %v3256_v27 }
  0x30   : > { %2873 = vmatprep.subr.msk.mxu0 %vm280_vm0, %v3261_v28  ;;  %2775 = vmatmul.mubr.msk.f32.gmra.mxu0 %vm231_vm1, %v3267_v30 }
  0x31   : > { %2749 = vmatmul.mubr.msk.f32.gmra.mxu1 %vm231_vm1, %v199_v29  ;;  %2777 = vmatprep.mubr.msk.f32.mxu0 %vm231_vm1, %v3277_v32 }
  0x32   : > { %2751 = vmatprep.mubr.msk.f32.mxu1 %vm231_vm1, %v3274_v31 }
  0x34   : > { %2778 = vmatmul.mubr.msk.f32.gmra.mxu0 %vm231_vm1, %v3294_v34 }
  0x35   : > { %2752 = vmatmul.mubr.msk.f32.gmra.mxu1 %vm231_vm1, %v3291_v33  ;;  %2780 = vmatprep.mubr.msk.f32.mxu0 %vm231_vm1, %v3300_v36 }
  0x36   : > { %2754 = vmatprep.mubr.msk.f32.mxu1 %vm231_vm1, %v3297_v35 }
  0x38   : > { %2781 = vmatmul.mubr.msk.f32.gmra.mxu0 %vm231_vm1, %v3314_v38 }
  0x39   : > { %2755 = vmatmul.mubr.msk.f32.gmra.mxu1 %vm231_vm1, %v3311_v37  ;;  %2783 = vmatprep.mubr.msk.f32.mxu0 %vm231_vm1, %v3320_v40 }
  0x3a   : > { %2757 = vmatprep.mubr.msk.f32.mxu1 %vm231_vm1, %v3317_v39 }
  0x3c   : > { %2784 = vmatmul.mubr.msk.f32.gmra.mxu0 %vm231_vm1, %v3334_v42 }
  0x3d   : > { %2758 = vmatmul.mubr.msk.f32.gmra.mxu1 %vm231_vm1, %v3331_v41  ;;  %2786 = vmatprep.mubr.msk.f32.mxu0 %vm231_vm1, %v3340_v44 }
  0x3e   : > { %2760 = vmatprep.mubr.msk.f32.mxu1 %vm231_vm1, %v3337_v43 }
  0x40   : > { %2787 = vmatmul.mubr.msk.f32.gmra.mxu0 %vm231_vm1, %v3354_v46 }
  0x41   : > { %2761 = vmatmul.mubr.msk.f32.gmra.mxu1 %vm231_vm1, %v3351_v45  ;;  %2789 = vmatprep.mubr.msk.f32.mxu0 %vm231_vm1, %v3360_v48 }
  0x42   : > { %2763 = vmatprep.mubr.msk.f32.mxu1 %vm231_vm1, %v3357_v47 }
  0x44   : > { %2790 = vmatmul.mubr.msk.f32.gmra.mxu0 %vm231_vm1, %v3374_v50 }
  0x45   : > { %2764 = vmatmul.mubr.msk.f32.gmra.mxu1 %vm231_vm1, %v3371_v49  ;;  %2792 = vmatprep.mubr.msk.f32.mxu0 %vm231_vm1, %v3380_v52 }
  0x46   : > { %2766 = vmatprep.mubr.msk.f32.mxu1 %vm231_vm1, %v3377_v51 }
  0x48   : > { %2793 = vmatmul.mubr.msk.f32.gmra.mxu0 %vm231_vm1, %v3394_v54 }
  0x49   : > { %2767 = vmatmul.mubr.msk.f32.gmra.mxu1 %vm231_vm1, %v3391_v53  ;;  %2823 = vmatprep.mubr.msk.f32.mxu0 %vm231_vm1, %v3167_v7 }
  0x4a   : > { %2797 = vmatprep.mubr.msk.f32.mxu1 %vm231_vm1, %v3246_v25 }
  0x4c   : > { %2824 = vmatmul.mubr.msk.f32.vlgmr.msra.gmra.mxu0 %vm231_vm1, %v3184_v11 }
  0x4d   : > { %2798 = vmatmul.mubr.msk.f32.vlgmr.msra.gmra.mxu1 %vm231_vm1, %v199_v29  ;;  %2874 = vmatpush3.msk.msra.mxu0 %vm280_vm0, %v3261_v28 }
  0x4e   : > { %2848 = vmatpush3.msk.msra.mxu1 %vm280_vm0, %v3256_v27  ;;  %2800 = vmatprep.mubr.msk.f32.mxu1 %vm231_vm1, %v3274_v31 }
  0x4f   : > { %2826 = vmatprep.mubr.msk.f32.mxu0 %vm231_vm1, %v3194_v13  ;;  %2899 = vmatprep.subr.msk.mxu1 %vm280_vm0, %v2520_v55 }
  0x50   : > { %2925 = vmatprep.subr.msk.mxu0 %vm280_vm0, %v2538_v56  ;;  %2827 = vmatmul.mubr.msk.f32.gmra.mxu0 %vm231_vm1, %v3210_v15 }
  0x51   : > { %2801 = vmatmul.mubr.msk.f32.gmra.mxu1 %vm231_vm1, %v3291_v33  ;;  %2829 = vmatprep.mubr.msk.f32.mxu0 %vm231_vm1, %v3216_v17 }
  0x52   : > { %2803 = vmatprep.mubr.msk.f32.mxu1 %vm231_vm1, %v3297_v35 }
  0x54   : > { %2830 = vmatmul.mubr.msk.f32.gmra.mxu0 %vm231_vm1, %v3230_v19 }
  0x55   : > { %2804 = vmatmul.mubr.msk.f32.gmra.mxu1 %vm231_vm1, %v3311_v37  ;;  %2832 = vmatprep.mubr.msk.f32.mxu0 %vm231_vm1, %v3157_v4 }
  0x56   : > { %2806 = vmatprep.mubr.msk.f32.mxu1 %vm231_vm1, %v3317_v39 }
  0x58   : > { %2833 = vmatmul.mubr.msk.f32.gmra.mxu0 %vm231_vm1, %v3164_v6 }
  0x59   : > { %2807 = vmatmul.mubr.msk.f32.gmra.mxu1 %vm231_vm1, %v3331_v41  ;;  %2835 = vmatprep.mubr.msk.f32.mxu0 %vm231_vm1, %v3170_v8 }
  0x5a   : > { %2809 = vmatprep.mubr.msk.f32.mxu1 %vm231_vm1, %v3337_v43 }
  0x5c   : > { %2836 = vmatmul.mubr.msk.f32.gmra.mxu0 %vm231_vm1, %v3187_v12 }
  0x5d   : > { %2810 = vmatmul.mubr.msk.f32.gmra.mxu1 %vm231_vm1, %v3351_v45  ;;  %2838 = vmatprep.mubr.msk.f32.mxu0 %vm231_vm1, %v3197_v14 }
  0x5e   : > { %2812 = vmatprep.mubr.msk.f32.mxu1 %vm231_vm1, %v3357_v47 }
  0x60   : > { %2839 = vmatmul.mubr.msk.f32.gmra.mxu0 %vm231_vm1, %v3213_v16 }
  0x61   : > { %2813 = vmatmul.mubr.msk.f32.gmra.mxu1 %vm231_vm1, %v3371_v49  ;;  %2841 = vmatprep.mubr.msk.f32.mxu0 %vm231_vm1, %v3219_v18 }
  0x62   : > { %2815 = vmatprep.mubr.msk.f32.mxu1 %vm231_vm1, %v3377_v51 }
  0x64   : > { %2842 = vmatmul.mubr.msk.f32.gmra.mxu0 %vm231_vm1, %v3233_v20 }
  0x65   : > { %2816 = vmatmul.mubr.msk.f32.gmra.mxu1 %vm231_vm1, %v3391_v53  ;;  %2844 = vmatprep.mubr.msk.f32.mxu0 %vm231_vm1, %v3465_v58 }
  0x66   : > { %2818 = vmatprep.mubr.msk.f32.mxu1 %vm231_vm1, %v869_v57 }
  0x68   : > { %2845 = vmatmul.mubr.msk.f32.gmra.mxu0 %vm231_vm1, %v3476_v60 }
  0x69   : > { %2819 = vmatmul.mubr.msk.f32.gmra.mxu1 %vm231_vm1, %v870_v59  ;;  %2875 = vmatprep.mubr.msk.f32.mxu0 %vm231_vm1, %v3274_v31 }
  0x6a   : > { %2849 = vmatprep.mubr.msk.f32.mxu1 %vm231_vm1, %v3249_v26 }
  0x6c   : > { %2876 = vmatmul.mubr.msk.f32.vlgmr.msra.gmra.mxu0 %vm231_vm1, %v3291_v33 }
  0x6d   : > { %2850 = vmatmul.mubr.msk.f32.vlgmr.msra.gmra.mxu1 %vm231_vm1, %v3267_v30  ;;  %2926 = vmatpush3.msk.msra.mxu0 %vm280_vm0, %v2538_v56 }
  0x6e   : > { %2900 = vmatpush3.msk.msra.mxu1 %vm280_vm0, %v2520_v55  ;;  %2852 = vmatprep.mubr.msk.f32.mxu1 %vm231_vm1, %v3277_v32 }
  0x6f   : > { %2878 = vmatprep.mubr.msk.f32.mxu0 %vm231_vm1, %v3297_v35 }
  0x70   : > { %2879 = vmatmul.mubr.msk.f32.gmra.mxu0 %vm231_vm1, %v3311_v37 }
  0x71   : > { %2853 = vmatmul.mubr.msk.f32.gmra.mxu1 %vm231_vm1, %v3294_v34  ;;  %2881 = vmatprep.mubr.msk.f32.mxu0 %vm231_vm1, %v3317_v39 }
  0x72   : > { %2855 = vmatprep.mubr.msk.f32.mxu1 %vm231_vm1, %v3300_v36 }
  0x74   : > { %2882 = vmatmul.mubr.msk.f32.gmra.mxu0 %vm231_vm1, %v3331_v41 }
  0x75   : > { %2856 = vmatmul.mubr.msk.f32.gmra.mxu1 %vm231_vm1, %v3314_v38  ;;  %2884 = vmatprep.mubr.msk.f32.mxu0 %vm231_vm1, %v3337_v43 }
  0x76   : > { %2858 = vmatprep.mubr.msk.f32.mxu1 %vm231_vm1, %v3320_v40 }
  0x78   : > { %2885 = vmatmul.mubr.msk.f32.gmra.mxu0 %vm231_vm1, %v3351_v45 }
  0x79   : > { %2859 = vmatmul.mubr.msk.f32.gmra.mxu1 %vm231_vm1, %v3334_v42  ;;  %2887 = vmatprep.mubr.msk.f32.mxu0 %vm231_vm1, %v3357_v47 }
  0x7a   : > { %2861 = vmatprep.mubr.msk.f32.mxu1 %vm231_vm1, %v3340_v44 }
  0x7c   : > { %2888 = vmatmul.mubr.msk.f32.gmra.mxu0 %vm231_vm1, %v3371_v49 }
  0x7d   : > { %2862 = vmatmul.mubr.msk.f32.gmra.mxu1 %vm231_vm1, %v3354_v46  ;;  %2890 = vmatprep.mubr.msk.f32.mxu0 %vm231_vm1, %v3377_v51 }
  0x7e   : > { %2864 = vmatprep.mubr.msk.f32.mxu1 %vm231_vm1, %v3360_v48 }
  0x80   : > { %2891 = vmatmul.mubr.msk.f32.gmra.mxu0 %vm231_vm1, %v3391_v53 }
  0x81   : > { %2865 = vmatmul.mubr.msk.f32.gmra.mxu1 %vm231_vm1, %v3374_v50  ;;  %2893 = vmatprep.mubr.msk.f32.mxu0 %vm231_vm1, %v869_v57 }
  0x82   : > { %2867 = vmatprep.mubr.msk.f32.mxu1 %vm231_vm1, %v3380_v52 }
  0x84   : > { %2894 = vmatmul.mubr.msk.f32.gmra.mxu0 %vm231_vm1, %v870_v59 }
  0x85   : > { %2868 = vmatmul.mubr.msk.f32.gmra.mxu1 %vm231_vm1, %v3394_v54  ;;  %2896 = vmatprep.mubr.msk.f32.mxu0 %vm231_vm1, %v1559_v62 }
  0x86   : > { %2870 = vmatprep.mubr.msk.f32.mxu1 %vm231_vm1, %v1329_v61 }
  0x88   : > { %2897 = vmatmul.mubr.msk.f32.gmra.mxu0 %vm231_vm1, %v1560_v0 }
  0x89   : > { %2871 = vmatmul.mubr.msk.f32.gmra.mxu1 %vm231_vm1, %v1330_v63  ;;  %2927 = vmatprep.mubr.msk.f32.mxu0 %vm231_vm1, %v3277_v32 }
  0x8a   : > { %2901 = vmatprep.mubr.msk.f32.mxu1 %vm231_vm1, %v3194_v13 }
  0x8c   : > { %2928 = vmatmul.mubr.msk.f32.vlgmr.msra.gmra.mxu0 %vm231_vm1, %v3294_v34 }
  0x8d   : > { %2902 = vmatmul.mubr.msk.f32.vlgmr.msra.gmra.mxu1 %vm231_vm1, %v3210_v15  ;;  %2930 = vmatprep.mubr.msk.f32.mxu0 %vm231_vm1, %v3300_v36 }
  0x8e   : > { %2904 = vmatprep.mubr.msk.f32.mxu1 %vm231_vm1, %v3216_v17 }
  0x90   : > { %2931 = vmatmul.mubr.msk.f32.gmra.mxu0 %vm231_vm1, %v3314_v38 }
  0x91   : > { %2905 = vmatmul.mubr.msk.f32.gmra.mxu1 %vm231_vm1, %v3230_v19  ;;  %2933 = vmatprep.mubr.msk.f32.mxu0 %vm231_vm1, %v3320_v40 }
  0x92   : > { %2907 = vmatprep.mubr.msk.f32.mxu1 %vm231_vm1, %v3157_v4  ;;  %v2020_v4 = vld [vmem:[%s3153_s11 + $0x9a] sm:$0xff] }
  0x94   : > { %2934 = vmatmul.mubr.msk.f32.gmra.mxu0 %vm231_vm1, %v3334_v42 }
  0x95   : > { %2908 = vmatmul.mubr.msk.f32.gmra.mxu1 %vm231_vm1, %v3164_v6  ;;  %2936 = vmatprep.mubr.msk.f32.mxu0 %vm231_vm1, %v3340_v44 }
  0x96   : > { %2910 = vmatprep.mubr.msk.f32.mxu1 %vm231_vm1, %v3170_v8 }
  0x98   : > { %2937 = vmatmul.mubr.msk.f32.gmra.mxu0 %vm231_vm1, %v3354_v46 }
  0x99   : > { %2911 = vmatmul.mubr.msk.f32.gmra.mxu1 %vm231_vm1, %v3187_v12  ;;  %2939 = vmatprep.mubr.msk.f32.mxu0 %vm231_vm1, %v3360_v48 }
  0x9a   : > { %2913 = vmatprep.mubr.msk.f32.mxu1 %vm231_vm1, %v3197_v14 }
  0x9c   : > { %2940 = vmatmul.mubr.msk.f32.gmra.mxu0 %vm231_vm1, %v3374_v50 }
  0x9d   : > { %2914 = vmatmul.mubr.msk.f32.gmra.mxu1 %vm231_vm1, %v3213_v16  ;;  %2942 = vmatprep.mubr.msk.f32.mxu0 %vm231_vm1, %v3380_v52 }
  0x9e   : > { %2916 = vmatprep.mubr.msk.f32.mxu1 %vm231_vm1, %v3219_v18 }
  0xa0   : > { %2943 = vmatmul.mubr.msk.f32.gmra.mxu0 %vm231_vm1, %v3394_v54 }
  0xa1   : > { %2917 = vmatmul.mubr.msk.f32.gmra.mxu1 %vm231_vm1, %v3233_v20  ;;  %2945 = vmatprep.mubr.msk.f32.mxu0 %vm231_vm1, %v1329_v61 }
  0xa2   : > { %2919 = vmatprep.mubr.msk.f32.mxu1 %vm231_vm1, %v3465_v58 }
  0xa4   : > { %2946 = vmatmul.mubr.msk.f32.gmra.mxu0 %vm231_vm1, %v1330_v63 }
  0xa5   : > { %2920 = vmatmul.mubr.msk.f32.gmra.mxu1 %vm231_vm1, %v3476_v60  ;;  %2948 = vmatprep.mubr.msk.f32.mxu0 %vm231_vm1, %v2019_v2 }
  0xa6   : > { %2922 = vmatprep.mubr.msk.f32.mxu1 %vm231_vm1, %v1789_v1 }
  0xa8   : > { %2949 = vmatmul.mubr.msk.f32.gmra.mxu0 %vm231_vm1, %v2020_v4 }
  0xa9   : > { %2923 = vmatmul.mubr.msk.f32.gmra.mxu1 %vm231_vm1, %v1790_v3 }
  0xdc   : > { %v2721_v5 = vpop.f32.mrf.mxu0 }
  0xdd   : > { %v2733_v6 = vpop.f32.mrf.mxu1 }
  0xde   : > { %v350_v7 = vpop.f32.mrf.mxu0 }
  0xdf   : > { %v390_v8 = vpop.f32.mrf.mxu1 }
  0xe0   : > { %v2724_v9 = vpop.f32.mrf.mxu0 }
  0xe1   : > { %v2736_v10 = vpop.f32.mrf.mxu1 }
  0xe2   : > { %v360_v11 = vpop.f32.mrf.mxu0 }
  0xe3   : > { %v400_v12 = vpop.f32.mrf.mxu1 }
  0xe4   : > { %v2727_v13 = vpop.f32.mrf.mxu0 }
  0xe5   : > { %v2739_v14 = vpop.f32.mrf.mxu1 }
  0xe6   : > { %v370_v15 = vpop.f32.mrf.mxu0 }
  0xe7   : > { %v410_v16 = vpop.f32.mrf.mxu1 }
  0xe8   : > { %v2730_v17 = vpop.f32.mrf.mxu0 }
  0xe9   : > { %v2742_v18 = vpop.f32.mrf.mxu1 }
  0xea   : > { %v380_v19 = vpop.f32.mrf.mxu0 }
  0xeb   : > { %v3607_v20 = vpop.f32.mrf.mxu1 }
  0xec   : > { %v2773_v22 = vpop.f32.mrf.mxu0 }
  0xed   : > { %v2747_v21 = vpop.f32.mrf.mxu1 }
  0xee   : > { %v552_v23 = vadd.f32 %v2747_v21, %v2721_v5  ;;  %v760_v25 = vpop.f32.mrf.mxu0 }
  0xef   : > { %v546_v24 = vpop.f32.mrf.mxu1 }
  0xf0   : > { %v3609_v26 = vadd.f32 %v2773_v22, %v552_v23  ;;  %v547_v27 = vadd.f32 %v546_v24, %v350_v7  ;;  %v2776_v29 = vpop.f32.mrf.mxu0 }
  0xf1   : > { %v2750_v28 = vpop.f32.mrf.mxu1 }
  0xf2   : > { %v3611_v30 = vadd.f32 %v760_v25, %v547_v27  ;;  %v562_v31 = vadd.f32 %v2750_v28, %v2724_v9  ;;  %v770_v33 = vpop.f32.mrf.mxu0 }
  0xf3   : > { %v556_v32 = vpop.f32.mrf.mxu1 }
  0xf4   : > { %v3613_v34 = vadd.f32 %v2776_v29, %v562_v31  ;;  %v557_v35 = vadd.f32 %v556_v32, %v360_v11  ;;  %v2779_v37 = vpop.f32.mrf.mxu0 }
  0xf5   : > { %v2753_v36 = vpop.f32.mrf.mxu1 }
  0xf6   : > { %v3615_v38 = vadd.f32 %v770_v33, %v557_v35  ;;  %v572_v39 = vadd.f32 %v2753_v36, %v2727_v13  ;;  %v780_v41 = vpop.f32.mrf.mxu0 }
  0xf7   : > { %v566_v40 = vpop.f32.mrf.mxu1 }
  0xf8   : > { %v3617_v42 = vadd.f32 %v2779_v37, %v572_v39  ;;  %v567_v43 = vadd.f32 %v566_v40, %v370_v15  ;;  %v2782_v45 = vpop.f32.mrf.mxu0 }
  0xf9   : > { %v2756_v44 = vpop.f32.mrf.mxu1 }
  0xfa   : > { %v3619_v46 = vadd.f32 %v780_v41, %v567_v43  ;;  %v582_v47 = vadd.f32 %v2756_v44, %v2730_v17  ;;  %v790_v49 = vpop.f32.mrf.mxu0 }
  0xfb   : > { %v576_v48 = vpop.f32.mrf.mxu1 }
  0xfc   : > { %v3621_v50 = vadd.f32 %v2782_v45, %v582_v47  ;;  %v577_v51 = vadd.f32 %v576_v48, %v380_v19  ;;  %v2785_v53 = vpop.f32.mrf.mxu0 }
  0xfd   : > { %v2759_v52 = vpop.f32.mrf.mxu1 }
  0xfe   : > { %v3623_v54 = vadd.f32 %v790_v49, %v577_v51  ;;  %v592_v55 = vadd.f32 %v2759_v52, %v2733_v6  ;;  %v800_v57 = vpop.f32.mrf.mxu0 }
  0xff   : > { %v586_v56 = vpop.f32.mrf.mxu1 }
 0x100   : > { %v3625_v58 = vadd.f32 %v2785_v53, %v592_v55  ;;  %v587_v59 = vadd.f32 %v586_v56, %v390_v8  ;;  %v2788_v61 = vpop.f32.mrf.mxu0 }
 0x101   : > { %v2762_v60 = vpop.f32.mrf.mxu1 }
 0x102   : > { %v3627_v62 = vadd.f32 %v800_v57, %v587_v59  ;;  %v602_v63 = vadd.f32 %v2762_v60, %v2736_v10  ;;  %v810_v1 = vpop.f32.mrf.mxu0 }
 0x103   : > { %v596_v0 = vpop.f32.mrf.mxu1 }
 0x104   : > { %v3629_v2 = vadd.f32 %v2788_v61, %v602_v63  ;;  %v597_v3 = vadd.f32 %v596_v0, %v400_v12  ;;  %v2791_v5 = vpop.f32.mrf.mxu0 }
 0x105   : > { %v2765_v4 = vpop.f32.mrf.mxu1 }
 0x106   : > { %v3631_v7 = vadd.f32 %v810_v1, %v597_v3  ;;  %v612_v6 = vadd.f32 %v2765_v4, %v2739_v14  ;;  %v820_v11 = vpop.f32.mrf.mxu0 }
 0x107   : > { %v606_v9 = vpop.f32.mrf.mxu1 }
 0x108   : > { %v3633_v13 = vadd.f32 %v2791_v5, %v612_v6  ;;  %v607_v8 = vadd.f32 %v606_v9, %v410_v16  ;;  %v2794_v17 = vpop.f32.mrf.mxu0 }
 0x109   : > { %v2768_v15 = vpop.f32.mrf.mxu1 }
 0x10a   : > { %v3635_v19 = vadd.f32 %v820_v11, %v607_v8  ;;  %v622_v10 = vadd.f32 %v2768_v15, %v2742_v18  ;;  %v830_v22 = vpop.f32.mrf.mxu0 }
 0x10b   : > { %v616_v21 = vpop.f32.mrf.mxu1 }
 0x10c   : > { %v3637_v23 = vadd.f32 %v2794_v17, %v622_v10  ;;  %v617_v12 = vadd.f32 %v616_v21, %v3607_v20  ;;  %v2825_v25 = vpop.f32.mrf.mxu0 }
 0x10d   : > { %v2799_v24 = vpop.f32.mrf.mxu1 }
 0x10e   : > { %3920 = vst [vmem:[#allocation5_spill] sm:$0xff] %v3637_v23  ;;  %v3640_v27 = vadd.f32 %v830_v22, %v617_v12  ;;  %v1220_v28 = vpop.f32.mrf.mxu0 }
 0x10f   : > { %v990_v14 = vpop.f32.mrf.mxu1 }
 0x110   : > { %3921 = vst [vmem:[#allocation6_spill] sm:$0xff] %v3640_v27  ;;  %v3642_v31 = vpop.f32.mrf.mxu0 }
 0x111   : > { %v2802_v29 = vpop.f32.mrf.mxu1 }
 0x112   : > { %v3644_v32 = vpop.f32.mrf.mxu0 }
 0x113   : > { %v1000_v16 = vpop.f32.mrf.mxu1 }
 0x114   : > { %v3648_v18 = vpop.f32.mrf.mxu0 }
 0x115   : > { %v3646_v33 = vpop.f32.mrf.mxu1 }
 0x116   : > { %v3650_v36 = vpop.f32.mrf.mxu0 }
 0x117   : > { %v1010_v35 = vpop.f32.mrf.mxu1 }
 0x118   : > { %v3652_v37 = vpop.f32.mrf.mxu0 }
 0x119   : > { %v2808_v20 = vpop.f32.mrf.mxu1 }
 0x11a   : > { %v3656_v40 = vpop.f32.mrf.mxu0 }
 0x11b   : > { %v3654_v39 = vpop.f32.mrf.mxu1 }
 0x11c   : > { %v3660_v43 = vpop.f32.mrf.mxu0 }
 0x11d   : > { %v3658_v41 = vpop.f32.mrf.mxu1 }
 0x11e   : > { %v3664_v45 = vpop.f32.mrf.mxu0 }
 0x11f   : > { %v3662_v44 = vpop.f32.mrf.mxu1 }
 0x120   : > { %v3668_v48 = vpop.f32.mrf.mxu0 }
 0x121   : > { %v3666_v47 = vpop.f32.mrf.mxu1 }
 0x122   : > { %v3672_v51 = vpop.f32.mrf.mxu0 }
 0x123   : > { %v3670_v49 = vpop.f32.mrf.mxu1  ;;  %3922 = vst [vmem:[#allocation7_spill] sm:$0xff] %v3672_v51 }
 0x124   : > { %v3676_v53 = vpop.f32.mrf.mxu0 }
 0x125   : > { %v3674_v52 = vpop.f32.mrf.mxu1  ;;  %3923 = vst [vmem:[#allocation8_spill] sm:$0xff] %v3676_v53 }
 0x126   : > { %v3680_v56 = vpop.f32.mrf.mxu0 }
 0x127   : > { %v3678_v55 = vpop.f32.mrf.mxu1  ;;  %3924 = vst [vmem:[#allocation9_spill] sm:$0xff] %v3680_v56  ;;  %v1070_v56 = vadd.f32 %v2799_v24, %v3609_v26  ;;  %v1071_v26 = vadd.f32 %v1000_v16, %v3615_v38  ;;  %v1075_v16 = vadd.f32 %v3654_v39, %v3623_v54  ;;  %v1080_v54 = vadd.f32 %v3666_v47, %v3629_v2  ;;  %v3769_v47 = vld [vmem:[%s3916_s3] ss:$0 sm:$0xff] }
 0x128   : > { %v3684_v59 = vpop.f32.mrf.mxu0 }
 0x129   : > { %v3682_v57 = vpop.f32.mrf.mxu1  ;;  %3926 = vst [vmem:[#allocation11_spill] sm:$0xff] %v3684_v59  ;;  %v1301_v38 = vadd.f32 %v3644_v32, %v1071_v26 }
 0x12a   : > { %3925 = vst [vmem:[#allocation10_spill] sm:$0xff] %v3682_v57  ;;  %v3688_v61 = vpop.f32.mrf.mxu0 }
 0x12b   : > { %v3686_v60 = vpop.f32.mrf.mxu1  ;;  %3928 = vst [vmem:[#allocation13_spill] sm:$0xff] %v3688_v61 }
 0x12c   : > { %3927 = vst [vmem:[#allocation12_spill] sm:$0xff] %v3686_v60  ;;  %v2877_v0 = vpop.f32.mrf.mxu0 }
 0x12d   : > { %v2851_v63 = vpop.f32.mrf.mxu1 }
 0x12e   : > { %v1680_v3 = vpop.f32.mrf.mxu0 }
 0x12f   : > { %v1450_v1 = vpop.f32.mrf.mxu1 }
 0x130   : > { %v2880_v5 = vpop.f32.mrf.mxu0 }
 0x131   : > { %v2854_v4 = vpop.f32.mrf.mxu1 }
 0x132   : > { %v3690_v9 = vpop.f32.mrf.mxu0 }
 0x133   : > { %v1460_v6 = vpop.f32.mrf.mxu1 }
 0x134   : > { %v3692_v8 = vpop.f32.mrf.mxu0 }
 0x135   : > { %v2857_v11 = vpop.f32.mrf.mxu1 }
 0x136   : > { %v3694_v17 = vpop.f32.mrf.mxu0 }
 0x137   : > { %v1470_v15 = vpop.f32.mrf.mxu1 }
 0x138   : > { %v3698_v21 = vpop.f32.mrf.mxu0 }
 0x139   : > { %v3696_v10 = vpop.f32.mrf.mxu1  ;;  %3929 = vst [vmem:[#allocation14_spill] sm:$0xff] %v3698_v21 }
 0x13a   : > { %v3702_v12 = vpop.f32.mrf.mxu0 }
 0x13b   : > { %v3700_v22 = vpop.f32.mrf.mxu1  ;;  %3930 = vst [vmem:[#allocation15_spill] sm:$0xff] %v3702_v12  ;;  %v1069_v12 = vadd.f32 %v990_v14, %v3611_v30 }
 0x13c   : > { %v3706_v59 = vpop.f32.mrf.mxu0 }
 0x13d   : > { %v3704_v61 = vpop.f32.mrf.mxu1  ;;  %3932 = vst [vmem:[#allocation17_spill] sm:$0xff] %v3706_v59  ;;  %v1300_v59 = vadd.f32 %v2825_v25, %v1070_v56  ;;  %v1074_v25 = vadd.f32 %v3646_v33, %v3617_v42  ;;  %v1077_v42 = vadd.f32 %v3662_v44, %v3627_v62 }
 0x13e   : > { %3931 = vst [vmem:[#allocation16_spill] sm:$0xff] %v3704_v61  ;;  %v3710_v27 = vpop.f32.mrf.mxu0 }
 0x13f   : > { %v3708_v60 = vpop.f32.mrf.mxu1  ;;  %3934 = vst [vmem:[#allocation19_spill] sm:$0xff] %v3710_v27  ;;  %v1530_v24 = vadd.f32 %v2851_v63, %v1300_v59 }
 0x140   : > { %3933 = vst [vmem:[#allocation18_spill] sm:$0xff] %v3708_v60  ;;  %v3714_v23 = vpop.f32.mrf.mxu0  ;;  %v1072_v60 = vadd.f32 %v2802_v29, %v3613_v34  ;;  %v1073_v34 = vadd.f32 %v1010_v35, %v3619_v46  ;;  %v1076_v29 = vadd.f32 %v2808_v20, %v3621_v50  ;;  %v1531_v35 = vadd.f32 %v1460_v6, %v1301_v38 }
 0x141   : > { %v3712_v57 = vpop.f32.mrf.mxu1  ;;  %3936 = vst [vmem:[#allocation21_spill] sm:$0xff] %v3714_v23  ;;  %v1299_v23 = vadd.f32 %v1220_v28, %v1069_v12  ;;  %v1760_v59 = vadd.f32 %v2877_v0, %v1530_v24 }
 0x142   : > { %3935 = vst [vmem:[#allocation20_spill] sm:$0xff] %v3712_v57  ;;  %v3719_v21 = vpop.f32.mrf.mxu0  ;;  %v1302_v30 = vadd.f32 %v3642_v31, %v1072_v60  ;;  %v1304_v60 = vadd.f32 %v3648_v18, %v1074_v25  ;;  %v1303_v32 = vadd.f32 %v3650_v36, %v1073_v34  ;;  %v1306_v63 = vadd.f32 %v3652_v37, %v1076_v29 }
 0x143   : > { %v3717_v53 = vpop.f32.mrf.mxu1  ;;  %3938 = vst [vmem:[#allocation23_spill] sm:$0xff] %v3719_v21  ;;  %v1529_v14 = vadd.f32 %v1450_v1, %v1299_v23  ;;  %v1078_v23 = vadd.f32 %v3658_v41, %v3625_v58  ;;  %v3761_v58 = vld [vmem:[%s3915_s2] ss:$0 sm:$0xff]  ;;  %v1305_v41 = vadd.f32 %v3656_v40, %v1075_v16  ;;  %v1307_v37 = vadd.f32 %v3664_v45, %v1077_v42 }
 0x144   : > { %3937 = vst [vmem:[#allocation22_spill] sm:$0xff] %v3717_v53  ;;  %v3724_v61 = vpop.f32.mrf.mxu0  ;;  %v1532_v31 = vadd.f32 %v2854_v4, %v1302_v30  ;;  %v1534_v1 = vadd.f32 %v2857_v11, %v1304_v60  ;;  %v1533_v2 = vadd.f32 %v1470_v15, %v1303_v32  ;;  %v1761_v6 = vadd.f32 %v3690_v9, %v1531_v35  ;;  %v3943_v32 = vld [vmem:[#allocation9_spill] sm:$0xff] }
 0x145   : > { %v3722_v51 = vpop.f32.mrf.mxu1  ;;  %v1759_v33 = vadd.f32 %v1680_v3, %v1529_v14  ;;  %v1308_v36 = vadd.f32 %v3660_v43, %v1078_v23  ;;  %v1310_v43 = vadd.f32 %v3668_v48, %v1080_v54  ;;  %v1079_v45 = vadd.f32 %v3670_v49, %v3631_v7  ;;  %v3940_v23 = vld [vmem:[#allocation14_spill] sm:$0xff]  ;;  %v3944_v54 = vld [vmem:[#allocation15_spill] sm:$0xff] }
 0x146   : > { %v3729_v57 = vpop.f32.mrf.mxu0  ;;  %v1762_v44 = vadd.f32 %v2880_v5, %v1532_v31  ;;  %v1082_v11 = vadd.f32 %v3674_v52, %v3633_v13  ;;  %v1536_v15 = vadd.f32 %v3696_v10, %v1306_v63  ;;  %v1081_v34 = vadd.f32 %v3678_v55, %v3635_v19 }
 0x147   : > { %v3727_v27 = vpop.f32.mrf.mxu1  ;;  %v1764_v48 = vadd.f32 %v3692_v8, %v1534_v1  ;;  %v1763_v7 = vadd.f32 %v3694_v17, %v1533_v2  ;;  %v1535_v49 = vadd.f32 %v3700_v22, %v1305_v41  ;;  %v3945_v2 = vld [vmem:[#allocation17_spill] sm:$0xff] }
 0x148   : > { %v3734_v21 = vpop.f32.mrf.mxu0  ;;  %v1766_v42 = vadd.f32 %v3940_v23, %v1536_v15  ;;  %v1311_v63 = vadd.f32 %v3943_v32, %v1081_v34  ;;  %v3950_v34 = vld [vmem:[#allocation6_spill] sm:$0xff] }
 0x149   : > { %v3732_v53 = vpop.f32.mrf.mxu1 }
 0x14a   : > { %v3743_v28 = vpop.f32.mrf.mxu0  ;;  %v1541_v32 = vadd.f32 %v3727_v27, %v1311_v63 }
 0x14b   : > { %v3741_v56 = vpop.f32.mrf.mxu1 }
 0x14c   : > { %v2929_v50 = vpop.f32.mrf.mxu0 }
 0x14d   : > { %v2903_v46 = vpop.f32.mrf.mxu1 }
 0x14e   : > { %v1990_v20 = vadd.f32 %v2903_v46, %v1760_v59  ;;  %v2140_v39 = vpop.f32.mrf.mxu0  ;;  %v3939_v59 = vld [vmem:[#allocation7_spill] sm:$0xff]  ;;  %v3941_v46 = vld [vmem:[#allocation16_spill] sm:$0xff] }
 0x14f   : > { %v1910_v62 = vpop.f32.mrf.mxu1  ;;  %v1309_v31 = vadd.f32 %v3939_v59, %v1079_v45  ;;  %v1538_v19 = vadd.f32 %v3941_v46, %v1308_v36  ;;  %v3953_v59 = vld [vmem:[#allocation19_spill] sm:$0xff] }
 0x150   : > { %v2220_v18 = vadd.f32 %v2929_v50, %v1990_v20  ;;  %v1989_v0 = vadd.f32 %v1910_v62, %v1759_v33  ;;  %v2932_v4 = vpop.f32.mrf.mxu0  ;;  %v3942_v20 = vld [vmem:[#allocation8_spill] sm:$0xff]  ;;  %v1765_v62 = vadd.f32 %v3944_v54, %v1535_v49 }
 0x151   : > { %v2906_v3 = vpop.f32.mrf.mxu1  ;;  %v1312_v60 = vadd.f32 %v3942_v20, %v1082_v11 }
 0x152   : > { %v2243_v40 = vmul.f32 %v3761_v58, %v2220_v18  ;;  %v2219_v5 = vadd.f32 %v2140_v39, %v1989_v0  ;;  %v1992_v12 = vadd.f32 %v2906_v3, %v1762_v44  ;;  %v2150_v24 = vpop.f32.mrf.mxu0  ;;  %v1768_v3 = vadd.f32 %v3945_v2, %v1538_v19 }
 0x153   : > { %v1920_v26 = vpop.f32.mrf.mxu1  ;;  %v1542_v19 = vadd.f32 %v3722_v51, %v1312_v60 }
 0x154   : > { %v2266_v9 = vadd.f32 %v3769_v47, %v2243_v40  ;;  %v2242_v30 = vmul.f32 %v3761_v58, %v2219_v5  ;;  %v2222_v14 = vadd.f32 %v2932_v4, %v1992_v12  ;;  %v1991_v25 = vadd.f32 %v1920_v26, %v1761_v6  ;;  %v2935_v52 = vpop.f32.mrf.mxu0  ;;  %v3946_v4 = vld [vmem:[#allocation18_spill] sm:$0xff]  ;;  %v3947_v40 = vld [vmem:[#allocation20_spill] sm:$0xff] }
 0x155   : > { %v2909_v13 = vpop.f32.mrf.mxu1  ;;  %v1537_v6 = vadd.f32 %v3946_v4, %v1307_v37  ;;  %v1540_v5 = vadd.f32 %v3947_v40, %v1310_v43  ;;  %v3952_v37 = vld [vmem:[#allocation22_spill] sm:$0xff]  ;;  %v1772_v2 = vadd.f32 %v3724_v61, %v1542_v19 }
 0x156   : > { %v2282_v10 = vmax.f32 %v2266_v9, 0.0  ;;  %v2265_v29 = vadd.f32 %v3769_v47, %v2242_v30  ;;  %v2245_v38 = vmul.f32 %v3761_v58, %v2222_v14  ;;  %v2221_v16 = vadd.f32 %v2150_v24, %v1991_v25  ;;  %v2160_v50 = vpop.f32.mrf.mxu0  ;;  %v3948_v30 = vld [vmem:[#allocation5_spill] sm:$0xff]  ;;  %v3949_v14 = vld [vmem:[#allocation10_spill] sm:$0xff] }
 0x157   : > { %v1994_v55 = vadd.f32 %v2909_v13, %v1764_v48  ;;  %v1930_v8 = vpop.f32.mrf.mxu1  ;;  %v1084_v25 = vadd.f32 %v3949_v14, %v3948_v30  ;;  %v3951_v48 = vld [vmem:[#allocation12_spill] sm:$0xff]  ;;  %v1539_v49 = vadd.f32 %v3952_v37, %v1309_v31  ;;  %v1767_v23 = vadd.f32 %v3953_v59, %v1537_v6 }
 0x158   : > { %2298 = vst [vmem:[%s3793_s13 + $0x8] sm:$0xff] %v2282_v10  ;;  %v2281_v17 = vmax.f32 %v2265_v29, 0.0  ;;  %v2268_v22 = vadd.f32 %v3769_v47, %v2245_v38  ;;  %v2244_v33 = vmul.f32 %v3761_v58, %v2221_v16  ;;  %v1993_v35 = vadd.f32 %v1930_v8, %v1763_v7  ;;  %v2938_v44 = vpop.f32.mrf.mxu0 }
 0x159   : > { %v2224_v39 = vadd.f32 %v2935_v52, %v1994_v55  ;;  %v2912_v41 = vpop.f32.mrf.mxu1  ;;  %v1083_v7 = vadd.f32 %v3951_v48, %v3950_v34 }
 0x15a   : > { %2297 = vst [vmem:[%s3793_s13] sm:$0xff] %v2281_v17  ;;  %v2284_v18 = vmax.f32 %v2268_v22, 0.0  ;;  %v2267_v0 = vadd.f32 %v3769_v47, %v2244_v33  ;;  %v2223_v36 = vadd.f32 %v2160_v50, %v1993_v35  ;;  %v1996_v1 = vadd.f32 %v2912_v41, %v1766_v42  ;;  %v2170_v11 = vpop.f32.mrf.mxu0  ;;  %v3954_v42 = vld [vmem:[#allocation21_spill] sm:$0xff]  ;;  %v3955_v35 = vld [vmem:[#allocation23_spill] sm:$0xff] }
 0x15b   : > { %v2247_v12 = vmul.f32 %v3761_v58, %v2224_v39  ;;  %v1940_v45 = vpop.f32.mrf.mxu1  ;;  %v1770_v46 = vadd.f32 %v3954_v42, %v1540_v5  ;;  %v1769_v20 = vadd.f32 %v3955_v35, %v1539_v49 }
 0x15c   : > { %2300 = vst [vmem:[%s3793_s13 + $0x18] sm:$0xff] %v2284_v18  ;;  %v2283_v15 = vmax.f32 %v2267_v0, 0.0  ;;  %v2246_v26 = vmul.f32 %v3761_v58, %v2223_v36  ;;  %v2226_v24 = vadd.f32 %v2938_v44, %v1996_v1  ;;  %v1995_v9 = vadd.f32 %v1940_v45, %v1765_v62  ;;  %v2941_v52 = vpop.f32.mrf.mxu0  ;;  %v3956_v18 = vld [vmem:[#allocation11_spill] sm:$0xff]  ;;  %v3957_v36 = vld [vmem:[#allocation13_spill] sm:$0xff] }
 0x15d   : > { %v2270_v43 = vadd.f32 %v3769_v47, %v2247_v12  ;;  %v2915_v13 = vpop.f32.mrf.mxu1  ;;  %v1314_v0 = vadd.f32 %v3956_v18, %v1084_v25  ;;  %v1313_v1 = vadd.f32 %v3957_v36, %v1083_v7  ;;  %v1771_v12 = vadd.f32 %v3729_v57, %v1541_v32 }
 0x15e   : > { %2299 = vst [vmem:[%s3793_s13 + $0x10] sm:$0xff] %v2283_v15  ;;  %v2269_v10 = vadd.f32 %v3769_v47, %v2246_v26  ;;  %v2249_v29 = vmul.f32 %v3761_v58, %v2226_v24  ;;  %v2225_v38 = vadd.f32 %v2170_v11, %v1995_v9  ;;  %v1998_v16 = vadd.f32 %v2915_v13, %v1768_v3  ;;  %v2180_v8 = vpop.f32.mrf.mxu0 }
 0x15f   : > { %v2286_v31 = vmax.f32 %v2270_v43, 0.0  ;;  %v1950_v55 = vpop.f32.mrf.mxu1  ;;  %v1544_v45 = vadd.f32 %v3732_v53, %v1314_v0  ;;  %v1543_v11 = vadd.f32 %v3741_v56, %v1313_v1 }
 0x160   : > { %v2285_v50 = vmax.f32 %v2269_v10, 0.0  ;;  %v2272_v17 = vadd.f32 %v3769_v47, %v2249_v29  ;;  %v2248_v22 = vmul.f32 %v3761_v58, %v2225_v38  ;;  %v2228_v33 = vadd.f32 %v2941_v52, %v1998_v16  ;;  %v2944_v39 = vpop.f32.mrf.mxu0 }
 0x161   : > { %2302 = vst [vmem:[%s3793_s13 + $0x28] sm:$0xff] %v2286_v31  ;;  %v1997_v54 = vadd.f32 %v1950_v55, %v1767_v23  ;;  %v2918_v62 = vpop.f32.mrf.mxu1  ;;  %v1774_v37 = vadd.f32 %v3734_v21, %v1544_v45  ;;  %v1773_v49 = vadd.f32 %v3743_v28, %v1543_v11 }
 0x162   : > { %2301 = vst [vmem:[%s3793_s13 + $0x20] sm:$0xff] %v2285_v50  ;;  %v2288_v51 = vmax.f32 %v2272_v17, 0.0  ;;  %v2271_v60 = vadd.f32 %v3769_v47, %v2248_v22  ;;  %v2251_v41 = vmul.f32 %v3761_v58, %v2228_v33  ;;  %v2000_v44 = vadd.f32 %v2918_v62, %v1770_v46  ;;  %v2190_v3 = vpop.f32.mrf.mxu0 }
 0x163   : > { %v2227_v27 = vadd.f32 %v2180_v8, %v1997_v54  ;;  %v1960_v63 = vpop.f32.mrf.mxu1 }
 0x164   : > { %2304 = vst [vmem:[%s3793_s13 + $0x38] sm:$0xff] %v2288_v51  ;;  %v2287_v4 = vmax.f32 %v2271_v60, 0.0  ;;  %v2274_v6 = vadd.f32 %v3769_v47, %v2251_v41  ;;  %v2230_v40 = vadd.f32 %v2944_v39, %v2000_v44  ;;  %v1999_v5 = vadd.f32 %v1960_v63, %v1769_v20  ;;  %v2947_v61 = vpop.f32.mrf.mxu0 }
 0x165   : > { %v2250_v15 = vmul.f32 %v3761_v58, %v2227_v27  ;;  %v2921_v26 = vpop.f32.mrf.mxu1 }
 0x166   : > { %2303 = vst [vmem:[%s3793_s13 + $0x30] sm:$0xff] %v2287_v4  ;;  %v2290_v24 = vmax.f32 %v2274_v6, 0.0  ;;  %v2253_v9 = vmul.f32 %v3761_v58, %v2230_v40  ;;  %v2229_v30 = vadd.f32 %v2190_v3, %v1999_v5  ;;  %v2002_v14 = vadd.f32 %v2921_v26, %v1772_v2  ;;  %v2200_v48 = vpop.f32.mrf.mxu0 }
 0x167   : > { %v2273_v25 = vadd.f32 %v3769_v47, %v2250_v15  ;;  %v1970_v34 = vpop.f32.mrf.mxu1 }
 0x168   : > { %2306 = vst [vmem:[%s3793_s13 + $0x48] sm:$0xff] %v2290_v24  ;;  %v2276_v53 = vadd.f32 %v3769_v47, %v2253_v9  ;;  %v2252_v57 = vmul.f32 %v3761_v58, %v2229_v30  ;;  %v2232_v56 = vadd.f32 %v2947_v61, %v2002_v14  ;;  %v2001_v7 = vadd.f32 %v1970_v34, %v1771_v12  ;;  %v2950_v52 = vpop.f32.mrf.mxu0 }
 0x169   : > { %v2289_v43 = vmax.f32 %v2273_v25, 0.0  ;;  %v2924_v13 = vpop.f32.mrf.mxu1 }
 0x16a   : > { %v2292_v10 = vmax.f32 %v2276_v53, 0.0  ;;  %v2275_v29 = vadd.f32 %v3769_v47, %v2252_v57  ;;  %v2255_v38 = vmul.f32 %v3761_v58, %v2232_v56  ;;  %v2231_v16 = vadd.f32 %v2200_v48, %v2001_v7  ;;  %v2210_v31 = vpop.f32.mrf.mxu0 }
 0x16b   : > { %2305 = vst [vmem:[%s3793_s13 + $0x40] sm:$0xff] %v2289_v43  ;;  %v2004_v59 = vadd.f32 %v2924_v13, %v1774_v37  ;;  %v1980_v23 = vpop.f32.mrf.mxu1 }
 0x16c   : > { %2308 = vst [vmem:[%s3793_s13 + $0x58] sm:$0xff] %v2292_v10  ;;  %v2291_v21 = vmax.f32 %v2275_v29, 0.0  ;;  %v2278_v28 = vadd.f32 %v3769_v47, %v2255_v38  ;;  %v2254_v42 = vmul.f32 %v3761_v58, %v2231_v16  ;;  %v2003_v46 = vadd.f32 %v1980_v23, %v1773_v49 }
 0x16d   : > { %v2234_v19 = vadd.f32 %v2950_v52, %v2004_v59 }
 0x16e   : > { %2307 = vst [vmem:[%s3793_s13 + $0x50] sm:$0xff] %v2291_v21  ;;  %v2294_v55 = vmax.f32 %v2278_v28, 0.0  ;;  %v2277_v8 = vadd.f32 %v3769_v47, %v2254_v42  ;;  %v2233_v50 = vadd.f32 %v2210_v31, %v2003_v46 }
 0x16f   : > { %v2257_v17 = vmul.f32 %v3761_v58, %v2234_v19 }
 0x170   : > { %2310 = vst [vmem:[%s3793_s13 + $0x68] sm:$0xff] %v2294_v55  ;;  %v2293_v22 = vmax.f32 %v2277_v8, 0.0  ;;  %v2256_v33 = vmul.f32 %v3761_v58, %v2233_v50 }
 0x171   : > { %v2280_v35 = vadd.f32 %v3769_v47, %v2257_v17 }
 0x172   : > { %2309 = vst [vmem:[%s3793_s13 + $0x60] sm:$0xff] %v2293_v22  ;;  %v2279_v20 = vadd.f32 %v3769_v47, %v2256_v33 }
 0x173   : > { %v2296_v32 = vmax.f32 %v2280_v35, 0.0 }
 0x174   : > { %v2295_v54 = vmax.f32 %v2279_v20, 0.0 }
 0x175   : > { %2312 = vst [vmem:[%s3793_s13 + $0x78] sm:$0xff] %v2296_v32 }
 0x176   : > { %2311 = vst [vmem:[%s3793_s13 + $0x70] sm:$0xff] %v2295_v54 }
 0x177   : > { %3008 = shalt.err (!%p3005_p3)
}
 0x178   : > { %s3009_s6 = scalar_lea.hbm %s3865_s27, 2048  ;;  %s3013_s9 = scalar_lea.hbm %s3917_s4, 8192 }
 0x179   : > { %p3010_p4 = scmp.ne.s32.totalorder %s3865_s27, %s3009_s6  ;;  %p3014_p9 = scmp.lt.s32.totalorder %s3865_s27, %s3917_s4 }
 0x17a   : > { %p3015_p10 = scmp.lt.s32.totalorder %s3013_s9, %s3009_s6 }
 0x17b   : > { %p3011_p7 = pnand %p3010_p4, %p3123_p5 }
 0x17c   : > { %p3016_p11 = por %p3015_p10, %p3014_p9 }
 0x17d   : > { %p3012_p8 = pneg %p3011_p7 }
 0x17f   : > { %p3017_p12 = pnand %p3016_p11, %p3012_p8 }
 0x181   : > { %3020 = shalt.err (!%p3017_p12)
}
 0x182   : > { %s3058_s12 = smov 128   ;;  %s3059_s13 = smov 8  }
 0x183   : > { %2954 = dma.vmem_to_hbm [thread:$0]  (%p3123_p5), %s3867_s20, 2048, %s3865_s27, %s3873_s19, %s3058_s12, %s3058_s12, %s3059_s13  }
 0x184 PF: > { %p2960_p13 = scmp.ge.s32.totalorder %s3055_s18, 2  ;;  %s2342_s14 = sand.u32 1, %s3043_s15  }
 0x185   : > { %s2343_s22 = scalar_lea.sflag [#allocation3], %s2342_s14 }
 0x186   : > { %p2957_p0 = pnand %p2960_p13, %p3127_p6 }
 0x188   : > { %p2958_p1 = pneg %p2957_p0 }
 0x18a   : > { %3038 = dma.done.wait (%p2958_p1), %s2343_s22, 2048  }
 0x18b   : > { %3040 = vsyncadd (%p2958_p1), %s2343_s22, 4294965248  ;;  %p14_p2 = scmp.ge.s32.totalorder %s3110_s21, 6   ;;  %s3958_s15 = smov %s3047_s16 }
 0x18c   : > { %s3959_s16 = smov %s3051_s17  ;;  %s3960_s17 = smov %s3121_s24 }
 0x18d   : > { %s3961_s18 = smov %s3110_s21  ;;  %16 = sbr.rel (!%p14_p2) target bundleno = 3 (0x3), region = 79 }
 0x192   :  { %2348 = vsyncpa [#allocation3], 1 }
 0x193   :  { %2350 = vsyncpa [#allocation3 + $0x1], 1 }

</bundles_post_ra>
